<compile_context>
chip_gen: v7x
topology: tpu7x:2x2x1
jax: 0.10.0
libtpu: 0.0.40
codegen_flags: <defaults>
</compile_context>

<pallas_src>
import functools

import jax
import jax.numpy as jnp
from jax.experimental import pallas as pl
from jax.experimental.pallas import tpu as pltpu


def _round_up(x, m):
    return ((x + m - 1) // m) * m


# ----------------------------- fused Pallas kernel -----------------------------

def _make_kernel(*, ho, wo, hw, c_in, kdim, nc_pad, tile_hw, num_tiles, hw_rows_pad):
    k_pad = kdim - 9 * c_in

    def kernel(xee_ref, xeo_ref, xoe_ref, xoo_ref,
               sw_ref, sb_ref, hcw_ref, hcb_ref,
               w1_ref, b1_ref, w2_ref, b2_ref,
               o_ref, stem_buf, acc_ref):
        j = pl.program_id(1)

        # ---- tile 0 of each image: init accumulator + stem conv into VMEM ----
        @pl.when(j == 0)
        def _():
            acc_ref[...] = jnp.zeros_like(acc_ref)
            ee = xee_ref[0]            # (ho+1, wo+1, c_in) f32 even-row/even-col phase
            eo = xeo_ref[0]            # even-row/odd-col
            oe = xoe_ref[0]            # odd-row/even-col
            oo = xoo_ref[0]            # odd-row/odd-col
            # 3x3/s2 taps, (ki, kj) row-major; each tap is a unit-stride slice.
            taps = [
                ee[:ho, :wo, :], eo[:ho, :wo, :], ee[:ho, 1:wo + 1, :],
                oe[:ho, :wo, :], oo[:ho, :wo, :], oe[:ho, 1:wo + 1, :],
                ee[1:ho + 1, :wo, :], eo[1:ho + 1, :wo, :], ee[1:ho + 1, 1:wo + 1, :],
            ]
            if k_pad > 0:  # pad K (27 -> 32) for MXU-friendly contraction
                taps.append(jnp.zeros((ho, wo, k_pad), dtype=ee.dtype))
            patches = jnp.concatenate(taps, axis=-1)           # (ho, wo, kdim)
            patches = patches.reshape(ho * wo, kdim).astype(jnp.bfloat16)
            y = jnp.dot(patches, sw_ref[...], preferred_element_type=jnp.float32)
            y = y + sb_ref[...]
            y = y * jax.nn.sigmoid(y)                          # SiLU (f32)
            if hw_rows_pad > hw:
                stem_buf[...] = jnp.zeros_like(stem_buf)
            stem_buf[0:hw, :] = y.astype(stem_buf.dtype)       # VMEM only, never HBM

        # ---- every tile: conv_head 1x1 (32->1280) + SiLU, pooled-sum accumulate ----
        r0 = pl.multiple_of(j * tile_hw, tile_hw)
        st = stem_buf[pl.ds(r0, tile_hw), :]                   # (tile_hw, 32) bf16
        y = jnp.dot(st, hcw_ref[...], preferred_element_type=jnp.float32)
        y = y + hcb_ref[...]
        y = y * jax.nn.sigmoid(y)                              # SiLU (f32)
        rows = r0 + jax.lax.broadcasted_iota(jnp.int32, (tile_hw, 1), 0)
        y = jnp.where(rows < hw, y, 0.0)                       # mask HW padding rows
        acc_ref[...] += jnp.sum(y, axis=0, keepdims=True)      # (1, 1280) f32

        # ---- last tile: mean pool + Linear(1280,512) -> ReLU -> Linear(512,nc) ----
        @pl.when(j == num_tiles - 1)
        def _():
            feats = acc_ref[...] * (1.0 / hw)                  # global average pool
            h = jnp.dot(feats.astype(jnp.bfloat16), w1_ref[...],
                        preferred_element_type=jnp.float32) + b1_ref[...]
            h = jnp.maximum(h, 0.0)                            # ReLU (f32)
            logits = jnp.dot(h.astype(jnp.bfloat16), w2_ref[...],
                             preferred_element_type=jnp.float32) + b2_ref[...]
            o_ref[0] = jnp.broadcast_to(logits, (8, nc_pad))   # lane-dense 128-wide

    return kernel


# --------------------------------- parameters ----------------------------------

def init_params(key, num_classes=10, c_in=3, c_stem=32, c_feat=1280, c_hidden=512):
    ks = jax.random.split(key, 8)
    return {
        # stem_w rows: (ki, kj) row-major x c_in, matching the kernel's tap order.
        "stem_w": jax.random.normal(ks[0], (9 * c_in, c_stem), jnp.float32) * 0.1,
        "stem_b": jax.random.normal(ks[1], (1, c_stem), jnp.float32) * 0.01,
        "head_conv_w": jax.random.normal(ks[2], (c_stem, c_feat), jnp.float32) * 0.05,
        "head_conv_b": jax.random.normal(ks[3], (1, c_feat), jnp.float32) * 0.01,
        "fc1_w": jax.random.normal(ks[4], (c_feat, c_hidden), jnp.float32) * 0.02,
        "fc1_b": jax.random.normal(ks[5], (1, c_hidden), jnp.float32) * 0.01,
        "fc2_w": jax.random.normal(ks[6], (c_hidden, num_classes), jnp.float32) * 0.02,
        "fc2_b": jax.random.normal(ks[7], (1, num_classes), jnp.float32) * 0.01,
    }


# ---------------------------------- wrapper -------------------------------------

@functools.partial(jax.jit, static_argnames=("tile_hw",))
def mynet_forward(x_nchw, params, *, tile_hw=512):
    x = jnp.transpose(x_nchw, (0, 2, 3, 1)).astype(jnp.float32)   # NCHW -> NHWC
    n, h, w, c_in = x.shape

    # stem geometry: 3x3, stride 2, symmetric pad 1
    ho = (h + 2 - 3) // 2 + 1
    wo = (w + 2 - 3) // 2 + 1
    hw = ho * wo

    # stride-2 phase decomposition (space-to-depth) of the padded image;
    # same total bytes as the raw pixels — replaces the 9x im2col HBM slab.
    xp = jnp.pad(x, ((0, 0), (1, 1), (1, 1), (0, 0)))

    def _phase(a):
        a = a[:, :ho + 1, :wo + 1, :]
        pad_h = (ho + 1) - a.shape[1]
        pad_w = (wo + 1) - a.shape[2]
        if pad_h or pad_w:
            a = jnp.pad(a, ((0, 0), (0, pad_h), (0, pad_w), (0, 0)))
        return a

    xee = _phase(xp[:, 0::2, 0::2, :])
    xeo = _phase(xp[:, 0::2, 1::2, :])
    xoe = _phase(xp[:, 1::2, 0::2, :])
    xoo = _phase(xp[:, 1::2, 1::2, :])

    # weights: pad contraction / output dims to lane-friendly sizes, cast to bf16
    c_stem = params["stem_w"].shape[1]
    kdim = _round_up(9 * c_in, 8)                                  # 27 -> 32
    stem_w = jnp.zeros((kdim, c_stem), jnp.float32).at[:9 * c_in].set(
        params["stem_w"]).astype(jnp.bfloat16)
    stem_b = params["stem_b"].astype(jnp.float32)

    c_feat = params["head_conv_w"].shape[1]
    hcw = params["head_conv_w"].astype(jnp.bfloat16)
    hcb = params["head_conv_b"].astype(jnp.float32)

    c_hidden = params["fc1_w"].shape[1]
    w1 = params["fc1_w"].astype(jnp.bfloat16)
    b1 = params["fc1_b"].astype(jnp.float32)

    nc = params["fc2_w"].shape[1]
    nc_pad = _round_up(max(nc, 128), 128)                          # 10 -> 128
    w2 = jnp.zeros((c_hidden, nc_pad), jnp.float32).at[:, :nc].set(
        params["fc2_w"]).astype(jnp.bfloat16)
    b2 = jnp.zeros((1, nc_pad), jnp.float32).at[:, :nc].set(params["fc2_b"])

    # grid: (batch, HW tiles).  Batch axis "parallel" (v7x megacore); HW axis is
    # the pooled-sum reduction -> "arbitrary".
    tile = max(8, min(int(tile_hw), _round_up(hw, 8)))
    tile = _round_up(tile, 8)
    num_tiles = pl.cdiv(hw, tile)
    hw_rows_pad = num_tiles * tile

    kernel = _make_kernel(ho=ho, wo=wo, hw=hw, c_in=c_in, kdim=kdim,
                          nc_pad=nc_pad, tile_hw=tile, num_tiles=num_tiles,
                          hw_rows_pad=hw_rows_pad)

    hp1, wp1 = ho + 1, wo + 1
    phase_spec = pl.BlockSpec((1, hp1, wp1, c_in), lambda i, j: (i, 0, 0, 0))

    def _resident(a):  # constant index_map -> fetched once, stays in VMEM
        return pl.BlockSpec(a.shape, lambda i, j: (0,) * a.ndim)

    out = pl.pallas_call(
        kernel,
        out_shape=jax.ShapeDtypeStruct((n, 8, nc_pad), jnp.float32),
        grid_spec=pltpu.PrefetchScalarGridSpec(
            num_scalar_prefetch=0,
            grid=(n, num_tiles),
            in_specs=[phase_spec, phase_spec, phase_spec, phase_spec,
                      _resident(stem_w), _resident(stem_b),
                      _resident(hcw), _resident(hcb),
                      _resident(w1), _resident(b1),
                      _resident(w2), _resident(b2)],
            out_specs=pl.BlockSpec((1, 8, nc_pad), lambda i, j: (i, 0, 0)),
            scratch_shapes=[pltpu.VMEM((hw_rows_pad, c_stem), jnp.bfloat16),
                            pltpu.VMEM((1, c_feat), jnp.float32)],
        ),
        compiler_params=pltpu.CompilerParams(
            dimension_semantics=("parallel", "arbitrary"),
            vmem_limit_bytes=32 * 1024 * 1024,
        ),
    )(xee, xeo, xoe, xoo, stem_w, stem_b, hcw, hcb, w1, b1, w2, b2)

    return out[:, 0, :nc]


if __name__ == "__main__":
    key = jax.random.PRNGKey(0)
    k_x, k_p = jax.random.split(key)

    batch, c_in, hw_img = 2, 3, 16
    num_classes = 10

    x = jax.random.normal(k_x, (batch, c_in, hw_img, hw_img), jnp.float32)  # NCHW
    params = init_params(k_p, num_classes=num_classes, c_in=c_in)

    # tile_hw=32 -> 2 HW tiles per image: exercises the pooled-sum accumulator
    # and gives a (2, 2) grid (>=2 steps on the "parallel" batch axis).
    out = mynet_forward(x, params, tile_hw=32)
    out = jax.block_until_ready(out)
    assert out.shape == (batch, num_classes), out.shape
    assert bool(jnp.all(jnp.isfinite(out)))
    print("KERNEL_OK")
</pallas_src>

<mosaic_0001>
module attributes {stable_mosaic.version = 11 : i64} {
  func.func @kernel(%arg0: i32, %arg1: i32, %arg2: memref<1x9x9x3xf32, #tpu.memory_space<vmem>>, %arg3: memref<1x9x9x3xf32, #tpu.memory_space<vmem>>, %arg4: memref<1x9x9x3xf32, #tpu.memory_space<vmem>>, %arg5: memref<1x9x9x3xf32, #tpu.memory_space<vmem>>, %arg6: memref<32x32xbf16, #tpu.memory_space<vmem>>, %arg7: memref<1x32xf32, #tpu.memory_space<vmem>>, %arg8: memref<32x1280xbf16, #tpu.memory_space<vmem>>, %arg9: memref<1x1280xf32, #tpu.memory_space<vmem>>, %arg10: memref<1280x512xbf16, #tpu.memory_space<vmem>>, %arg11: memref<1x512xf32, #tpu.memory_space<vmem>>, %arg12: memref<512x128xbf16, #tpu.memory_space<vmem>>, %arg13: memref<1x128xf32, #tpu.memory_space<vmem>>, %arg14: memref<1x8x128xf32, #tpu.memory_space<vmem>>, %arg15: memref<64x32xbf16, #tpu.memory_space<vmem>>, %arg16: memref<1x1280xf32, #tpu.memory_space<vmem>>) attributes {dimension_semantics = [#tpu.dimension_semantics<parallel>, #tpu.dimension_semantics<arbitrary>], iteration_bounds = array<i64: 2, 2>, scalar_prefetch = 0 : i64, scratch_operands = 2 : i64, tpu.core_type = #tpu.core_type<tc>, window_params = [{transform_indices = @transform_0, window_bounds = array<i64: 1, 9, 9, 3>}, {transform_indices = @transform_1, window_bounds = array<i64: 1, 9, 9, 3>}, {transform_indices = @transform_2, window_bounds = array<i64: 1, 9, 9, 3>}, {transform_indices = @transform_3, window_bounds = array<i64: 1, 9, 9, 3>}, {pipeline_mode = #tpu.pipeline_mode<synchronous>, transform_indices = @transform_4, window_bounds = array<i64: 32, 32>}, {pipeline_mode = #tpu.pipeline_mode<synchronous>, transform_indices = @transform_5, window_bounds = array<i64: 1, 32>}, {pipeline_mode = #tpu.pipeline_mode<synchronous>, transform_indices = @transform_6, window_bounds = array<i64: 32, 1280>}, {pipeline_mode = #tpu.pipeline_mode<synchronous>, transform_indices = @transform_7, window_bounds = array<i64: 1, 1280>}, {pipeline_mode = #tpu.pipeline_mode<synchronous>, transform_indices = @transform_8, window_bounds = array<i64: 1280, 512>}, {pipeline_mode = #tpu.pipeline_mode<synchronous>, transform_indices = @transform_9, window_bounds = array<i64: 1, 512>}, {pipeline_mode = #tpu.pipeline_mode<synchronous>, transform_indices = @transform_10, window_bounds = array<i64: 512, 128>}, {pipeline_mode = #tpu.pipeline_mode<synchronous>, transform_indices = @transform_11, window_bounds = array<i64: 1, 128>}, {transform_indices = @transform_12, window_bounds = array<i64: 1, 8, 128>}]} {
    %c0_i32 = arith.constant 0 : i32
    %0 = arith.cmpi eq, %arg1, %c0_i32 : i32
    %1 = arith.extui %0 : i1 to i32
    %c0_i32_0 = arith.constant 0 : i32
    %2 = arith.cmpi ne, %1, %c0_i32_0 : i32
    scf.if %2 {
      %cst_13 = arith.constant 0.000000e+00 : f32
      %35 = vector.broadcast %cst_13 : f32 to vector<1x1280xf32>
      %c0_14 = arith.constant 0 : index
      %c0_15 = arith.constant 0 : index
      %36 = vector.load %arg16[%c0_14, %c0_15] : memref<1x1280xf32, #tpu.memory_space<vmem>>, vector<1x1280xf32>
      tpu.vector_store %arg16[%c0_14, %c0_15], %35 {strides = array<i32>} : memref<1x1280xf32, #tpu.memory_space<vmem>>, vector<1x1280xf32>,
      %c0_16 = arith.constant 0 : index
      %c0_17 = arith.constant 0 : index
      %c0_18 = arith.constant 0 : index
      %c0_19 = arith.constant 0 : index
      %37 = vector.load %arg2[%c0_16, %c0_17, %c0_18, %c0_19] : memref<1x9x9x3xf32, #tpu.memory_space<vmem>>, vector<1x9x9x3xf32>
      %38 = vector.shape_cast %37 : vector<1x9x9x3xf32> to vector<9x9x3xf32>
      %c0_20 = arith.constant 0 : index
      %c0_21 = arith.constant 0 : index
      %c0_22 = arith.constant 0 : index
      %c0_23 = arith.constant 0 : index
      %39 = vector.load %arg3[%c0_20, %c0_21, %c0_22, %c0_23] : memref<1x9x9x3xf32, #tpu.memory_space<vmem>>, vector<1x9x9x3xf32>
      %40 = vector.shape_cast %39 : vector<1x9x9x3xf32> to vector<9x9x3xf32>
      %c0_24 = arith.constant 0 : index
      %c0_25 = arith.constant 0 : index
      %c0_26 = arith.constant 0 : index
      %c0_27 = arith.constant 0 : index
      %41 = vector.load %arg4[%c0_24, %c0_25, %c0_26, %c0_27] : memref<1x9x9x3xf32, #tpu.memory_space<vmem>>, vector<1x9x9x3xf32>
      %42 = vector.shape_cast %41 : vector<1x9x9x3xf32> to vector<9x9x3xf32>
      %c0_28 = arith.constant 0 : index
      %c0_29 = arith.constant 0 : index
      %c0_30 = arith.constant 0 : index
      %c0_31 = arith.constant 0 : index
      %43 = vector.load %arg5[%c0_28, %c0_29, %c0_30, %c0_31] : memref<1x9x9x3xf32, #tpu.memory_space<vmem>>, vector<1x9x9x3xf32>
      %44 = vector.shape_cast %43 : vector<1x9x9x3xf32> to vector<9x9x3xf32>
      %45 = vector.extract_strided_slice %38 {offsets = [0, 0, 0], sizes = [8, 8, 3], strides = [1, 1, 1]} : vector<9x9x3xf32> to vector<8x8x3xf32>
      %46 = vector.extract_strided_slice %40 {offsets = [0, 0, 0], sizes = [8, 8, 3], strides = [1, 1, 1]} : vector<9x9x3xf32> to vector<8x8x3xf32>
      %47 = vector.extract_strided_slice %38 {offsets = [0, 1, 0], sizes = [8, 8, 3], strides = [1, 1, 1]} : vector<9x9x3xf32> to vector<8x8x3xf32>
      %48 = vector.extract_strided_slice %42 {offsets = [0, 0, 0], sizes = [8, 8, 3], strides = [1, 1, 1]} : vector<9x9x3xf32> to vector<8x8x3xf32>
      %49 = vector.extract_strided_slice %44 {offsets = [0, 0, 0], sizes = [8, 8, 3], strides = [1, 1, 1]} : vector<9x9x3xf32> to vector<8x8x3xf32>
      %50 = vector.extract_strided_slice %42 {offsets = [0, 1, 0], sizes = [8, 8, 3], strides = [1, 1, 1]} : vector<9x9x3xf32> to vector<8x8x3xf32>
      %51 = vector.extract_strided_slice %38 {offsets = [1, 0, 0], sizes = [8, 8, 3], strides = [1, 1, 1]} : vector<9x9x3xf32> to vector<8x8x3xf32>
      %52 = vector.extract_strided_slice %40 {offsets = [1, 0, 0], sizes = [8, 8, 3], strides = [1, 1, 1]} : vector<9x9x3xf32> to vector<8x8x3xf32>
      %53 = vector.extract_strided_slice %38 {offsets = [1, 1, 0], sizes = [8, 8, 3], strides = [1, 1, 1]} : vector<9x9x3xf32> to vector<8x8x3xf32>
      %cst_32 = arith.constant 0.000000e+00 : f32
      %54 = vector.broadcast %cst_32 : f32 to vector<8x8x5xf32>
      %55 = tpu.concatenate %45, %46, %47, %48, %49, %50, %51, %52, %53, %54 in 2 : vector<8x8x3xf32>, vector<8x8x3xf32>, vector<8x8x3xf32>, vector<8x8x3xf32>, vector<8x8x3xf32>, vector<8x8x3xf32>, vector<8x8x3xf32>, vector<8x8x3xf32>, vector<8x8x3xf32>, vector<8x8x5xf32> -> vector<8x8x32xf32>
      %56 = vector.shape_cast %55 : vector<8x8x32xf32> to vector<64x32xf32>
      %57 = arith.truncf %56 : vector<64x32xf32> to vector<64x32xbf16>
      %c0_33 = arith.constant 0 : index
      %c0_34 = arith.constant 0 : index
      %58 = vector.load %arg6[%c0_33, %c0_34] : memref<32x32xbf16, #tpu.memory_space<vmem>>, vector<32x32xbf16>
      %cst_35 = arith.constant dense<0.000000e+00> : vector<64x32xf32>
      %59 = tpu.matmul %57, %58, %cst_35 {dimension_numbers = #tpu.dot_dimension_numbers<[1], [0], [0], [1], [0, 0, 1, 1], [], []>} : vector<64x32xbf16>, vector<32x32xbf16>, vector<64x32xf32> -> vector<64x32xf32>
      %c0_36 = arith.constant 0 : index
      %c0_37 = arith.constant 0 : index
      %60 = vector.load %arg7[%c0_36, %c0_37] : memref<1x32xf32, #tpu.memory_space<vmem>>, vector<1x32xf32>
      %61 = vector.broadcast %60 : vector<1x32xf32> to vector<64x32xf32>
      %62 = arith.addf %59, %61 : vector<64x32xf32>
      %63 = arith.negf %62 : vector<64x32xf32>
      %64 = math.exp %63 : vector<64x32xf32>
      %cst_38 = arith.constant 1.000000e+00 : f32
      %65 = vector.broadcast %cst_38 : f32 to vector<64x32xf32>
      %66 = arith.addf %65, %64 : vector<64x32xf32>
      %67 = arith.divf %65, %66 : vector<64x32xf32>
      %68 = arith.mulf %62, %67 : vector<64x32xf32>
      %69 = arith.truncf %68 : vector<64x32xf32> to vector<64x32xbf16>
      %c0_39 = arith.constant 0 : index
      %c0_40 = arith.constant 0 : index
      %70 = vector.load %arg15[%c0_39, %c0_40] : memref<64x32xbf16, #tpu.memory_space<vmem>>, vector<64x32xbf16>
      tpu.vector_store %arg15[%c0_39, %c0_40], %69 {strides = array<i32>} : memref<64x32xbf16, #tpu.memory_space<vmem>>, vector<64x32xbf16>,
    } else {
    }
    %c32_i32 = arith.constant 32 : i32
    %3 = arith.muli %arg1, %c32_i32 : i32
    %4 = tpu.assume_multiple %3, 32 : i32
    %5 = arith.index_cast %4 : i32 to index
    %c0 = arith.constant 0 : index
    %6 = vector.load %arg15[%5, %c0] : memref<64x32xbf16, #tpu.memory_space<vmem>>, vector<32x32xbf16>
    %c0_1 = arith.constant 0 : index
    %c0_2 = arith.constant 0 : index
    %7 = vector.load %arg8[%c0_1, %c0_2] : memref<32x1280xbf16, #tpu.memory_space<vmem>>, vector<32x1280xbf16>
    %cst = arith.constant dense<0.000000e+00> : vector<32x1280xf32>
    %8 = tpu.matmul %6, %7, %cst {dimension_numbers = #tpu.dot_dimension_numbers<[1], [0], [0], [1], [0, 0, 1, 1], [], []>} : vector<32x32xbf16>, vector<32x1280xbf16>, vector<32x1280xf32> -> vector<32x1280xf32>
    %c0_3 = arith.constant 0 : index
    %c0_4 = arith.constant 0 : index
    %9 = vector.load %arg9[%c0_3, %c0_4] : memref<1x1280xf32, #tpu.memory_space<vmem>>, vector<1x1280xf32>
    %10 = vector.broadcast %9 : vector<1x1280xf32> to vector<32x1280xf32>
    %11 = arith.addf %8, %10 : vector<32x1280xf32>
    %12 = arith.negf %11 : vector<32x1280xf32>
    %13 = math.exp %12 : vector<32x1280xf32>
    %cst_5 = arith.constant 1.000000e+00 : f32
    %14 = vector.broadcast %cst_5 : f32 to vector<32x1280xf32>
    %15 = arith.addf %14, %13 : vector<32x1280xf32>
    %16 = arith.divf %14, %15 : vector<32x1280xf32>
    %17 = arith.mulf %11, %16 : vector<32x1280xf32>
    %18 = tpu.iota {dimensions = array<i32: 0>} : vector<32x1xi32>
    %19 = vector.broadcast %4 : i32 to vector<32x1xi32>
    %20 = arith.addi %19, %18 : vector<32x1xi32>
    %c64_i32 = arith.constant 64 : i32
    %21 = vector.broadcast %c64_i32 : i32 to vector<32x1xi32>
    %22 = arith.cmpi slt, %20, %21 : vector<32x1xi32>
    %cst_6 = arith.constant 0.000000e+00 : f32
    %23 = vector.shape_cast %22 : vector<32x1xi1> to vector<32x1xi1>
    %24 = vector.broadcast %23 : vector<32x1xi1> to vector<32x1280xi1>
    %25 = vector.broadcast %cst_6 : f32 to vector<32x1280xf32>
    %26 = arith.select %24, %17, %25 : vector<32x1280xi1>, vector<32x1280xf32>
    %c0_7 = arith.constant 0 : index
    %c0_8 = arith.constant 0 : index
    %27 = vector.load %arg16[%c0_7, %c0_8] : memref<1x1280xf32, #tpu.memory_space<vmem>>, vector<1x1280xf32>
    %cst_9 = arith.constant dense<0.000000e+00> : vector<1280xf32>
    %28 = vector.multi_reduction <add>, %26, %cst_9 [0] : vector<32x1280xf32> to vector<1280xf32>
    %29 = vector.shape_cast %28 : vector<1280xf32> to vector<1x1280xf32>
    %30 = arith.addf %27, %29 : vector<1x1280xf32>
    %c0_10 = arith.constant 0 : index
    %c0_11 = arith.constant 0 : index
    %31 = vector.load %arg16[%c0_10, %c0_11] : memref<1x1280xf32, #tpu.memory_space<vmem>>, vector<1x1280xf32>
    tpu.vector_store %arg16[%c0_10, %c0_11], %30 {strides = array<i32>} : memref<1x1280xf32, #tpu.memory_space<vmem>>, vector<1x1280xf32>,
    %c1_i32 = arith.constant 1 : i32
    %32 = arith.cmpi eq, %arg1, %c1_i32 : i32
    %33 = arith.extui %32 : i1 to i32
    %c0_i32_12 = arith.constant 0 : i32
    %34 = arith.cmpi ne, %33, %c0_i32_12 : i32
    scf.if %34 {
      %c0_13 = arith.constant 0 : index
      %c0_14 = arith.constant 0 : index
      %35 = vector.load %arg16[%c0_13, %c0_14] : memref<1x1280xf32, #tpu.memory_space<vmem>>, vector<1x1280xf32>
      %cst_15 = arith.constant 1.562500e-02 : f32
      %36 = vector.broadcast %cst_15 : f32 to vector<1x1280xf32>
      %37 = arith.mulf %35, %36 : vector<1x1280xf32>
      %38 = arith.truncf %37 : vector<1x1280xf32> to vector<1x1280xbf16>
      %c0_16 = arith.constant 0 : index
      %c0_17 = arith.constant 0 : index
      %39 = vector.load %arg10[%c0_16, %c0_17] : memref<1280x512xbf16, #tpu.memory_space<vmem>>, vector<1280x512xbf16>
      %cst_18 = arith.constant dense<0.000000e+00> : vector<1x512xf32>
      %40 = tpu.matmul %38, %39, %cst_18 {dimension_numbers = #tpu.dot_dimension_numbers<[1], [0], [0], [1], [0, 0, 1, 1], [], []>} : vector<1x1280xbf16>, vector<1280x512xbf16>, vector<1x512xf32> -> vector<1x512xf32>
      %c0_19 = arith.constant 0 : index
      %c0_20 = arith.constant 0 : index
      %41 = vector.load %arg11[%c0_19, %c0_20] : memref<1x512xf32, #tpu.memory_space<vmem>>, vector<1x512xf32>
      %42 = arith.addf %40, %41 : vector<1x512xf32>
      %cst_21 = arith.constant 0.000000e+00 : f32
      %43 = vector.broadcast %cst_21 : f32 to vector<1x512xf32>
      %44 = arith.maximumf %42, %43 : vector<1x512xf32>
      %45 = arith.truncf %44 : vector<1x512xf32> to vector<1x512xbf16>
      %c0_22 = arith.constant 0 : index
      %c0_23 = arith.constant 0 : index
      %46 = vector.load %arg12[%c0_22, %c0_23] : memref<512x128xbf16, #tpu.memory_space<vmem>>, vector<512x128xbf16>
      %cst_24 = arith.constant dense<0.000000e+00> : vector<1x128xf32>
      %47 = tpu.matmul %45, %46, %cst_24 {dimension_numbers = #tpu.dot_dimension_numbers<[1], [0], [0], [1], [0, 0, 1, 1], [], []>} : vector<1x512xbf16>, vector<512x128xbf16>, vector<1x128xf32> -> vector<1x128xf32>
      %c0_25 = arith.constant 0 : index
      %c0_26 = arith.constant 0 : index
      %48 = vector.load %arg13[%c0_25, %c0_26] : memref<1x128xf32, #tpu.memory_space<vmem>>, vector<1x128xf32>
      %49 = arith.addf %47, %48 : vector<1x128xf32>
      %50 = vector.shape_cast %49 : vector<1x128xf32> to vector<1x128xf32>
      %51 = vector.broadcast %50 : vector<1x128xf32> to vector<8x128xf32>
      %c0_27 = arith.constant 0 : index
      %c0_28 = arith.constant 0 : index
      %c0_29 = arith.constant 0 : index
      %52 = vector.load %arg14[%c0_27, %c0_28, %c0_29] : memref<1x8x128xf32, #tpu.memory_space<vmem>>, vector<1x8x128xf32>
      %53 = vector.shape_cast %52 : vector<1x8x128xf32> to vector<8x128xf32>
      %54 = vector.shape_cast %51 : vector<8x128xf32> to vector<1x8x128xf32>
      tpu.vector_store %arg14[%c0_27, %c0_28, %c0_29], %54 {strides = array<i32>} : memref<1x8x128xf32, #tpu.memory_space<vmem>>, vector<1x8x128xf32>,
    } else {
    }
    return
  }
  func.func @transform_0(%arg0: i32, %arg1: i32) -> (i32, i32, i32, i32) {
    %c0_i32 = arith.constant 0 : i32
    %c0_i32_0 = arith.constant 0 : i32
    %c0_i32_1 = arith.constant 0 : i32
    %c0_i32_2 = arith.constant 0 : i32
    return %arg0, %c0_i32, %c0_i32_0, %c0_i32_1 : i32, i32, i32, i32
  }
  func.func @transform_1(%arg0: i32, %arg1: i32) -> (i32, i32, i32, i32) {
    %c0_i32 = arith.constant 0 : i32
    %c0_i32_0 = arith.constant 0 : i32
    %c0_i32_1 = arith.constant 0 : i32
    %c0_i32_2 = arith.constant 0 : i32
    return %arg0, %c0_i32, %c0_i32_0, %c0_i32_1 : i32, i32, i32, i32
  }
  func.func @transform_2(%arg0: i32, %arg1: i32) -> (i32, i32, i32, i32) {
    %c0_i32 = arith.constant 0 : i32
    %c0_i32_0 = arith.constant 0 : i32
    %c0_i32_1 = arith.constant 0 : i32
    %c0_i32_2 = arith.constant 0 : i32
    return %arg0, %c0_i32, %c0_i32_0, %c0_i32_1 : i32, i32, i32, i32
  }
  func.func @transform_3(%arg0: i32, %arg1: i32) -> (i32, i32, i32, i32) {
    %c0_i32 = arith.constant 0 : i32
    %c0_i32_0 = arith.constant 0 : i32
    %c0_i32_1 = arith.constant 0 : i32
    %c0_i32_2 = arith.constant 0 : i32
    return %arg0, %c0_i32, %c0_i32_0, %c0_i32_1 : i32, i32, i32, i32
  }
  func.func @transform_4(%arg0: i32, %arg1: i32) -> (i32, i32) {
    %c0_i32 = arith.constant 0 : i32
    %c0_i32_0 = arith.constant 0 : i32
    %c0_i32_1 = arith.constant 0 : i32
    return %c0_i32, %c0_i32_0 : i32, i32
  }
  func.func @transform_5(%arg0: i32, %arg1: i32) -> (i32, i32) {
    %c0_i32 = arith.constant 0 : i32
    %c0_i32_0 = arith.constant 0 : i32
    %c0_i32_1 = arith.constant 0 : i32
    return %c0_i32, %c0_i32_0 : i32, i32
  }
  func.func @transform_6(%arg0: i32, %arg1: i32) -> (i32, i32) {
    %c0_i32 = arith.constant 0 : i32
    %c0_i32_0 = arith.constant 0 : i32
    %c0_i32_1 = arith.constant 0 : i32
    return %c0_i32, %c0_i32_0 : i32, i32
  }
  func.func @transform_7(%arg0: i32, %arg1: i32) -> (i32, i32) {
    %c0_i32 = arith.constant 0 : i32
    %c0_i32_0 = arith.constant 0 : i32
    %c0_i32_1 = arith.constant 0 : i32
    return %c0_i32, %c0_i32_0 : i32, i32
  }
  func.func @transform_8(%arg0: i32, %arg1: i32) -> (i32, i32) {
    %c0_i32 = arith.constant 0 : i32
    %c0_i32_0 = arith.constant 0 : i32
    %c0_i32_1 = arith.constant 0 : i32
    return %c0_i32, %c0_i32_0 : i32, i32
  }
  func.func @transform_9(%arg0: i32, %arg1: i32) -> (i32, i32) {
    %c0_i32 = arith.constant 0 : i32
    %c0_i32_0 = arith.constant 0 : i32
    %c0_i32_1 = arith.constant 0 : i32
    return %c0_i32, %c0_i32_0 : i32, i32
  }
  func.func @transform_10(%arg0: i32, %arg1: i32) -> (i32, i32) {
    %c0_i32 = arith.constant 0 : i32
    %c0_i32_0 = arith.constant 0 : i32
    %c0_i32_1 = arith.constant 0 : i32
    return %c0_i32, %c0_i32_0 : i32, i32
  }
  func.func @transform_11(%arg0: i32, %arg1: i32) -> (i32, i32) {
    %c0_i32 = arith.constant 0 : i32
    %c0_i32_0 = arith.constant 0 : i32
    %c0_i32_1 = arith.constant 0 : i32
    return %c0_i32, %c0_i32_0 : i32, i32
  }
  func.func @transform_12(%arg0: i32, %arg1: i32) -> (i32, i32, i32) {
    %c0_i32 = arith.constant 0 : i32
    %c0_i32_0 = arith.constant 0 : i32
    %c0_i32_1 = arith.constant 0 : i32
    return %arg0, %c0_i32, %c0_i32_0 : i32, i32, i32
  }
}

</mosaic_0001>

<bundles_post_ra>
// kernel: mynet_forward.1
= control target key start
LH: loop header
LB: loop body
LE: loop exit
PB: predicated region body
PF: predicated region fallthrough
CT: control target
= control target key end

     0   :  { %s6559_s21 = smov 0   ;;  %s6561_s22 = smov 0   ;;  %s8598_s0 = inlined_call_operand.vmem [shape: f32[2,9,9,3], index: 0, kind: input, shape index: {}]   ;;  %s8599_s1 = inlined_call_operand.vmem [shape: f32[2,9,9,3], index: 1, kind: input, shape index: {}]   ;;  %s8600_s2 = inlined_call_operand.vmem [shape: f32[2,9,9,3], index: 2, kind: input, shape index: {}]   ;;  %s8601_s3 = inlined_call_operand.vmem [shape: f32[2,9,9,3], index: 3, kind: input, shape index: {}]   ;;  %s8602_s4 = inlined_call_operand.vmem [shape: bf16[32,32], index: 4, kind: input, shape index: {}]   ;;  %s8603_s5 = inlined_call_operand.vmem [shape: f32[1,32], index: 5, kind: input, shape index: {}]   ;;  %s8604_s6 = inlined_call_operand.vmem [shape: bf16[32,1280], index: 6, kind: input, shape index: {}]   ;;  %s8605_s7 = inlined_call_operand.vmem [shape: f32[1,1280], index: 7, kind: input, shape index: {}]   ;;  %s8606_s8 = inlined_call_operand.vmem [shape: bf16[1280,512], index: 8, kind: input, shape index: {}]   ;;  %s8607_s9 = inlined_call_operand.vmem [shape: f32[1,512], index: 9, kind: input, shape index: {}]   ;;  %s8608_s10 = inlined_call_operand.vmem [shape: bf16[512,128], index: 10, kind: input, shape index: {}]   ;;  %s8609_s11 = inlined_call_operand.vmem [shape: f32[1,128], index: 11, kind: input, shape index: {}]   ;;  %s8610_s12 = inlined_call_operand.vmem [shape: f32[2,8,128], index: 12, kind: output, shape index: {}]  }
   0x1   :  { %s6563_s23 = smov 0   ;;  %s6565_s24 = smov 0  }
   0x2   :  { %s6567_s25 = smov 0  }
   0x3 LB: > { %8626 = sst [smem:[#allocation4_spill]] %s6473_s23  ;;  %s31_s26 = sadd.s32 1, %s6473_s23  ;;  %s6481_s25 = sphi %s6567_s25, %s22_s25   ;;  %s6477_s24 = sphi %s6565_s24, %s8653_s24   ;;  %s6473_s23 = sphi %s6563_s23, %s8652_s23   ;;  %s6469_s22 = sphi %s6561_s22, %s8651_s22   ;;  %s6465_s21 = sphi %s6559_s21, %s8650_s21  }
   0x4   : > { %8627 = sst [smem:[#allocation5_spill]] %s6477_s24  ;;  %s34_s27 = sadd.s32 1, %s6477_s24 }
   0x5   : > { %p32_p0 = scmp.ge.s32.totalorder %s31_s26, 2  ;;  %p4940_p1 = scmp.ge.s32.totalorder %s6481_s25, 1 }
   0x6   : > { %p404_p2 = scmp.lt.s32.totalorder %s6481_s25, 5 }
   0x7   : > { %s8655_s26 = smov (%p32_p0, %s31_s26), 0  ;;  %s8657_s27 = smov (!%p32_p0, %s34_s27), %s6477_s24 }
   0x8   : > { %8628 = sst [smem:[#allocation6_spill]] %s8655_s26  ;;  %p405_p3 = pnand %p4940_p1, %p404_p2 }
   0x9   : > { %p36_p4 = scmp.ge.s32.totalorder %s8657_s27, 2 }
   0xa   : > { %408 = sbr.rel (%p405_p3) target bundleno = 1579 (0x62b), region = 68 }
   0xb   : > { %s8659_s27 = smov (%p36_p4, %s8657_s27), 0 }
   0xc   : > { %8629 = sst [smem:[#allocation7_spill]] %s8659_s27 }
  0x11   : > { %p460_p5 = scmp.lt.s32.totalorder %s6469_s22, 1  ;;  %p4946_p6 = scmp.ne.s32.totalorder %s6465_s21, 0 }
  0x12   : > { %vm594_vm0 = vcmask (!%p4946_p6), 1046528   ;;  %s6483_s23 = smov (!%p4946_p6), 3   ;;  %s6484_s26 = smov (!%p4946_p6), 6   ;;  %vm841_vm2 = vcmask (!%p4946_p6), 23552   ;;  %vm850_vm3 = vcmask (!%p4946_p6), 48128   ;;  %vm859_vm4 = vcmask (!%p4946_p6), 72704  }
  0x13   : > { %s8661_s22 = smov (!%p460_p5, %s6469_s22), 1  ;;  %488 = sbr.rel (%p4946_p6) target bundleno = 460 (0x1cc), region = 72 }
  0x14   : > { %s5495_s28 = smul.u32 144, %s8661_s22  ;;  %s4945_s29 = sshll.u32 %s8661_s22, 3  ;;  %vm868_vm5 = vcmask (!%p4946_p6), 97280   ;;  %vm877_vm6 = vcmask (!%p4946_p6), 121856   ;;  %vm886_vm7 = vcmask (!%p4946_p6), 146432   ;;  %vm895_vm8 = vcmask (!%p4946_p6), 171008  }
  0x15   : > { %s6594_s14 = scalar_lea.vmem %s8610_s12, %s4945_s29  ;;  %s6485_s27 = smov (!%p4946_p6), 9   ;;  %vm904_vm9 = vcmask (!%p4946_p6), 195584   ;;  %vm913_vm10 = vcmask (!%p4946_p6), 220160   ;;  %vm949_vm11 = vcmask (!%p4946_p6), 261120  }
  0x16   : > { %s6599_s17 = scalar_lea.vmem %s8598_s0, %s5495_s28  ;;  %s6604_s20 = scalar_lea.vmem %s8599_s1, %s5495_s28 }
  0x17   : > { %s6609_s24 = scalar_lea.vmem %s8600_s2, %s5495_s28  ;;  %s6614_s29 = scalar_lea.vmem %s8601_s3, %s5495_s28  ;;  %v6618_v0 = vld [vmem:[%s6604_s20 + $0x30] sm:$0xff] (!%p4946_p6)  ;;  %v6621_v1 = vld [vmem:[%s6604_s20 + $0x40] sm:$0xff] (!%p4946_p6)  ;;  %v504_v12 = vld [vmem:[%s6599_s17 + $0x48] sm:$0x1] (!%p4946_p6) }
  0x18   : > { %v6624_v2 = vld [vmem:[%s6604_s20 + $0x20] sm:$0xff] (!%p4946_p6)  ;;  %v6629_v4 = vld [vmem:[%s6604_s20 + $0x10] sm:$0xff] (!%p4946_p6)  ;;  %v506_v14 = vld [vmem:[%s6599_s17 + $0x58] sm:$0x1] (!%p4946_p6)  ;;  %v608_v17 = vrot.slane (!%p4946_p6), %v504_v12, 1  ;;  %s6486_s28 = smov (!%p4946_p6), 12  }
  0x19   : > { %v5557_v3 = vpack.i.bf16 (!%p4946_p6), %v6618_v0, %v6624_v2  ;;  %v513_v5 = vld [vmem:[%s6604_s20] sm:$0xff] (!%p4946_p6)  ;;  %v6637_v8 = vld [vmem:[%s6604_s20 + $0x70] sm:$0xff] (!%p4946_p6)  ;;  %v611_v19 = vrot.slane (!%p4946_p6), %v506_v14, 1  ;;  %v496_v21 = vld [vmem:[%s6599_s17 + $0x8] sm:$0x1] (!%p4946_p6)  ;;  %s6488_s30 = smov (!%p4946_p6), 18  }
  0x1a   : > { %v6633_v6 = vld [vmem:[%s6604_s20 + $0x60] sm:$0xff]  ;;  %v5547_v7 = vpack.i.bf16 %v6629_v4, %v513_v5  ;;  %v6640_v9 = vld [vmem:[%s6604_s20 + $0x50] sm:$0xff]  ;;  %v498_v23 = vld [vmem:[%s6599_s17 + $0x18] sm:$0x1]  ;;  %v596_v25 = vrot.slane %v496_v21, 1  ;;  %s6490_s16 = smov 21  }
  0x1b   : > { %v6643_v10 = vld [vmem:[%s6599_s17 + $0x40] sm:$0xff]  ;;  %5558 = vrot.lane.b32.xlu1 %v5557_v3, %s6483_s23  ;;  %v5562_v11 = vpack.i.bf16 %v6637_v8, %v6633_v6  ;;  %v6650_v13 = vld [vmem:[%s6599_s17 + $0x50] sm:$0xff]  ;;  %v5552_v16 = vpack.i.bf16 %v6640_v9, %v6621_v1  ;;  %v599_v30 = vrot.slane %v498_v23, 1  ;;  %v508_v31 = vld [vmem:[%s6599_s17 + $0x68] sm:$0x1] }
  0x1c   : > { %v607_v15 = vrot.slane %v6643_v10, 1  ;;  %5548 = vrot.lane.b32.xlu0 %v5547_v7, %s6483_s23  ;;  %v610_v18 = vrot.slane %v6650_v13, 1  ;;  %v6659_v20 = vld [vmem:[%s6599_s17] sm:$0xff]  ;;  %v6663_v22 = vld [vmem:[%s6599_s17 + $0x10] sm:$0xff]  ;;  %v510_v36 = vld [vmem:[%s6599_s17 + $0x78] sm:$0x1] }
  0x1d   : > { %v595_v24 = vrot.slane %v6659_v20, 1  ;;  %v6668_v26 = vld [vmem:[%s6599_s17 + $0x60] sm:$0xff]  ;;  %v598_v29 = vrot.slane %v6663_v22, 1  ;;  %v6679_v32 = vld [vmem:[%s6599_s17 + $0x70] sm:$0xff]  ;;  %v614_v38 = vrot.slane %v508_v31, 1  ;;  %v617_v42 = vrot.slane %v510_v36, 1 }
  0x1e   : > { %v6671_v27 = vsel %vm594_vm0, %v607_v15, %v608_v17  ;;  %v6674_v28 = vsel %vm594_vm0, %v610_v18, %v611_v19  ;;  %v6682_v33 = vld [vmem:[%s6599_s17 + $0x20] sm:$0xff]  ;;  %v613_v37 = vrot.slane %v6668_v26, 1  ;;  %v500_v39 = vld [vmem:[%s6599_s17 + $0x28] sm:$0x1]  ;;  %v616_v41 = vrot.slane %v6679_v32, 1  ;;  %v6697_v43 = vld [vmem:[%s6599_s17 + $0x30] sm:$0xff] }
  0x1f   : > { %5563 = vrot.lane.b32.xlu1 %v5562_v11, %s6483_s23  ;;  %v5572_v34 = vpack.i.bf16 %v6674_v28, %v6671_v27  ;;  %v597_v35 = vsel %vm594_vm0, %v595_v24, %v596_v25  ;;  %v6693_v40 = vsel %vm594_vm0, %v598_v29, %v599_v30  ;;  %v502_v44 = vld [vmem:[%s6599_s17 + $0x38] sm:$0x1]  ;;  %v601_v45 = vrot.slane %v6682_v33, 1  ;;  %v530_v55 = vld [vmem:[%s6609_s24 + $0x40] sm:$0xff]  ;;  %v532_v56 = vld [vmem:[%s6609_s24 + $0x50] sm:$0xff] }
  0x20   : > { %5553 = vrot.lane.b32.xlu0 %v5552_v16, %s6483_s23  ;;  %v5567_v46 = vpack.i.bf16 %v6693_v40, %v597_v35  ;;  %v6703_v47 = vsel %vm594_vm0, %v613_v37, %v614_v38  ;;  %v602_v48 = vrot.slane %v500_v39, 1  ;;  %v604_v49 = vrot.slane %v6697_v43, 1  ;;  %v522_v58 = vld [vmem:[%s6609_s24] sm:$0xff]  ;;  %v524_v59 = vld [vmem:[%s6609_s24 + $0x10] sm:$0xff]  ;;  %v531_v17 = vld [vmem:[%s6609_s24 + $0x48] sm:$0x1] }
  0x21   : > { %v6707_v50 = vsel %vm594_vm0, %v616_v41, %v617_v42  ;;  %v605_v51 = vrot.slane %v502_v44, 1  ;;  %v5592_v60 = vpack.i.bf16 %v532_v56, %v530_v55  ;;  %v5587_v61 = vpack.i.bf16 %v524_v59, %v522_v58  ;;  %v534_v62 = vld [vmem:[%s6609_s24 + $0x60] sm:$0xff]  ;;  %v536_v63 = vld [vmem:[%s6609_s24 + $0x70] sm:$0xff]  ;;  %v533_v18 = vld [vmem:[%s6609_s24 + $0x58] sm:$0x1] }
  0x22   : > { %v5582_v52 = vpack.i.bf16 %v6707_v50, %v6703_v47  ;;  %v6712_v53 = vsel %vm594_vm0, %v601_v45, %v602_v48  ;;  %v526_v3 = vld [vmem:[%s6609_s24 + $0x20] sm:$0xff]  ;;  %v528_v5 = vld [vmem:[%s6609_s24 + $0x30] sm:$0xff]  ;;  %v5602_v11 = vpack.i.bf16 %v536_v63, %v534_v62  ;;  %v523_v19 = vld [vmem:[%s6609_s24 + $0x8] sm:$0x1]  ;;  %v730_v23 = vrot.slane %v532_v56, 1 }
  0x23   : > { %5573 = vrot.lane.b32.xlu1 %v5572_v34, %s6484_s26  ;;  %v6715_v54 = vsel %vm594_vm0, %v604_v49, %v605_v51  ;;  %v542_v7 = vld [vmem:[%s6614_s29 + $0x40] sm:$0xff]  ;;  %v543_v12 = vld [vmem:[%s6614_s29 + $0x50] sm:$0xff]  ;;  %v5597_v14 = vpack.i.bf16 %v528_v5, %v526_v3  ;;  %v525_v21 = vld [vmem:[%s6609_s24 + $0x18] sm:$0x1]  ;;  %v727_v24 = vrot.slane %v530_v55, 1  ;;  %v718_v25 = vrot.slane %v524_v59, 1 }
  0x24   : > { %5568 = vrot.lane.b32.xlu0 %v5567_v46, %s6484_s26  ;;  %v5577_v57 = vpack.i.bf16 %v6715_v54, %v6712_v53  ;;  %v538_v15 = vld [vmem:[%s6614_s29] sm:$0xff]  ;;  %v539_v16 = vld [vmem:[%s6614_s29 + $0x10] sm:$0xff]  ;;  %v5612_v29 = vpack.i.bf16 %v543_v12, %v542_v7  ;;  %v715_v31 = vrot.slane %v522_v58, 1  ;;  %v728_v38 = vrot.slane %v531_v17, 1  ;;  %v535_v44 = vld [vmem:[%s6609_s24 + $0x68] sm:$0x1] }
  0x25   : > { %v544_v30 = vld [vmem:[%s6614_s29 + $0x60] sm:$0xff]  ;;  %v5607_v34 = vpack.i.bf16 %v539_v16, %v538_v15  ;;  %v545_v35 = vld [vmem:[%s6614_s29 + $0x70] sm:$0xff]  ;;  %v731_v39 = vrot.slane %v533_v18, 1  ;;  %v716_v41 = vrot.slane %v523_v19, 1  ;;  %v719_v42 = vrot.slane %v525_v21, 1 }
  0x26   : > { %v540_v36 = vld [vmem:[%s6614_s29 + $0x20] sm:$0xff]  ;;  %v541_v37 = vld [vmem:[%s6614_s29 + $0x30] sm:$0xff]  ;;  %v537_v45 = vld [vmem:[%s6609_s24 + $0x78] sm:$0x1]  ;;  %v736_v46 = vrot.slane %v536_v63, 1  ;;  %v733_v48 = vrot.slane %v534_v62, 1  ;;  %v5622_v56 = vpack.i.bf16 %v545_v35, %v544_v30  ;;  %v729_v58 = vsel %vm594_vm0, %v727_v24, %v728_v38 }
  0x27   : > { %5583 = vrot.lane.b32.xlu1 %v5582_v52, %s6484_s26  ;;  %v527_v49 = vld [vmem:[%s6609_s24 + $0x28] sm:$0x1]  ;;  %v529_v51 = vld [vmem:[%s6609_s24 + $0x38] sm:$0x1]  ;;  %v724_v52 = vrot.slane %v528_v5, 1  ;;  %v721_v55 = vrot.slane %v526_v3, 1  ;;  %v732_v59 = vsel %vm594_vm0, %v730_v23, %v731_v39  ;;  %v717_v7 = vsel %vm594_vm0, %v715_v31, %v716_v41 }
  0x28   : > { %5578 = vrot.lane.b32.xlu0 %v5577_v57, %s6484_s26  ;;  %v5617_v57 = vpack.i.bf16 %v541_v37, %v540_v36  ;;  %v720_v63 = vsel %vm594_vm0, %v718_v25, %v719_v42  ;;  %v722_v62 = vrot.slane %v527_v49, 1  ;;  %v5632_v5 = vpack.i.bf16 %v732_v59, %v729_v58  ;;  %s6487_s24 = smov 15   ;;  %v511_v23 = vld [vmem:[%s6599_s17 + $0x80] sm:$0xff]  ;;  %v512_v37 = vld [vmem:[%s6599_s17 + $0x88] sm:$0x1]  ;;  %s6491_s17 = smov 24  }
  0x29   : > { %v5627_v3 = vpack.i.bf16 %v720_v63, %v717_v7  ;;  %v5652_v19 = vpack.i.bf16 %v6668_v26, %v6650_v13  ;;  %v5647_v21 = vpack.i.bf16 %v6682_v33, %v6663_v22  ;;  %v5662_v24 = vpack.i.bf16 %v511_v23, %v6679_v32  ;;  %v5707_v31 = vld [vmem:[%s8602_s4] sm:$0xff]  }
  0x2a   : > { %v723_v15 = vsel %vm594_vm0, %v721_v55, %v722_v62  ;;  %v5657_v25 = vpack.i.bf16 %v6643_v10, %v6697_v43  ;;  %v490_v30 = vlaneseq  ;;  %v521_v35 = vld [vmem:[%s6604_s20 + $0x80] sm:$0xff]  ;;  %v6489_v36 = vmov 0.0   ;;  %5439 = vmatprep.subr.bf16.mxu0 %v5707_v31  ;;  %5451 = vmatprep.subr.bf16.mxu1 %v5707_v31 }
  0x2b   : > { %5593 = vrot.lane.b32.xlu1 %v5592_v60, %s6485_s27  ;;  %v734_v60 = vrot.slane %v535_v44, 1  ;;  %489 = vst [vmem:[#allocation3] sm:$0xff] %v6489_v36  ;;  %5440 = vmatpush3.bf16.msra.mxu0 %v5707_v31  ;;  %v815_v38 = vrot.slane %v512_v37, 1  ;;  %v5692_v39 = vpack.i.bf16 %v6703_v47, %v6674_v28 }
  0x2c   : > { %5588 = vrot.lane.b32.xlu0 %v5587_v61, %s6485_s27  ;;  %v737_v61 = vrot.slane %v537_v45, 1  ;;  %vm492_vm1 = vcmp.lt.s32.totalorder %v490_v30, 256  ;;  %5453 = vmatpush3.bf16.msra.mxu1 %v5707_v31 }
  0x2d   : > { %v735_v12 = vsel %vm594_vm0, %v733_v48, %v734_v60  ;;  %494 = vst.msk [vmem:[#allocation3 + $0x8] sm:$0x3] %vm492_vm1, %v6489_v36 }
  0x2f   : > { %5603 = vrot.lane.b32.xlu1 %v5602_v11, %s6485_s27  ;;  %v725_v11 = vrot.slane %v529_v51, 1 }
  0x30   : > { %5598 = vrot.lane.b32.xlu0 %v5597_v14, %s6485_s27  ;;  %v738_v14 = vsel %vm594_vm0, %v736_v46, %v737_v61 }
  0x31   : > { %v726_v16 = vsel %vm594_vm0, %v724_v52, %v725_v11  ;;  %v5642_v17 = vpack.i.bf16 %v738_v14, %v735_v12 }
  0x32   : > { %v5637_v18 = vpack.i.bf16 %v726_v16, %v723_v15 }
  0x33   : > { %5613 = vrot.lane.b32.xlu1 %v5612_v29, %s6486_s28  ;;  %v5672_v29 = vpack.i.bf16 %v6633_v6, %v6640_v9  ;;  %v5682_v6 = vpack.i.bf16 %v521_v35, %v6637_v8  ;;  %v5708_v9 = vld [vmem:[%s8602_s4 + $0x8] sm:$0xff]   ;;  %v5687_v8 = vpack.i.bf16 %v6712_v53, %v6693_v40 }
  0x34   : > { %5608 = vrot.lane.b32.xlu0 %v5607_v34, %s6486_s28  ;;  %v5667_v34 = vpack.i.bf16 %v6624_v2, %v6629_v4  ;;  %v5677_v2 = vpack.i.bf16 %v6621_v1, %v6618_v0  ;;  %v814_v4 = vrot.slane %v511_v23, 1  ;;  %5441 = vmatprep.subr.bf16.mxu0 %v5708_v9  ;;  %v5697_v1 = vpack.i.bf16 %v6671_v27, %v6715_v54 }
  0x35   : > { %5452 = vmatprep.subr.bf16.mxu1 %v5708_v9  ;;  %5442 = vmatpush3.bf16.msra.mxu0 %v5708_v9 }
  0x36   : > { %5454 = vmatpush3.bf16.msra.mxu1 %v5708_v9  ;;  %v816_v41 = vsel %vm594_vm0, %v814_v4, %v815_v38 }
  0x37   : > { %5623 = vrot.lane.b32.xlu1 %v5622_v56, %s6486_s28  ;;  %v5702_v0 = vpack.i.bf16 %v816_v41, %v6707_v50 }
  0x38   : > { %5618 = vrot.lane.b32.xlu0 %v5617_v57, %s6486_s28 }
  0x3b   : > { %5633 = vrot.lane.b32.xlu1 %v5632_v5, %s6487_s24 }
  0x3c   : > { %5628 = vrot.lane.b32.xlu0 %v5627_v3, %s6487_s24 }
  0x3f   : > { %5643 = vrot.lane.b32.xlu1 %v5642_v17, %s6487_s24 }
  0x40   : > { %5638 = vrot.lane.b32.xlu0 %v5637_v18, %s6487_s24 }
  0x43   : > { %5653 = vrot.lane.b32.xlu1 %v5652_v19, %s6488_s30 }
  0x44   : > { %5648 = vrot.lane.b32.xlu0 %v5647_v21, %s6488_s30 }
  0x47   : > { %5663 = vrot.lane.b32.xlu1 %v5662_v24, %s6488_s30 }
  0x48   : > { %5658 = vrot.lane.b32.xlu0 %v5657_v25, %s6488_s30 }
  0x4b   : > { %5673 = vrot.lane.b32.xlu1 %v5672_v29, %s6490_s16 }
  0x4c   : > { %5668 = vrot.lane.b32.xlu0 %v5667_v34, %s6490_s16 }
  0x4f   : > { %5683 = vrot.lane.b32.xlu1 %v5682_v6, %s6490_s16 }
  0x50   : > { %5678 = vrot.lane.b32.xlu0 %v5677_v2, %s6490_s16 }
  0x53   : > { %5693 = vrot.lane.b32.xlu1 %v5692_v39, %s6491_s17 }
  0x54   : > { %5688 = vrot.lane.b32.xlu0 %v5687_v8, %s6491_s17 }
  0x57   : > { %5703 = vrot.lane.b32.xlu1 %v5702_v0, %s6491_s17 }
  0x58   : > { %5698 = vrot.lane.b32.xlu0 %v5697_v1, %s6491_s17 }
  0x8d   : > { %v5559_v42 = vpop.permute.xlu1 %5558 }
  0x8e   : > { %v5549_v44 = vpop.permute.xlu0 %5548  ;;  %v5561_v27 = vunpack.i.h.bf16 %v5559_v42  ;;  %v5560_v54 = vunpack.i.l.bf16 %v5559_v42 }
  0x8f   : > { %v5551_v57 = vunpack.i.h.bf16 %v5549_v44  ;;  %v5550_v58 = vunpack.i.l.bf16 %v5549_v44 }
  0x90   : > { %v844_v7 = vsel %vm841_vm2, %v6682_v33, %v5560_v54  ;;  %v845_v63 = vsel %vm841_vm2, %v6697_v43, %v5561_v27 }
  0x91   : > { %v5564_v45 = vpop.permute.xlu1 %5563  ;;  %v842_v11 = vsel %vm841_vm2, %v6659_v20, %v5550_v58  ;;  %v843_v5 = vsel %vm841_vm2, %v6663_v22, %v5551_v57 }
  0x92   : > { %v5554_v28 = vpop.permute.xlu0 %5553  ;;  %v5566_v60 = vunpack.i.h.bf16 %v5564_v45  ;;  %v5565_v61 = vunpack.i.l.bf16 %v5564_v45 }
  0x93   : > { %v5556_v3 = vunpack.i.h.bf16 %v5554_v28  ;;  %v5555_v12 = vunpack.i.l.bf16 %v5554_v28 }
  0x94   : > { %v848_v43 = vsel %vm841_vm2, %v6668_v26, %v5565_v61  ;;  %v849_v18 = vsel %vm841_vm2, %v6679_v32, %v5566_v60 }
  0x95   : > { %v5574_v47 = vpop.permute.xlu1 %5573  ;;  %v846_v29 = vsel %vm841_vm2, %v6643_v10, %v5555_v12  ;;  %v847_v30 = vsel %vm841_vm2, %v6650_v13, %v5556_v3 }
  0x96   : > { %v5569_v46 = vpop.permute.xlu0 %5568  ;;  %v5576_v15 = vunpack.i.h.bf16 %v5574_v47  ;;  %v5575_v16 = vunpack.i.l.bf16 %v5574_v47 }
  0x97   : > { %v5571_v33 = vunpack.i.h.bf16 %v5569_v46  ;;  %v5570_v17 = vunpack.i.l.bf16 %v5569_v46 }
  0x98   : > { %v856_v32 = vsel %vm850_vm3, %v847_v30, %v5576_v15  ;;  %v855_v35 = vsel %vm850_vm3, %v846_v29, %v5575_v16 }
  0x99   : > { %v5584_v48 = vpop.permute.xlu1 %5583  ;;  %v852_v36 = vsel %vm850_vm3, %v843_v5, %v5571_v33  ;;  %v851_v37 = vsel %vm850_vm3, %v842_v11, %v5570_v17 }
  0x9a   : > { %v5579_v40 = vpop.permute.xlu0 %5578  ;;  %v5586_v19 = vunpack.i.h.bf16 %v5584_v48  ;;  %v5585_v21 = vunpack.i.l.bf16 %v5584_v48 }
  0x9b   : > { %v5581_v20 = vunpack.i.h.bf16 %v5579_v40  ;;  %v5580_v23 = vunpack.i.l.bf16 %v5579_v40 }
  0x9c   : > { %v858_v6 = vsel %vm850_vm3, %v849_v18, %v5586_v19  ;;  %v857_v10 = vsel %vm850_vm3, %v848_v43, %v5585_v21 }
  0x9d   : > { %v5594_v53 = vpop.permute.xlu1 %5593  ;;  %v854_v2 = vsel %vm850_vm3, %v845_v63, %v5581_v20  ;;  %v853_v4 = vsel %vm850_vm3, %v844_v7, %v5580_v23 }
  0x9e   : > { %v5589_v49 = vpop.permute.xlu0 %5588  ;;  %v5596_v22 = vunpack.i.h.bf16 %v5594_v53  ;;  %v5595_v24 = vunpack.i.l.bf16 %v5594_v53 }
  0x9f   : > { %v5591_v31 = vunpack.i.h.bf16 %v5589_v49  ;;  %v5590_v26 = vunpack.i.l.bf16 %v5589_v49 }
  0xa0   : > { %v864_v38 = vsel %vm859_vm4, %v855_v35, %v5595_v24  ;;  %v865_v39 = vsel %vm859_vm4, %v856_v32, %v5596_v22 }
  0xa1   : > { %v6782_v51 = vpop.permute.xlu1 %5603  ;;  %v860_v41 = vsel %vm859_vm4, %v851_v37, %v5590_v26  ;;  %v861_v0 = vsel %vm859_vm4, %v852_v36, %v5591_v31 }
  0xa2   : > { %v6784_v52 = vpop.permute.xlu0 %5598  ;;  %v5606_v9 = vunpack.i.h.bf16 %v6782_v51  ;;  %v5605_v13 = vunpack.i.l.bf16 %v6782_v51 }
  0xa3   : > { %v5601_v1 = vunpack.i.h.bf16 %v6784_v52  ;;  %v5600_v42 = vunpack.i.l.bf16 %v6784_v52 }
  0xa4   : > { %v866_v48 = vsel %vm859_vm4, %v857_v10, %v5605_v13  ;;  %v867_v40 = vsel %vm859_vm4, %v858_v6, %v5606_v9 }
  0xa5   : > { %v6786_v50 = vpop.permute.xlu1 %5613  ;;  %v863_v57 = vsel %vm859_vm4, %v854_v2, %v5601_v1 }
  0xa6   : > { %v6788_v55 = vpop.permute.xlu0 %5608  ;;  %v5616_v45 = vunpack.i.h.bf16 %v6786_v50  ;;  %v5615_v28 = vunpack.i.l.bf16 %v6786_v50 }
  0xa7   : > { %v5611_v47 = vunpack.i.h.bf16 %v6788_v55  ;;  %v5610_v46 = vunpack.i.l.bf16 %v6788_v55  ;;  %v862_v55 = vsel %vm859_vm4, %v853_v4, %v5600_v42 }
  0xa8   : > { %v874_v7 = vsel %vm868_vm5, %v865_v39, %v5616_v45 }
  0xa9   : > { %v6790_v56 = vpop.permute.xlu1 %5623  ;;  %v870_v63 = vsel %vm868_vm5, %v861_v0, %v5611_v47 }
  0xaa   : > { %v6792_v59 = vpop.permute.xlu0 %5618  ;;  %v5626_v53 = vunpack.i.h.bf16 %v6790_v56  ;;  %v5625_v49 = vunpack.i.l.bf16 %v6790_v56  ;;  %v873_v56 = vsel %vm868_vm5, %v864_v38, %v5615_v28 }
  0xab   : > { %v5621_v51 = vunpack.i.h.bf16 %v6792_v59  ;;  %v5620_v52 = vunpack.i.l.bf16 %v6792_v59  ;;  %v869_v59 = vsel %vm868_vm5, %v860_v41, %v5610_v46 }
  0xac   : > { %v876_v11 = vsel %vm868_vm5, %v867_v40, %v5626_v53 }
  0xad   : > { %v6798_v62 = vpop.permute.xlu1 %5633  ;;  %v871_v12 = vsel %vm868_vm5, %v862_v55, %v5620_v52 }
  0xae   : > { %v6804_v14 = vpop.permute.xlu0 %5628  ;;  %v5636_v27 = vunpack.i.h.bf16 %v6798_v62  ;;  %v5635_v50 = vunpack.i.l.bf16 %v6798_v62  ;;  %v875_v62 = vsel %vm868_vm5, %v866_v48, %v5625_v49 }
  0xaf   : > { %v5631_v58 = vunpack.i.h.bf16 %v6804_v14  ;;  %v5630_v60 = vunpack.i.l.bf16 %v6804_v14  ;;  %v872_v14 = vsel %vm868_vm5, %v863_v57, %v5621_v51 }
  0xb0   : > { %v882_v15 = vsel %vm877_vm6, %v873_v56, %v5635_v50  ;;  %v883_v16 = vsel %vm877_vm6, %v874_v7, %v5636_v27 }
  0xb1   : > { %v6810_v25 = vpop.permute.xlu1 %5643  ;;  %v878_v17 = vsel %vm877_vm6, %v869_v59, %v5630_v60  ;;  %v879_v43 = vsel %vm877_vm6, %v870_v63, %v5631_v58 }
  0xb2   : > { %v6816_v34 = vpop.permute.xlu0 %5638  ;;  %v5646_v5 = vunpack.i.h.bf16 %v6810_v25  ;;  %v5645_v3 = vunpack.i.l.bf16 %v6810_v25 }
  0xb3   : > { %v5641_v18 = vunpack.i.h.bf16 %v6816_v34  ;;  %v5640_v19 = vunpack.i.l.bf16 %v6816_v34 }
  0xb4   : > { %v884_v25 = vsel %vm877_vm6, %v875_v62, %v5645_v3  ;;  %v885_v29 = vsel %vm877_vm6, %v876_v11, %v5646_v5 }
  0xb5   : > { %v6830_v8 = vpop.permute.xlu1 %5653  ;;  %v880_v37 = vsel %vm877_vm6, %v871_v12, %v5640_v19  ;;  %v881_v6 = vsel %vm877_vm6, %v872_v14, %v5641_v18 }
  0xb6   : > { %v6836_v44 = vpop.permute.xlu0 %5648  ;;  %v5656_v20 = vunpack.i.h.bf16 %v6830_v8  ;;  %v5655_v23 = vunpack.i.l.bf16 %v6830_v8 }
  0xb7   : > { %v5651_v22 = vunpack.i.h.bf16 %v6836_v44  ;;  %v5650_v24 = vunpack.i.l.bf16 %v6836_v44 }
  0xb8   : > { %v891_v2 = vsel %vm886_vm7, %v882_v15, %v5655_v23  ;;  %v892_v4 = vsel %vm886_vm7, %v883_v16, %v5656_v20 }
  0xb9   : > { %v5664_v54 = vpop.permute.xlu1 %5663  ;;  %v887_v38 = vsel %vm886_vm7, %v878_v17, %v5650_v24  ;;  %v888_v39 = vsel %vm886_vm7, %v879_v43, %v5651_v22 }
  0xba   : > { %v5659_v61 = vpop.permute.xlu0 %5658  ;;  %v5666_v30 = vunpack.i.h.bf16 %v5664_v54  ;;  %v5665_v31 = vunpack.i.l.bf16 %v5664_v54 }
  0xbb   : > { %v5661_v26 = vunpack.i.h.bf16 %v5659_v61  ;;  %v5660_v32 = vunpack.i.l.bf16 %v5659_v61 }
  0xbc   : > { %v893_v8 = vsel %vm886_vm7, %v884_v25, %v5665_v31  ;;  %v894_v41 = vsel %vm886_vm7, %v885_v29, %v5666_v30  ;;  %v4947_v30 = vld [vmem:[%s8603_s5] ss:$0 sm:$0xff] }
  0xbd   : > { %v5674_v33 = vpop.permute.xlu1 %5673  ;;  %v889_v42 = vsel %vm886_vm7, %v880_v37, %v5660_v32  ;;  %v890_v44 = vsel %vm886_vm7, %v881_v6, %v5661_v26 }
  0xbe   : > { %v5669_v21 = vpop.permute.xlu0 %5668  ;;  %v5676_v35 = vunpack.i.h.bf16 %v5674_v33  ;;  %v5675_v34 = vunpack.i.l.bf16 %v5674_v33 }
  0xbf   : > { %v5671_v10 = vunpack.i.h.bf16 %v5669_v21  ;;  %v5670_v9 = vunpack.i.l.bf16 %v5669_v21 }
  0xc0   : > { %v900_v28 = vsel %vm895_vm8, %v891_v2, %v5675_v34  ;;  %v901_v47 = vsel %vm895_vm8, %v892_v4, %v5676_v35 }
  0xc1   : > { %v5684_v36 = vpop.permute.xlu1 %5683  ;;  %v896_v53 = vsel %vm895_vm8, %v887_v38, %v5670_v9  ;;  %v897_v49 = vsel %vm895_vm8, %v888_v39, %v5671_v10 }
  0xc2   : > { %v5679_v13 = vpop.permute.xlu0 %5678  ;;  %v5686_v0 = vunpack.i.h.bf16 %v5684_v36  ;;  %v5685_v1 = vunpack.i.l.bf16 %v5684_v36 }
  0xc3   : > { %v5681_v51 = vunpack.i.h.bf16 %v5679_v13  ;;  %v5680_v52 = vunpack.i.l.bf16 %v5679_v13 }
  0xc4   : > { %v902_v54 = vsel %vm895_vm8, %v893_v8, %v5685_v1  ;;  %v903_v55 = vsel %vm895_vm8, %v894_v41, %v5686_v0 }
  0xc5   : > { %v5694_v45 = vpop.permute.xlu1 %5693  ;;  %v898_v33 = vsel %vm895_vm8, %v889_v42, %v5680_v52  ;;  %v899_v17 = vsel %vm895_vm8, %v890_v44, %v5681_v51 }
  0xc6   : > { %v5696_v46 = vunpack.i.h.bf16 %v5694_v45  ;;  %v5695_v48 = vunpack.i.l.bf16 %v5694_v45  ;;  %v5689_v40 = vpop.permute.xlu0 %5688 }
  0xc7   : > { %v5691_v27 = vunpack.i.h.bf16 %v5689_v40  ;;  %v5690_v50 = vunpack.i.l.bf16 %v5689_v40 }
  0xc8   : > { %v909_v57 = vsel %vm904_vm9, %v900_v28, %v5695_v48  ;;  %v910_v58 = vsel %vm904_vm9, %v901_v47, %v5696_v46 }
  0xc9   : > { %v5704_v60 = vpop.permute.xlu1 %5703  ;;  %v905_v61 = vsel %vm904_vm9, %v896_v53, %v5690_v50  ;;  %v906_v56 = vsel %vm904_vm9, %v897_v49, %v5691_v27  ;;  %v918_v7 = vsel %vm913_vm10, %v909_v57, 0.0  ;;  %v919_v59 = vsel %vm913_vm10, %v910_v58, 0.0 }
  0xca   : > { %v5706_v63 = vunpack.i.h.bf16 %v5704_v60  ;;  %v5705_v62 = vunpack.i.l.bf16 %v5704_v60  ;;  %v5699_v11 = vpop.permute.xlu0 %5698  ;;  %v914_v5 = vsel %vm913_vm10, %v905_v61, 0.0  ;;  %v915_v3 = vsel %vm913_vm10, %v906_v56, 0.0 }
  0xcb   : > { %v5701_v12 = vunpack.i.h.bf16 %v5699_v11  ;;  %v5700_v14 = vunpack.i.l.bf16 %v5699_v11  ;;  %v922_v15 = vpack.c.bf16 %v915_v3, %v914_v5  ;;  %v924_v16 = vpack.c.bf16 %v919_v59, %v918_v7 }
  0xcc   : > { %v911_v43 = vsel %vm904_vm9, %v902_v54, %v5705_v62  ;;  %v912_v18 = vsel %vm904_vm9, %v903_v55, %v5706_v63 }
  0xcd   : > { %v920_v19 = vsel %vm913_vm10, %v911_v43, 0.0  ;;  %v921_v21 = vsel %vm913_vm10, %v912_v18, 0.0  ;;  %v907_v20 = vsel %vm904_vm9, %v898_v33, %v5700_v14  ;;  %v908_v23 = vsel %vm904_vm9, %v899_v17, %v5701_v12  ;;  %5443 = vmatprep.mubr.msk.bf16.mxu0 %vm949_vm11, %v922_v15  ;;  %5447 = vmatprep.mubr.msk.bf16.mxu1 %vm949_vm11, %v924_v16 }
  0xce   : > { %v925_v22 = vpack.c.bf16 %v921_v21, %v920_v19  ;;  %v916_v24 = vsel %vm913_vm10, %v907_v20, 0.0  ;;  %v917_v25 = vsel %vm913_vm10, %v908_v23, 0.0 }
  0xcf   : > { %v923_v29 = vpack.c.bf16 %v917_v25, %v916_v24 }
  0xd0   : > { %5448 = vmatmul.mubr.msk.bf16.vlgmr.msra.gmra.mrb[0].mxu1 %vm949_vm11, %v925_v22 }
  0xd1   : > { %5444 = vmatmul.mubr.msk.bf16.vlgmr.msra.gmra.mrb[0].mxu0 %vm949_vm11, %v923_v29 }
 0x1a3   : > { %v5449_v31 = vpop.f32.mrb[0].mxu1 }
 0x1a4   : > { %v5445_v26 = vpop.f32.mrb[0].mxu0  ;;  %v6917_v32 = vadd.f32 %v5449_v31, %v4947_v30  ;;  %v1012_v35 = vpop.f32.mrb[1].mxu1 }
 0x1a5   : > { %v1005_v34 = vadd.f32 %v5445_v26, %v4947_v30  ;;  %v996_v36 = vpop.f32.mrb[1].mxu0  ;;  %v6919_v37 = vadd.f32 %v4947_v30, %v1012_v35  ;;  %v5450_v6 = vpop.f32.mrb[2].mxu1 }
 0x1a6   : > { %v4960_v10 = vmul.f32 -1.442695, %v6917_v32  ;;  %v997_v9 = vadd.f32 %v4947_v30, %v996_v36  ;;  %v5446_v13 = vpop.f32.mrb[2].mxu0  ;;  %v1024_v2 = vadd.f32 %v5450_v6, %v4947_v30  ;;  %v1015_v4 = vpop.f32.mrb[3].mxu1 }
 0x1a7   : > { %v4956_v38 = vmul.f32 -1.442695, %v1005_v34  ;;  %v4958_v39 = vmul.f32 -1.442695, %v6919_v37  ;;  %v1008_v8 = vadd.f32 %v5446_v13, %v4947_v30  ;;  %v999_v41 = vpop.f32.mrb[3].mxu0  ;;  %v1016_v0 = vadd.f32 %v4947_v30, %v1015_v4 }
 0x1a8   : > { %5709 = vpow2.f32 %v4960_v10  ;;  %v4954_v1 = vmul.f32 -1.442695, %v997_v9  ;;  %v1000_v42 = vadd.f32 %v4947_v30, %v999_v41  ;;  %v4961_v45 = vmul.f32 -1.442695, %v1024_v2 }
 0x1a9   : > { %5711 = vpow2.f32 %v4956_v38  ;;  %v4957_v44 = vmul.f32 -1.442695, %v1008_v8  ;;  %v4959_v47 = vmul.f32 -1.442695, %v1016_v0 }
 0x1aa   : > { %5713 = vpow2.f32 %v4954_v1  ;;  %v4955_v28 = vmul.f32 -1.442695, %v1000_v42 }
 0x1ab   : > { %5715 = vpow2.f32 %v4958_v39 }
 0x1ac   : > { %5717 = vpow2.f32 %v4957_v44 }
 0x1ad   : > { %5719 = vpow2.f32 %v4961_v45 }
 0x1ae   : > { %5721 = vpow2.f32 %v4955_v28 }
 0x1af   : > { %5723 = vpow2.f32 %v4959_v47 }
 0x1b2   : > { %v5710_v46 = vpop.eup %5709 }
 0x1b3   : > { %v5712_v48 = vpop.eup %5711  ;;  %v1057_v40 = vadd.f32 1.0, %v5710_v46 }
 0x1b4   : > { %v5714_v53 = vpop.eup %5713  ;;  %v1053_v49 = vadd.f32 1.0, %v5712_v48 }
 0x1b5   : > { %v5716_v51 = vpop.eup %5715  ;;  %5725 = vrcp.f32 %v1057_v40  ;;  %v1051_v52 = vadd.f32 1.0, %v5714_v53 }
 0x1b6   : > { %v5718_v27 = vpop.eup %5717  ;;  %5727 = vrcp.f32 %v1053_v49  ;;  %v1055_v50 = vadd.f32 1.0, %v5716_v51 }
 0x1b7   : > { %v5720_v54 = vpop.eup %5719  ;;  %5729 = vrcp.f32 %v1051_v52  ;;  %v1054_v55 = vadd.f32 1.0, %v5718_v27 }
 0x1b8   : > { %v5722_v57 = vpop.eup %5721  ;;  %5731 = vrcp.f32 %v1055_v50  ;;  %v1058_v58 = vadd.f32 1.0, %v5720_v54 }
 0x1b9   : > { %v5724_v60 = vpop.eup %5723  ;;  %5733 = vrcp.f32 %v1054_v55  ;;  %v1052_v61 = vadd.f32 1.0, %v5722_v57 }
 0x1ba   : > { %5735 = vrcp.f32 %v1058_v58  ;;  %v1056_v56 = vadd.f32 1.0, %v5724_v60 }
 0x1bb   : > { %5737 = vrcp.f32 %v1052_v61 }
 0x1bc   : > { %5739 = vrcp.f32 %v1056_v56 }
 0x1bf   : > { %v5726_v7 = vpop.eup %5725 }
 0x1c0   : > { %v5728_v59 = vpop.eup %5727  ;;  %v1081_v15 = vmul.f32 %v5726_v7, %v6917_v32 }
 0x1c1   : > { %v5730_v63 = vpop.eup %5729  ;;  %v1077_v3 = vmul.f32 %v5728_v59, %v1005_v34 }
 0x1c2   : > { %v5732_v62 = vpop.eup %5731  ;;  %v1075_v17 = vmul.f32 %v5730_v63, %v997_v9 }
 0x1c3   : > { %v5734_v11 = vpop.eup %5733  ;;  %v1079_v19 = vmul.f32 %v5732_v62, %v6919_v37 }
 0x1c4   : > { %v5736_v5 = vpop.eup %5735  ;;  %v1078_v12 = vmul.f32 %v5734_v11, %v1008_v8 }
 0x1c5   : > { %v5738_v14 = vpop.eup %5737  ;;  %v1082_v16 = vmul.f32 %v5736_v5, %v1024_v2 }
 0x1c6   : > { %v5740_v33 = vpop.eup %5739  ;;  %v1084_v43 = vpack.c.bf16 %v1078_v12, %v1077_v3  ;;  %v1076_v18 = vmul.f32 %v5738_v14, %v1000_v42 }
 0x1c7   : > { %v1086_v21 = vpack.c.bf16 %v1082_v16, %v1081_v15  ;;  %v1080_v20 = vmul.f32 %v5740_v33, %v1016_v0 }
 0x1c8   : > { %1088 = vst.msk [vmem:[#allocation2 + $0x8] sm:$0xff] %vm949_vm11, %v1084_v43  ;;  %v1083_v23 = vpack.c.bf16 %v1076_v18, %v1075_v17 }
 0x1c9   : > { %1090 = vst.msk [vmem:[#allocation2 + $0x18] sm:$0xff] %vm949_vm11, %v1086_v21  ;;  %v1085_v22 = vpack.c.bf16 %v1080_v20, %v1079_v19 }
 0x1ca   : > { %1087 = vst.msk [vmem:[#allocation2] sm:$0xff] %vm949_vm11, %v1083_v23 }
 0x1cb   : > { %1089 = vst.msk [vmem:[#allocation2 + $0x10] sm:$0xff] %vm949_vm11, %v1085_v22 }
 0x1cc PF: > { %v5741_v24 = vld [vmem:[%s8604_s6 + $0x4] ss:$40 sps:$4 sm:$0xff]   ;;  %s4962_s26 = sshll.u32 %s6465_s21, 5  ;;  %v5743_v25 = vld [vmem:[%s8604_s6] ss:$40 sps:$4 sm:$0xff]   ;;  %v6492_v29 = vmov 0   ;;  %v8617_v42 = vlaneseq }
 0x1cd   : > { %1311 = vmatprep.mubr.bf16.mxu0 %v6492_v29  ;;  %1321 = vmatprep.mubr.bf16.mxu1 %v6492_v29  ;;  %s1092_s24 = sshra.s32 %s4962_s26, 4  ;;  %v5744_v30 = vld [vmem:[%s8604_s6 + $0x54] ss:$40 sps:$4 sm:$0xff]   ;;  %v5746_v31 = vld [vmem:[%s8604_s6 + $0x50] ss:$40 sps:$4 sm:$0xff]   ;;  %vm1272_vm12 = vcmask 261120  }
 0x1ce   : > { %1279 = vmatprep.subr.bf16.mxu0 %v5741_v24  ;;  %5455 = vmatprep.subr.bf16.mxu1 %v5741_v24  ;;  %s4963_s15 = sshll.u32 %s1092_s24, 3  ;;  %v5749_v26 = vld [vmem:[%s8604_s6 + $0xc] ss:$40 sps:$4 sm:$0xff]   ;;  %v5747_v35 = vld [vmem:[%s8604_s6 + $0x8] ss:$40 sps:$4 sm:$0xff]   ;;  %v7013_v44 = vshrl.u32 %v8617_v42, 7 }
 0x1cf   : > { %1280 = vmatpush1.bf16.msra.mxu0 %v5743_v25  ;;  %5457 = vmatpush1.bf16.msra.mxu1 %v5743_v25  ;;  %s1095_s20 = scalar_lea.vmem [#allocation2], %s4963_s15  ;;  %v5752_v34 = vld [vmem:[%s8604_s6 + $0x14] ss:$40 sps:$4 sm:$0xff]   ;;  %v5750_v37 = vld [vmem:[%s8604_s6 + $0x10] ss:$40 sps:$4 sm:$0xff]   ;;  %v7021_v28 = vld [vmem:[%s8605_s7] sm:$0xff] }
 0x1d0   : > { %1281 = vmatprep.subr.bf16.mxu0 %v5744_v30  ;;  %5456 = vmatprep.subr.bf16.mxu1 %v5744_v30  ;;  %v5755_v6 = vld [vmem:[%s8604_s6 + $0x5c] ss:$40 sps:$4 sm:$0xff]   ;;  %v5753_v9 = vld [vmem:[%s8604_s6 + $0x58] ss:$40 sps:$4 sm:$0xff]   ;;  %v5767_v8 = vld [vmem:[%s8604_s6 + $0x6c] ss:$40 sps:$4 sm:$0xff]  }
 0x1d1   : > { %v5758_v10 = vld [vmem:[%s8604_s6 + $0x64] ss:$40 sps:$4 sm:$0xff]   ;;  %v5756_v13 = vld [vmem:[%s8604_s6 + $0x60] ss:$40 sps:$4 sm:$0xff]   ;;  %v5770_v41 = vld [vmem:[%s8604_s6 + $0x74] ss:$40 sps:$4 sm:$0xff]  }
 0x1d2   : > { %v1096_v32 = vld [vmem:[%s1095_s20] sm:$0xff]  ;;  %v1097_v36 = vld [vmem:[%s1095_s20 + $0x8] sm:$0xff]  ;;  %v5768_v1 = vld [vmem:[%s8604_s6 + $0x70] ss:$40 sps:$4 sm:$0xff]   ;;  %v7016_v45 = vsub.s32 0, %v7013_v44  ;;  %v7024_v47 = vsub.s32 1, %v7013_v44 }
 0x1d3   : > { %1282 = vmatpush1.bf16.msra.mxu0 %v5746_v31  ;;  %5458 = vmatpush1.bf16.msra.mxu1 %v5746_v31  ;;  %v5761_v2 = vld [vmem:[%s8604_s6 + $0x1c] ss:$40 sps:$4 sm:$0xff]   ;;  %v5759_v38 = vld [vmem:[%s8604_s6 + $0x18] ss:$40 sps:$4 sm:$0xff]   ;;  %v5765_v0 = vld [vmem:[%s8604_s6 + $0x68] ss:$40 sps:$4 sm:$0xff]  }
 0x1d4   : > { %1332 = vmatprep.subr.bf16.mxu1 %v5749_v26  ;;  %1385 = vmatprep.subr.bf16.mxu0 %v5752_v34  ;;  %v5764_v4 = vld [vmem:[%s8604_s6 + $0x24] ss:$40 sps:$4 sm:$0xff]   ;;  %v5762_v39 = vld [vmem:[%s8604_s6 + $0x20] ss:$40 sps:$4 sm:$0xff]   ;;  %8630 = vst [vmem:[#allocation8_spill] sm:$0xff] %v7016_v45  ;;  %8631 = vst [vmem:[#allocation9_spill] sm:$0xff] %v7024_v47  ;;  %v1125_v46 = vrot.slane %v7021_v28, %v7016_v45  ;;  %v1129_v48 = vrot.slane %v7021_v28, %v7024_v47 }
 0x1d5   : > { %v7035_v50 = vsub.s32 2, %v7013_v44  ;;  %v8615_v54 = vsub.s32 4, %v7013_v44  ;;  %v7043_v61 = vsub.s32 3, %v7013_v44  ;;  %v8616_v56 = vsub.s32 5, %v7013_v44  ;;  %p5034_p7 = scmp.ne.s32.totalorder %s6465_s21, 1 }
 0x1d6   : > { %4984 = vmatmul.mubr.msk.bf16.vlgmr.msra.gmra.mrb[0].mxu0 %vm1272_vm12, %v1096_v32  ;;  %4985 = vmatmul.mubr.msk.bf16.vlgmr.msra.gmra.mrb[0].mxu1 %vm1272_vm12, %v1097_v36 }
 0x1d7   : > { %1333 = vmatpush1.bf16.msra.mxu1 %v5747_v35  ;;  %1386 = vmatpush1.bf16.msra.mxu0 %v5750_v37  ;;  %8632 = vst [vmem:[#allocation10_spill] sm:$0xff] %v7035_v50  ;;  %8633 = vst [vmem:[#allocation11_spill] sm:$0xff] %v7043_v61  ;;  %v7061_v33 = vrot.slane %v7021_v28, %v7035_v50  ;;  %v7066_v17 = vrot.slane %v7021_v28, %v8615_v54 }
 0x1d8   : > { %1334 = vmatprep.subr.bf16.mxu1 %v5755_v6  ;;  %1387 = vmatprep.subr.bf16.mxu0 %v5758_v10  ;;  %v7071_v18 = vrot.slane %v7021_v28, %v7043_v61  ;;  %v7076_v19 = vrot.slane %v7021_v28, %v8616_v56 }
 0x1d9   : > { %1364 = vmatprep.mubr.bf16.mxu1 %v6492_v29  ;;  %1417 = vmatprep.mubr.bf16.mxu0 %v6492_v29 }
 0x1db   : > { %1335 = vmatpush1.bf16.msra.mxu1 %v5753_v9  ;;  %1388 = vmatpush1.bf16.msra.mxu0 %v5756_v13 }
 0x1dc   : > { %1438 = vmatprep.subr.bf16.mxu1 %v5761_v2  ;;  %1491 = vmatprep.subr.bf16.mxu0 %v5764_v4  ;;  %v1829_v2 = vstv %s4962_s26  ;;  %v1827_v4 = vadd.s32 16, %v7013_v44 }
 0x1de   : > { %4986 = vmatmul.mubr.msk.bf16.vlgmr.msra.gmra.mrb[4].mxu1 %vm1272_vm12, %v1096_v32  ;;  %4988 = vmatmul.mubr.msk.bf16.vlgmr.msra.gmra.mrb[4].mxu0 %vm1272_vm12, %v1096_v32 }
 0x1df   : > { %1439 = vmatpush1.bf16.msra.mxu1 %v5759_v38  ;;  %1492 = vmatpush1.bf16.msra.mxu0 %v5762_v39  ;;  %v1826_v39 = vadd.s32 8, %v7013_v44 }
 0x1e0   : > { %1374 = vmatprep.mubr.bf16.mxu1 %v6492_v29  ;;  %1427 = vmatprep.mubr.bf16.mxu0 %v6492_v29 }
 0x1e1   : > { %1440 = vmatprep.subr.bf16.mxu1 %v5767_v8  ;;  %1493 = vmatprep.subr.bf16.mxu0 %v5770_v41  ;;  %v1828_v41 = vadd.s32 24, %v7013_v44 }
 0x1e3   : > { %1441 = vmatpush1.bf16.msra.mxu1 %v5765_v0  ;;  %1494 = vmatpush1.bf16.msra.mxu0 %v5768_v1  ;;  %v8613_v0 = vsub.s32 6, %v7013_v44 }
 0x1e6   : > { %4987 = vmatmul.mubr.msk.bf16.gmra.mrb[8].mxu1 %vm1272_vm12, %v1097_v36  ;;  %4989 = vmatmul.mubr.msk.bf16.gmra.mrb[8].mxu0 %vm1272_vm12, %v1097_v36 }
 0x1e7   : > { %1470 = vmatprep.mubr.bf16.mxu1 %v6492_v29  ;;  %1523 = vmatprep.mubr.bf16.mxu0 %v6492_v29 }
 0x1ee   : > { %4990 = vmatmul.mubr.msk.bf16.vlgmr.msra.gmra.mrb[12].mxu1 %vm1272_vm12, %v1096_v32  ;;  %4992 = vmatmul.mubr.msk.bf16.vlgmr.msra.gmra.mrb[12].mxu0 %vm1272_vm12, %v1096_v32 }
 0x1ef   : > { %1480 = vmatprep.mubr.bf16.mxu1 %v6492_v29  ;;  %1533 = vmatprep.mubr.bf16.mxu0 %v6492_v29 }
 0x1f6   : > { %4991 = vmatmul.mubr.msk.bf16.gmra.mrb[16].mxu1 %vm1272_vm12, %v1097_v36  ;;  %4993 = vmatmul.mubr.msk.bf16.gmra.mrb[16].mxu0 %vm1272_vm12, %v1097_v36 }
 0x2a9   : > { %v1313_v40 = vpop.f32.mrb[0].mxu0  ;;  %v1323_v53 = vpop.f32.mrb[0].mxu1 }
 0x2aa   : > { %v7030_v49 = vadd.f32 %v1313_v40, %v1125_v46  ;;  %v7032_v51 = vadd.f32 %v1323_v53, %v1125_v46  ;;  %v1315_v52 = vpop.f32.mrb[1].mxu0  ;;  %v1325_v27 = vpop.f32.mrb[1].mxu1 }
 0x2ab   : > { %v7038_v55 = vadd.f32 %v1315_v52, %v1129_v48  ;;  %v7040_v57 = vadd.f32 %v1325_v27, %v1129_v48  ;;  %v1317_v58 = vpop.f32.mrb[2].mxu0  ;;  %v1327_v60 = vpop.f32.mrb[2].mxu1 }
 0x2ac   : > { %v4994_v7 = vmul.f32 -1.442695, %v7030_v49  ;;  %v5014_v59 = vmul.f32 -1.442695, %v7032_v51  ;;  %v7048_v63 = vadd.f32 %v1317_v58, %v1125_v46  ;;  %v7050_v62 = vadd.f32 %v1327_v60, %v1125_v46  ;;  %v1319_v11 = vpop.f32.mrb[3].mxu0  ;;  %v1329_v5 = vpop.f32.mrb[3].mxu1 }
 0x2ad   : > { %v4995_v3 = vmul.f32 -1.442695, %v7038_v55  ;;  %v5015_v12 = vmul.f32 -1.442695, %v7040_v57  ;;  %v7054_v14 = vadd.f32 %v1319_v11, %v1129_v48  ;;  %v7056_v15 = vadd.f32 %v1329_v5, %v1129_v48 }
 0x2ae   : > { %5771 = vpow2.f32 %v4994_v7  ;;  %v5004_v16 = vmul.f32 -1.442695, %v7048_v63  ;;  %v5024_v43 = vmul.f32 -1.442695, %v7050_v62  ;;  %v7107_v48 = vadd.s32 %v1829_v2, %v7013_v44 }
 0x2af   : > { %5773 = vpow2.f32 %v5014_v59  ;;  %v5005_v21 = vmul.f32 -1.442695, %v7054_v14  ;;  %v5025_v20 = vmul.f32 -1.442695, %v7056_v15  ;;  %v7109_v58 = vadd.s32 %v1829_v2, %v1827_v4  ;;  %v1119_v59 = vld [vmem:[%s8605_s7 + $0x8] sm:$0x3] }
 0x2b0   : > { %5775 = vpow2.f32 %v4995_v3  ;;  %v8614_v11 = vsub.s32 7, %v7013_v44  ;;  %vm1834_vm13 = vcmp.lt.s32.totalorder %v7107_v48, 64 }
 0x2b1   : > { %5777 = vpow2.f32 %v5015_v12  ;;  %v1366_v23 = vpop.f32.mrb[4].mxu1  ;;  %v1419_v22 = vpop.f32.mrb[4].mxu0  ;;  %v7115_v12 = vadd.s32 %v1829_v2, %v1826_v39  ;;  %vm1836_vm14 = vcmp.lt.s32.totalorder %v7109_v58, 64 }
 0x2b2   : > { %5779 = vpow2.f32 %v5004_v16  ;;  %v7081_v24 = vadd.f32 %v1366_v23, %v7061_v33  ;;  %v7084_v25 = vadd.f32 %v1419_v22, %v7066_v17  ;;  %v1368_v29 = vpop.f32.mrb[5].mxu1  ;;  %v1421_v30 = vpop.f32.mrb[5].mxu0  ;;  %v7121_v23 = vadd.s32 %v1829_v2, %v1828_v41 }
 0x2b3   : > { %5781 = vpow2.f32 %v5024_v43  ;;  %v7087_v31 = vadd.f32 %v1368_v29, %v7071_v18  ;;  %v7090_v26 = vadd.f32 %v1421_v30, %v7076_v19  ;;  %v1370_v32 = vpop.f32.mrb[6].mxu1  ;;  %v1423_v35 = vpop.f32.mrb[6].mxu0  ;;  %v7128_v29 = vrot.slane %v7021_v28, %v8613_v0 }
 0x2b4   : > { %5783 = vpow2.f32 %v5005_v21  ;;  %v4996_v34 = vmul.f32 -1.442695, %v7081_v24  ;;  %v4998_v36 = vmul.f32 -1.442695, %v7084_v25  ;;  %v7095_v37 = vadd.f32 %v1370_v32, %v7061_v33  ;;  %v1372_v6 = vpop.f32.mrb[7].mxu1  ;;  %v1425_v10 = vpop.f32.mrb[7].mxu0 }
 0x2b5   : > { %5785 = vpow2.f32 %v5025_v20  ;;  %v4997_v9 = vmul.f32 -1.442695, %v7087_v31  ;;  %v4999_v13 = vmul.f32 -1.442695, %v7090_v26  ;;  %v7138_v2 = vadd.f32 %v1423_v35, %v7066_v17 }
 0x2b6   : > { %5787 = vpow2.f32 %v4996_v34  ;;  %v5006_v38 = vmul.f32 -1.442695, %v7095_v37  ;;  %v7143_v4 = vrot.slane %v7021_v28, %v8614_v11  ;;  %v7149_v41 = vrot.slane %v1119_v59, %v7024_v47 }
 0x2b7   : > { %5789 = vpow2.f32 %v4998_v36  ;;  %v7134_v36 = vrot.slane %v1119_v59, %v7016_v45  ;;  %vm1835_vm15 = vcmp.lt.s32.totalorder %v7115_v12, 64  ;;  %vm1837_vm0 = vcmp.lt.s32.totalorder %v7121_v23, 64 }
 0x2b8   : > { %v5772_v8 = vpop.eup %5771  ;;  %5791 = vpow2.f32 %v4997_v9 }
 0x2b9   : > { %v5774_v1 = vpop.eup %5773  ;;  %v1664_v46 = vadd.f32 1.0, %v5772_v8  ;;  %5793 = vpow2.f32 %v4999_v13  ;;  %v1376_v40 = vpop.f32.mrb[8].mxu1  ;;  %v7146_v8 = vadd.f32 %v1372_v6, %v7071_v18 }
 0x2ba   : > { %v1429_v53 = vpop.f32.mrb[8].mxu0  ;;  %v5776_v52 = vpop.eup %5775  ;;  %v1684_v27 = vadd.f32 1.0, %v5774_v1  ;;  %5795 = vpow2.f32 %v5006_v38  ;;  %v7158_v6 = vadd.f32 %v1376_v40, %v7061_v33 }
 0x2bb   : > { %v1378_v60 = vpop.f32.mrb[9].mxu1  ;;  %v1431_v7 = vpop.f32.mrb[9].mxu0  ;;  %5797 = vrcp.f32 %v1664_v46  ;;  %v1665_v3 = vadd.f32 1.0, %v5776_v52  ;;  %v6493_v52 = vmov 1966171168   ;;  %v7161_v59 = vadd.f32 %v1429_v53, %v7066_v17 }
 0x2bc   : > { %v5778_v5 = vpop.eup %5777  ;;  %v7117_v16 = vpop.f32.mrb[10].mxu1  ;;  %5799 = vrcp.f32 %v1684_v27  ;;  %v7151_v35 = vunpack.c.l.s4 %v6493_v52  ;;  %v7154_v27 = vadd.f32 %v1425_v10, %v7076_v19  ;;  %v5008_v10 = vmul.f32 -1.442695, %v7138_v2 }
 0x2bd   : > { %v7119_v43 = vpop.f32.mrb[10].mxu0  ;;  %v5780_v21 = vpop.eup %5779  ;;  %v1685_v20 = vadd.f32 1.0, %v5778_v5  ;;  %5801 = vrcp.f32 %v1665_v3  ;;  %v5018_v54 = vmul.f32 -1.442695, %v7161_v59 }
 0x2be   : > { %v7123_v22 = vpop.f32.mrb[11].mxu1  ;;  %v5782_v30 = vpop.eup %5781  ;;  %v1674_v32 = vadd.f32 1.0, %v5780_v21  ;;  %v7202_v61 = vadd.f32 %v7119_v43, %v7066_v17 }
 0x2bf   : > { %v7131_v34 = vpop.f32.mrb[11].mxu0  ;;  %v5784_v9 = vpop.eup %5783  ;;  %5803 = vrcp.f32 %v1685_v20  ;;  %v1694_v13 = vadd.f32 1.0, %v5782_v30  ;;  %v7168_v30 = vadd.f32 %v1378_v60, %v7071_v18 }
 0x2c0   : > { %v5786_v38 = vpop.eup %5785  ;;  %5805 = vrcp.f32 %v1674_v32  ;;  %v1675_v39 = vadd.f32 1.0, %v5784_v9  ;;  %v7216_v17 = vadd.f32 %v7131_v34, %v7076_v19 }
 0x2c1   : > { %v5788_v1 = vpop.eup %5787  ;;  %5807 = vrcp.f32 %v1694_v13  ;;  %v1695_v46 = vadd.f32 1.0, %v5786_v38  ;;  %v7163_v3 = vpop.f32.mrb[12].mxu1  ;;  %v5007_v13 = vmul.f32 -1.442695, %v7146_v8  ;;  %v7176_v38 = vadd.f32 %v1431_v7, %v7076_v19 }
 0x2c2   : > { %v5790_v28 = vpop.eup %5789  ;;  %5809 = vrcp.f32 %v1675_v39  ;;  %v1666_v5 = vadd.f32 1.0, %v5788_v1  ;;  %v7170_v32 = vpop.f32.mrb[12].mxu0  ;;  %v5016_v7 = vmul.f32 -1.442695, %v7158_v6 }
 0x2c3   : > { %v5792_v21 = vpop.eup %5791  ;;  %5811 = vrcp.f32 %v1695_v46  ;;  %v1668_v20 = vadd.f32 1.0, %v5790_v28  ;;  %v7172_v9 = vpop.f32.mrb[13].mxu1  ;;  %v5009_v28 = vmul.f32 -1.442695, %v7154_v27 }
 0x2c4   : > { %v5794_v40 = vpop.eup %5793  ;;  %5813 = vrcp.f32 %v1666_v5  ;;  %v1667_v53 = vadd.f32 1.0, %v5792_v21  ;;  %v7178_v39 = vpop.f32.mrb[13].mxu0 }
 0x2c5   : > { %v7180_v1 = vpop.f32.mrb[14].mxu1  ;;  %v5796_v46 = vpop.eup %5795  ;;  %5815 = vrcp.f32 %v1668_v20  ;;  %v1669_v52 = vadd.f32 1.0, %v5794_v40  ;;  %v5017_v20 = vmul.f32 -1.442695, %v7168_v30  ;;  %v7196_v40 = vadd.f32 %v7117_v16, %v7061_v33 }
 0x2c6   : > { %v7184_v0 = vpop.f32.mrb[14].mxu0  ;;  %v7186_v5 = vpop.f32.mrb[15].mxu1  ;;  %5817 = vrcp.f32 %v1667_v53  ;;  %v1676_v11 = vadd.f32 1.0, %v5796_v46  ;;  %v5019_v46 = vmul.f32 -1.442695, %v7176_v38  ;;  %v7209_v33 = vadd.f32 %v7123_v22, %v7071_v18 }
 0x2c7   : > { %v5798_v21 = vpop.eup %5797  ;;  %v7190_v56 = vpop.f32.mrb[15].mxu0  ;;  %5819 = vrcp.f32 %v1669_v52  ;;  %v5026_v22 = vmul.f32 -1.442695, %v7196_v40 }
 0x2c8   : > { %v5800_v42 = vpop.eup %5799  ;;  %v1784_v60 = vmul.f32 %v5798_v21, %v7030_v49  ;;  %5821 = vrcp.f32 %v1676_v11 }
 0x2c9   : > { %v5802_v50 = vpop.eup %5801  ;;  %v1804_v53 = vmul.f32 %v5800_v42, %v7032_v51  ;;  %5823 = vpow2.f32 %v5008_v10  ;;  %v7218_v11 = vpop.f32.mrb[16].mxu1 }
 0x2ca   : > { %v5804_v45 = vpop.eup %5803  ;;  %v1846_v49 = vsel %vm1834_vm13, %v1784_v60, 0.0  ;;  %v1785_v52 = vmul.f32 %v5802_v50, %v7038_v55  ;;  %5825 = vpow2.f32 %v5007_v13  ;;  %v7220_v43 = vpop.f32.mrb[16].mxu0  ;;  %v5028_v13 = vmul.f32 -1.442695, %v7202_v61 }
 0x2cb   : > { %v5806_v16 = vpop.eup %5805  ;;  %v1866_v42 = vsel %vm1836_vm14, %v1804_v53, 0.0  ;;  %v1805_v51 = vmul.f32 %v5804_v45, %v7040_v57  ;;  %5827 = vpow2.f32 %v5009_v28  ;;  %v7226_v10 = vpop.f32.mrb[17].mxu1 }
 0x2cc   : > { %v5808_v50 = vpop.eup %5807  ;;  %v1847_v55 = vsel %vm1834_vm13, %v1785_v52, 0.0  ;;  %v1794_v18 = vmul.f32 %v5806_v16, %v7048_v63  ;;  %v7228_v45 = vpop.f32.mrb[17].mxu0  ;;  %5829 = vpow2.f32 %v5016_v7  ;;  %v5027_v52 = vmul.f32 -1.442695, %v7209_v33 }
 0x2cd   : > { %v5810_v57 = vpop.eup %5809  ;;  %v1867_v19 = vsel %vm1836_vm14, %v1805_v51, 0.0  ;;  %v1814_v34 = vmul.f32 %v5808_v50, %v7050_v62  ;;  %v7234_v60 = vpop.f32.mrb[18].mxu1  ;;  %5831 = vpow2.f32 %v5018_v54 }
 0x2ce   : > { %v7236_v21 = vpop.f32.mrb[18].mxu0  ;;  %v5812_v63 = vpop.eup %5811  ;;  %v1856_v28 = vsel %vm1835_vm15, %v1794_v18, 0.0  ;;  %v1795_v53 = vmul.f32 %v5810_v57, %v7054_v14  ;;  %5833 = vpow2.f32 %v5017_v20  ;;  %v5029_v14 = vmul.f32 -1.442695, %v7216_v17 }
 0x2cf   : > { %8634 = vst [vmem:[#allocation12_spill] sm:$0xff] %v7236_v21  ;;  %v7242_v16 = vpop.f32.mrb[19].mxu1  ;;  %v7244_v51 = vpop.f32.mrb[19].mxu0  ;;  %v1888_v7 = vadd.f32 %v1856_v28, %v1846_v49  ;;  %v1876_v50 = vsel %vm1837_vm0, %v1814_v34, 0.0  ;;  %v1815_v47 = vmul.f32 %v5812_v63, %v7056_v15  ;;  %5835 = vpow2.f32 %v5019_v46 }
 0x2d0   : > { %8635 = vst [vmem:[#allocation13_spill] sm:$0xff] %v7242_v16  ;;  %8636 = vst [vmem:[#allocation14_spill] sm:$0xff] %v7244_v51  ;;  %v5814_v62 = vpop.eup %5813  ;;  %v1857_v18 = vsel %vm1835_vm15, %v1795_v53, 0.0  ;;  %5837 = vpow2.f32 %v5026_v22 }
 0x2d1   : > { %v5816_v21 = vpop.eup %5815  ;;  %v1786_v54 = vmul.f32 %v5814_v62, %v7081_v24  ;;  %v1889_v16 = vadd.f32 %v1888_v7, %v1866_v42  ;;  %v1897_v51 = vadd.f32 %v1857_v18, %v1847_v55  ;;  %v1877_v49 = vsel %vm1837_vm0, %v1815_v47, 0.0 }
 0x2d2   : > { %v5818_v57 = vpop.eup %5817  ;;  %v1788_v34 = vmul.f32 %v5816_v21, %v7084_v25  ;;  %v7261_v24 = vadd.f32 %v7163_v3, %v7128_v29  ;;  %5839 = vpow2.f32 %v5028_v13  ;;  %v7275_v3 = vadd.f32 %v7170_v32, %v7134_v36 }
 0x2d3   : > { %v5820_v28 = vpop.eup %5819  ;;  %v1848_v15 = vsel %vm1834_vm13, %v1786_v54, 0.0  ;;  %v1787_v20 = vmul.f32 %v5818_v57, %v7087_v31  ;;  %v1890_v63 = vadd.f32 %v1889_v16, %v1876_v50  ;;  %v1898_v42 = vadd.f32 %v1897_v51, %v1867_v19 }
 0x2d4   : > { %v5822_v46 = vpop.eup %5821  ;;  %v7265_v55 = vsel %vm1834_vm13, %v1788_v34, 0.0  ;;  %v1789_v47 = vmul.f32 %v5820_v28, %v7090_v26  ;;  %5841 = vpow2.f32 %v5027_v52  ;;  %v5000_v34 = vmul.f32 -1.442695, %v7261_v24 }
 0x2d5   : > { %v5824_v25 = vpop.eup %5823  ;;  %v7270_v21 = vsel %vm1834_vm13, %v1787_v20, 0.0  ;;  %v1796_v31 = vmul.f32 %v5822_v46, %v7095_v37  ;;  %v1891_v19 = vrot.slane %v1890_v63, 4  ;;  %v1899_v53 = vadd.f32 %v1898_v42, %v1877_v49 }
 0x2d6   : > { %v5826_v22 = vpop.eup %5825  ;;  %v7279_v16 = vsel %vm1834_vm13, %v1789_v47, 0.0  ;;  %v1678_v26 = vadd.f32 1.0, %v5824_v25  ;;  %v7285_v37 = vadd.f32 %v7172_v9, %v7143_v4 }
 0x2d7   : > { %v5828_v51 = vpop.eup %5827  ;;  %v1858_v62 = vsel %vm1835_vm15, %v1796_v31, 0.0  ;;  %v1677_v7 = vadd.f32 1.0, %v5826_v22  ;;  %v1892_v13 = vadd.f32 %v1891_v19, %v1890_v63  ;;  %v1900_v50 = vrot.slane %v1899_v53, 4 }
 0x2d8   : > { %v5830_v32 = vpop.eup %5829  ;;  %v7287_v18 = vadd.f32 %v1858_v62, %v1848_v15  ;;  %5843 = vrcp.f32 %v1678_v26  ;;  %v1679_v57 = vadd.f32 1.0, %v5828_v51  ;;  %v5002_v63 = vmul.f32 -1.442695, %v7275_v3 }
 0x2d9   : > { %v5832_v54 = vpop.eup %5831  ;;  %5845 = vrcp.f32 %v1677_v7  ;;  %v1686_v49 = vadd.f32 1.0, %v5830_v32  ;;  %v1893_v20 = vrot.slane %v1892_v13, 2  ;;  %v1901_v46 = vadd.f32 %v1900_v50, %v1899_v53 }
 0x2da   : > { %v5834_v28 = vpop.eup %5833  ;;  %v1688_v52 = vadd.f32 1.0, %v5832_v54  ;;  %5847 = vpow2.f32 %v5029_v14  ;;  %v7293_v15 = vadd.f32 %v7178_v39, %v7149_v41  ;;  %v5001_v19 = vmul.f32 -1.442695, %v7285_v37 }
 0x2db   : > { %v5836_v42 = vpop.eup %5835  ;;  %5849 = vrcp.f32 %v1679_v57  ;;  %v1687_v9 = vadd.f32 1.0, %v5834_v28  ;;  %v1894_v47 = vadd.f32 %v1893_v20, %v1892_v13  ;;  %v1902_v25 = vrot.slane %v1901_v46, 2 }
 0x2dc   : > { %5851 = vrcp.f32 %v1686_v49  ;;  %v1689_v31 = vadd.f32 1.0, %v5836_v42  ;;  %v5838_v22 = vpop.eup %5837  ;;  %v7298_v14 = vadd.f32 %v7180_v1, %v7128_v29  ;;  %v7302_v53 = vadd.f32 %v7184_v0, %v7134_v36 }
 0x2dd   : > { %5853 = vrcp.f32 %v1688_v52  ;;  %v1895_v26 = vrot.slane %v1894_v47, 1  ;;  %v1903_v51 = vadd.f32 %v1902_v25, %v1901_v46  ;;  %v1696_v39 = vadd.f32 1.0, %v5838_v22  ;;  %v5840_v62 = vpop.eup %5839 }
 0x2de   : > { %5855 = vrcp.f32 %v1687_v9  ;;  %v5003_v7 = vmul.f32 -1.442695, %v7293_v15  ;;  %v7307_v32 = vadd.f32 %v7186_v5, %v7143_v4  ;;  %v7311_v1 = vadd.f32 %v7190_v56, %v7149_v41  ;;  %v5842_v54 = vpop.eup %5841 }
 0x2df   : > { %5857 = vrcp.f32 %v1689_v31  ;;  %v7313_v13 = vadd.f32 %v1895_v26, %v1894_v47  ;;  %v1904_v0 = vrot.slane %v1903_v51, 1  ;;  %v1698_v50 = vadd.f32 1.0, %v5840_v62 }
 0x2e0   : > { %5859 = vrcp.f32 %v1696_v39  ;;  %v5010_v57 = vmul.f32 -1.442695, %v7298_v14  ;;  %v5012_v49 = vmul.f32 -1.442695, %v7302_v53  ;;  %v7319_v28 = vadd.f32 %v7218_v11, %v7128_v29 }
 0x2e1   : > { %5861 = vpow2.f32 %v5000_v34  ;;  %v7321_v20 = vadd.f32 %v1904_v0, %v1903_v51  ;;  %v1697_v56 = vadd.f32 1.0, %v5842_v54  ;;  %v7325_v46 = vadd.f32 %v7220_v43, %v7134_v36 }
 0x2e2   : > { %v5844_v5 = vpop.eup %5843  ;;  %5863 = vrcp.f32 %v1698_v50  ;;  %v5011_v42 = vmul.f32 -1.442695, %v7307_v32  ;;  %v7331_v9 = vadd.f32 %v7226_v10, %v7143_v4  ;;  %v5013_v43 = vmul.f32 -1.442695, %v7311_v1 }
 0x2e3   : > { %v5846_v52 = vpop.eup %5845  ;;  %v1798_v34 = vmul.f32 %v5844_v5, %v7138_v2  ;;  %5865 = vpow2.f32 %v5002_v63  ;;  %v1988_v47 = vcombine.low %v7313_v13, %v7321_v20  ;;  %v5020_v22 = vmul.f32 -1.442695, %v7319_v28 }
 0x2e4   : > { %v5848_v11 = vpop.eup %5847  ;;  %v1797_v25 = vmul.f32 %v5846_v52, %v7146_v8  ;;  %5867 = vrcp.f32 %v1697_v56  ;;  %v5022_v8 = vmul.f32 -1.442695, %v7325_v46 }
 0x2e5   : > { %v5850_v31 = vpop.eup %5849  ;;  %v1860_v2 = vsel %vm1835_vm15, %v1798_v34, 0.0  ;;  %v1699_v63 = vadd.f32 1.0, %v5848_v11  ;;  %5869 = vpow2.f32 %v5001_v19  ;;  %v5021_v19 = vmul.f32 -1.442695, %v7331_v9 }
 0x2e6   : > { %v5852_v26 = vpop.eup %5851  ;;  %v1924_v10 = vadd.f32 %v1860_v2, %v7265_v55  ;;  %v1859_v51 = vsel %vm1835_vm15, %v1797_v25, 0.0  ;;  %v1799_v39 = vmul.f32 %v5850_v31, %v7154_v27  ;;  %v7353_v27 = vadd.f32 %v7228_v45, %v7149_v41 }
 0x2e7   : > { %v5854_v62 = vpop.eup %5853  ;;  %v1915_v0 = vadd.f32 %v1859_v51, %v7270_v21  ;;  %v1806_v50 = vmul.f32 %v5852_v26, %v7158_v6  ;;  %5871 = vrcp.f32 %v1699_v63 }
 0x2e8   : > { %v5856_v54 = vpop.eup %5855  ;;  %v1861_v5 = vsel %vm1835_vm15, %v1799_v39, 0.0  ;;  %v1808_v55 = vmul.f32 %v5854_v62, %v7161_v59  ;;  %5873 = vpow2.f32 %v5003_v7 }
 0x2e9   : > { %v5858_v56 = vpop.eup %5857  ;;  %v1933_v52 = vadd.f32 %v1861_v5, %v7279_v16  ;;  %v1868_v6 = vsel %vm1836_vm14, %v1806_v50, 0.0  ;;  %v1807_v21 = vmul.f32 %v5856_v54, %v7168_v30  ;;  %5875 = vpow2.f32 %v5010_v57 }
 0x2ea   : > { %v5860_v34 = vpop.eup %5859  ;;  %v1907_v11 = vadd.f32 %v7287_v18, %v1868_v6  ;;  %v1870_v59 = vsel %vm1836_vm14, %v1808_v55, 0.0  ;;  %v1809_v7 = vmul.f32 %v5858_v56, %v7176_v38  ;;  %5877 = vpow2.f32 %v5012_v49 }
 0x2eb   : > { %v5862_v45 = vpop.eup %5861  ;;  %v1925_v25 = vadd.f32 %v1924_v10, %v1870_v59  ;;  %v1869_v16 = vsel %vm1836_vm14, %v1807_v21, 0.0  ;;  %v1816_v31 = vmul.f32 %v5860_v34, %v7196_v40  ;;  %5879 = vpow2.f32 %v5011_v42 }
 0x2ec   : > { %v5864_v2 = vpop.eup %5863  ;;  %v1916_v30 = vadd.f32 %v1915_v0, %v1869_v16  ;;  %v1871_v57 = vsel %vm1836_vm14, %v1809_v7, 0.0  ;;  %v1670_v18 = vadd.f32 1.0, %v5862_v45  ;;  %5881 = vpow2.f32 %v5013_v43 }
 0x2ed   : > { %v5866_v63 = vpop.eup %5865  ;;  %v1934_v26 = vadd.f32 %v1933_v52, %v1871_v57  ;;  %v1878_v38 = vsel %vm1837_vm0, %v1816_v31, 0.0  ;;  %v1818_v49 = vmul.f32 %v5864_v2, %v7202_v61  ;;  %5883 = vpow2.f32 %v5020_v22 }
 0x2ee   : > { %v5868_v10 = vpop.eup %5867  ;;  %v1908_v51 = vadd.f32 %v1907_v11, %v1878_v38  ;;  %5885 = vrcp.f32 %v1670_v18  ;;  %v1672_v40 = vadd.f32 1.0, %v5866_v63  ;;  %v7376_v43 = vadd.f32 %v7234_v60, %v7128_v29 }
 0x2ef   : > { %v5870_v42 = vpop.eup %5869  ;;  %v1880_v39 = vsel %vm1837_vm0, %v1818_v49, 0.0  ;;  %v1817_v62 = vmul.f32 %v5868_v10, %v7209_v33  ;;  %5887 = vpow2.f32 %v5022_v8  ;;  %v8637_v54 = vunpack.c.0.s8 %v7151_v35  ;;  %v8638_v35 = vld [vmem:[#allocation12_spill] sm:$0xff] }
 0x2f0   : > { %v1909_v0 = vrot.slane %v1908_v51, 4  ;;  %v1926_v50 = vadd.f32 %v1925_v25, %v1880_v39  ;;  %5889 = vrcp.f32 %v1672_v40  ;;  %v1671_v61 = vadd.f32 1.0, %v5870_v42 }
 0x2f1   : > { %v5872_v22 = vpop.eup %5871  ;;  %v7381_v5 = vsub.s32 %v8637_v54, %v7013_v44  ;;  %v1879_v55 = vsel %vm1837_vm0, %v1817_v62, 0.0  ;;  %5891 = vpow2.f32 %v5021_v19  ;;  %v5023_v33 = vmul.f32 -1.442695, %v7353_v27 }
 0x2f2   : > { %v5874_v8 = vpop.eup %5873  ;;  %v1910_v56 = vadd.f32 %v1909_v0, %v1908_v51  ;;  %v1927_v29 = vrot.slane %v1926_v50, 4  ;;  %v1917_v60 = vadd.f32 %v1916_v30, %v1879_v55  ;;  %v1819_v52 = vmul.f32 %v5872_v22, %v7216_v17  ;;  %v8639_v51 = vld [vmem:[#allocation13_spill] sm:$0xff] }
 0x2f3   : > { %v5876_v6 = vpop.eup %5875  ;;  %5893 = vrcp.f32 %v1671_v61  ;;  %v1673_v21 = vadd.f32 1.0, %v5874_v8  ;;  %v7388_v34 = vmul.f32 -1.442695, %v7376_v43  ;;  %v7392_v11 = vadd.f32 %v8638_v35, %v7134_v36 }
 0x2f4   : > { %v5878_v59 = vpop.eup %5877  ;;  %v1911_v19 = vrot.slane %v1910_v56, 2  ;;  %v1928_v7 = vadd.f32 %v1927_v29, %v1926_v50  ;;  %v1918_v45 = vrot.slane %v1917_v60, 4  ;;  %v1881_v25 = vsel %vm1837_vm0, %v1819_v52, 0.0 }
 0x2f5   : > { %v5880_v16 = vpop.eup %5879  ;;  %v1935_v31 = vadd.f32 %v1934_v26, %v1881_v25  ;;  %5895 = vrcp.f32 %v1673_v21  ;;  %v1680_v17 = vadd.f32 1.0, %v5876_v6  ;;  %v1682_v2 = vadd.f32 1.0, %v5878_v59 }
 0x2f6   : > { %v5882_v30 = vpop.eup %5881  ;;  %v1912_v57 = vadd.f32 %v1911_v19, %v1910_v56  ;;  %v1929_v18 = vrot.slane %v1928_v7, 2  ;;  %v1919_v63 = vadd.f32 %v1918_v45, %v1917_v60  ;;  %v1681_v38 = vadd.f32 1.0, %v5880_v16  ;;  %v8640_v56 = vld [vmem:[#allocation14_spill] sm:$0xff] }
 0x2f7   : > { %v5884_v49 = vpop.eup %5883  ;;  %v1936_v36 = vrot.slane %v1935_v31, 4  ;;  %5897 = vrcp.f32 %v1680_v17  ;;  %v1683_v10 = vadd.f32 1.0, %v5882_v30  ;;  %v7398_v40 = vadd.f32 %v8639_v51, %v7143_v4 }
 0x2f8   : > { %v5886_v42 = vpop.eup %5885  ;;  %v1913_v39 = vrot.slane %v1912_v57, 1  ;;  %v1930_v62 = vadd.f32 %v1929_v18, %v1928_v7  ;;  %v1920_v26 = vrot.slane %v1919_v63, 2  ;;  %5899 = vrcp.f32 %v1682_v2 }
 0x2f9   : > { %v5888_v0 = vpop.eup %5887  ;;  %v1937_v50 = vadd.f32 %v1936_v36, %v1935_v31  ;;  %v1790_v61 = vmul.f32 %v5886_v42, %v7261_v24  ;;  %5901 = vrcp.f32 %v1681_v38  ;;  %v1690_v22 = vadd.f32 1.0, %v5884_v49 }
 0x2fa   : > { %v5890_v54 = vpop.eup %5889  ;;  %v1931_v55 = vrot.slane %v1930_v62, 1  ;;  %v1921_v8 = vadd.f32 %v1920_v26, %v1919_v63  ;;  %5903 = vrcp.f32 %v1683_v10  ;;  %v7403_v29 = vadd.f32 %v8640_v56, %v7149_v41 }
 0x2fb   : > { %v5892_v4 = vpop.eup %5891  ;;  %v1938_v60 = vrot.slane %v1937_v50, 2  ;;  %v1852_v52 = vsel %vm1834_vm13, %v1790_v61, 0.0  ;;  %v1792_v6 = vmul.f32 %v5890_v54, %v7275_v3  ;;  %5905 = vrcp.f32 %v1690_v22 }
 0x2fc   : > { %v1914_v21 = vadd.f32 %v1913_v39, %v1912_v57  ;;  %v1922_v24 = vrot.slane %v1921_v8, 1  ;;  %v1692_v35 = vadd.f32 1.0, %v5888_v0  ;;  %v1691_v59 = vadd.f32 1.0, %v5892_v4 }
 0x2fd   : > { %v5894_v19 = vpop.eup %5893  ;;  %v1939_v7 = vadd.f32 %v1938_v60, %v1937_v50  ;;  %v1854_v45 = vsel %vm1834_vm13, %v1792_v6, 0.0  ;;  %5907 = vpow2.f32 %v5023_v33  ;;  %v5032_v41 = vmul.f32 -1.442695, %v7392_v11 }
 0x2fe   : > { %v1923_v25 = vadd.f32 %v1922_v24, %v1921_v8  ;;  %v1791_v16 = vmul.f32 %v5894_v19, %v7285_v37  ;;  %5909 = vrcp.f32 %v1692_v35  ;;  %v5031_v31 = vmul.f32 -1.442695, %v7398_v40 }
 0x2ff   : > { %v5896_v3 = vpop.eup %5895  ;;  %v7413_v17 = vadd.f32 %v1931_v55, %v1930_v62  ;;  %v1940_v2 = vrot.slane %v1939_v7, 1  ;;  %5911 = vrcp.f32 %v1691_v59  ;;  %v5033_v30 = vmul.f32 -1.442695, %v7403_v29 }
 0x300   : > { %v1989_v57 = vcombine.low %v1914_v21, %v1923_v25  ;;  %v1853_v18 = vsel %vm1834_vm13, %v1791_v16, 0.0  ;;  %v1793_v33 = vmul.f32 %v5896_v3, %v7293_v15  ;;  %5913 = vpow2.f32 %v7388_v34 }
 0x301   : > { %v5898_v63 = vpop.eup %5897  ;;  %v7424_v37 = vrot.slane %v1988_v47, %v7381_v5  ;;  %v7426_v38 = vadd.f32 %v1940_v2, %v1939_v7  ;;  %5915 = vpow2.f32 %v5032_v41 }
 0x302   : > { %v5900_v49 = vpop.eup %5899  ;;  %v7429_v36 = vrot.slane %v1989_v57, %v7381_v5  ;;  %v1855_v10 = vsel %vm1834_vm13, %v1793_v33, 0.0  ;;  %v1800_v15 = vmul.f32 %v5898_v63, %v7298_v14  ;;  %5917 = vpow2.f32 %v5031_v31 }
 0x303   : > { %v5902_v34 = vpop.eup %5901  ;;  %v1990_v51 = vcombine.low %v7413_v17, %v7426_v38  ;;  %v1802_v13 = vmul.f32 %v5900_v49, %v7302_v53  ;;  %5919 = vpow2.f32 %v5033_v30 }
 0x304   : > { %v5904_v20 = vpop.eup %5903  ;;  %v2020_v47 = vcombine.low %v7424_v37, %v7429_v36  ;;  %v1862_v42 = vsel %vm1835_vm15, %v1800_v15, 0.0  ;;  %v1801_v48 = vmul.f32 %v5902_v34, %v7307_v32  ;;  %v5933_v37 = vld [vmem:[%s8606_s8 + $0xc] ss:$16 sps:$4 sm:$0xff] (!%p5034_p7)   ;;  %v5936_v36 = vld [vmem:[%s8606_s8 + $0x8] ss:$16 sps:$4 sm:$0xff] (!%p5034_p7)  }
 0x305   : > { %v5906_v39 = vpop.eup %5905  ;;  %v1942_v62 = vadd.f32 %v1862_v42, %v1852_v52  ;;  %v1864_v14 = vsel %vm1835_vm15, %v1802_v13, 0.0  ;;  %v1803_v26 = vmul.f32 %v5904_v20, %v7311_v1  ;;  %4279 = vmatprep.subr.bf16.mxu1 (!%p5034_p7), %v5933_v37  ;;  %v6020_v37 = vld [vmem:[%s8606_s8 + $0x1c8] ss:$16 sps:$4 sm:$0xff] (!%p5034_p7)  }
 0x306   : > { %v1960_v0 = vadd.f32 %v1864_v14, %v1854_v45  ;;  %v1863_v53 = vsel %vm1835_vm15, %v1801_v48, 0.0  ;;  %v1810_v50 = vmul.f32 %v5906_v39, %v7319_v28  ;;  %4280 = vmatpush1.bf16.msra.mxu1 (!%p5034_p7), %v5936_v36  ;;  %v6023_v36 = vld [vmem:[%s8606_s8 + $0x1ec] ss:$16 sps:$4 sm:$0xff] (!%p5034_p7)  }
 0x307   : > { %v5908_v61 = vpop.eup %5907  ;;  %v1951_v22 = vadd.f32 %v1863_v53, %v1853_v18  ;;  %v1865_v54 = vsel %vm1835_vm15, %v1803_v26, 0.0 }
 0x308   : > { %v5910_v55 = vpop.eup %5909  ;;  %v1969_v32 = vadd.f32 %v1865_v54, %v1855_v10  ;;  %v1872_v8 = vsel %vm1836_vm14, %v1810_v50, 0.0  ;;  %v1693_v56 = vadd.f32 1.0, %v5908_v61 }
 0x309   : > { %v5912_v4 = vpop.eup %5911  ;;  %v1943_v60 = vadd.f32 %v1942_v62, %v1872_v8  ;;  %v1812_v1 = vmul.f32 %v5910_v55, %v7325_v46 }
 0x30a   : > { %v5914_v52 = vpop.eup %5913  ;;  %v1811_v6 = vmul.f32 %v5912_v4, %v7331_v9  ;;  %5921 = vrcp.f32 %v1693_v56 }
 0x30b   : > { %v5916_v28 = vpop.eup %5915  ;;  %v1874_v21 = vsel %vm1836_vm14, %v1812_v1, 0.0  ;;  %v1700_v12 = vadd.f32 1.0, %v5914_v52 }
 0x30c   : > { %v5918_v24 = vpop.eup %5917  ;;  %v1961_v35 = vadd.f32 %v1960_v0, %v1874_v21  ;;  %v1873_v59 = vsel %vm1836_vm14, %v1811_v6, 0.0  ;;  %v1702_v19 = vadd.f32 1.0, %v5916_v28  ;;  %v2012_v21 = vrot.slane %v1990_v51, %v7381_v5 }
 0x30d   : > { %v5920_v7 = vpop.eup %5919  ;;  %v1952_v45 = vadd.f32 %v1951_v22, %v1873_v59  ;;  %5923 = vrcp.f32 %v1700_v12  ;;  %v1701_v41 = vadd.f32 1.0, %v5918_v24  ;;  %v1887_v59 = vld [vmem:[#allocation3 + $0x8] sm:$0x3] }
 0x30e   : > { %5925 = vrcp.f32 %v1702_v19  ;;  %v1703_v46 = vadd.f32 1.0, %v5920_v7  ;;  %v2028_v7 = vrot.slane %v2020_v47, %v7381_v5  ;;  %v5937_v47 = vld [vmem:[%s8606_s8 + $0x24] ss:$16 sps:$4 sm:$0xff] (!%p5034_p7)  }
 0x30f   : > { %5927 = vrcp.f32 %v1701_v41  ;;  %v8641_v41 = vlaneseq }
 0x310   : > { %5929 = vrcp.f32 %v1703_v46  ;;  %v1886_v46 = vld [vmem:[#allocation3] sm:$0xff] }
 0x311   : > { %vm2059_vm1 = vcmp.lt.s32.totalorder %v8641_v41, 256  ;;  %v6011_v41 = vld [vmem:[%s8606_s8 + $0x1ac] ss:$16 sps:$4 sm:$0xff] (!%p5034_p7)  }
 0x314   : > { %v5922_v9 = vpop.eup %5921 }
 0x315   : > { %v1813_v25 = vmul.f32 %v5922_v9, %v7353_v27  ;;  %v5931_v9 = vld [vmem:[%s8606_s8 + $0x4] ss:$16 sps:$4 sm:$0xff] (!%p5034_p7)  }
 0x316   : > { %4074 = vmatprep.subr.bf16.mxu0 (!%p5034_p7), %v5931_v9  ;;  %v6019_v9 = vld [vmem:[%s8606_s8 + $0x1c0] ss:$16 sps:$4 sm:$0xff] (!%p5034_p7)  }
 0x317   : > { %v5924_v16 = vpop.eup %5923  ;;  %v1875_v31 = vsel %vm1836_vm14, %v1813_v25, 0.0  ;;  %v5939_v25 = vld [vmem:[%s8606_s8 + $0x2c] ss:$16 sps:$4 sm:$0xff] (!%p5034_p7)  }
 0x318   : > { %v5926_v3 = vpop.eup %5925  ;;  %v1970_v2 = vadd.f32 %v1969_v32, %v1875_v31  ;;  %v1820_v30 = vmul.f32 %v5924_v16, %v7376_v43  ;;  %v5941_v16 = vld [vmem:[%s8606_s8 + $0x20] ss:$16 sps:$4 sm:$0xff] (!%p5034_p7)   ;;  %v5942_v31 = vld [vmem:[%s8606_s8 + $0x28] ss:$16 sps:$4 sm:$0xff] (!%p5034_p7)   ;;  %4281 = vmatprep.subr.bf16.mxu1 (!%p5034_p7), %v5939_v25 }
 0x319   : > { %v5928_v57 = vpop.eup %5927  ;;  %v1822_v18 = vmul.f32 %v5926_v3, %v7392_v11  ;;  %v5943_v3 = vld [vmem:[%s8606_s8 + $0x44] ss:$16 sps:$4 sm:$0xff] (!%p5034_p7)   ;;  %4282 = vmatpush1.bf16.msra.mxu1 (!%p5034_p7), %v5942_v31  ;;  %v8643_v25 = vld [vmem:[#allocation8_spill] sm:$0xff] (!%p5034_p7) }
 0x31a   : > { %v5930_v33 = vpop.eup %5929  ;;  %v1882_v63 = vsel %vm1837_vm0, %v1820_v30, 0.0  ;;  %v1821_v49 = vmul.f32 %v5928_v57, %v7398_v40  ;;  %v5947_v30 = vld [vmem:[%s8606_s8 + $0x40] ss:$16 sps:$4 sm:$0xff] (!%p5034_p7)   ;;  %v5948_v57 = vld [vmem:[%s8606_s8 + $0x48] ss:$16 sps:$4 sm:$0xff] (!%p5034_p7)  }
 0x31b   : > { %v1944_v10 = vadd.f32 %v1943_v60, %v1882_v63  ;;  %v1884_v27 = vsel %vm1837_vm0, %v1822_v18, 0.0  ;;  %v1823_v58 = vmul.f32 %v5930_v33, %v7403_v29  ;;  %v5949_v18 = vld [vmem:[%s8606_s8 + $0x64] ss:$16 sps:$4 sm:$0xff] (!%p5034_p7)   ;;  %v5951_v33 = vld [vmem:[%s8606_s8 + $0x6c] ss:$16 sps:$4 sm:$0xff] (!%p5034_p7)  }
 0x31c   : > { %v1962_v15 = vadd.f32 %v1961_v35, %v1884_v27  ;;  %v1883_v34 = vsel %vm1837_vm0, %v1821_v49, 0.0  ;;  %v5953_v63 = vld [vmem:[%s8606_s8 + $0x60] ss:$16 sps:$4 sm:$0xff] (!%p5034_p7)   ;;  %v5954_v49 = vld [vmem:[%s8606_s8 + $0x68] ss:$16 sps:$4 sm:$0xff] (!%p5034_p7)  }
 0x31d   : > { %v1945_v43 = vrot.slane %v1944_v10, 4  ;;  %v1953_v13 = vadd.f32 %v1952_v45, %v1883_v34  ;;  %v1885_v11 = vsel %vm1837_vm0, %v1823_v58, 0.0  ;;  %v5957_v27 = vld [vmem:[%s8606_s8 + $0x8c] ss:$16 sps:$4 sm:$0xff] (!%p5034_p7)   ;;  %v5959_v58 = vld [vmem:[%s8606_s8 + $0x80] ss:$16 sps:$4 sm:$0xff] (!%p5034_p7)  }
 0x31e   : > { %v1963_v20 = vrot.slane %v1962_v15, 4  ;;  %v1971_v42 = vadd.f32 %v1970_v2, %v1885_v11  ;;  %v5945_v2 = vld [vmem:[%s8606_s8 + $0x4c] ss:$16 sps:$4 sm:$0xff] (!%p5034_p7)   ;;  %v5961_v34 = vld [vmem:[%s8606_s8 + $0xa4] ss:$16 sps:$4 sm:$0xff] (!%p5034_p7)  }
 0x31f   : > { %v1946_v48 = vadd.f32 %v1945_v43, %v1944_v10  ;;  %v1954_v39 = vrot.slane %v1953_v13, 4  ;;  %4283 = vmatprep.subr.bf16.mxu1 (!%p5034_p7), %v5945_v2  ;;  %v5955_v10 = vld [vmem:[%s8606_s8 + $0x84] ss:$16 sps:$4 sm:$0xff] (!%p5034_p7)   ;;  %v5963_v43 = vld [vmem:[%s8606_s8 + $0xac] ss:$16 sps:$4 sm:$0xff] (!%p5034_p7)  }
 0x320   : > { %v1964_v40 = vadd.f32 %v1963_v20, %v1962_v15  ;;  %v1972_v62 = vrot.slane %v1971_v42, 4  ;;  %4284 = vmatpush1.bf16.msra.mxu1 (!%p5034_p7), %v5948_v57  ;;  %v5960_v15 = vld [vmem:[%s8606_s8 + $0x88] ss:$16 sps:$4 sm:$0xff] (!%p5034_p7)   ;;  %v5967_v20 = vld [vmem:[%s8606_s8 + $0xc4] ss:$16 sps:$4 sm:$0xff] (!%p5034_p7)  }
 0x321   : > { %v1947_v14 = vrot.slane %v1946_v48, 2  ;;  %v1955_v26 = vadd.f32 %v1954_v39, %v1953_v13  ;;  %4285 = vmatprep.subr.bf16.mxu1 (!%p5034_p7), %v5951_v33  ;;  %v5965_v13 = vld [vmem:[%s8606_s8 + $0xa0] ss:$16 sps:$4 sm:$0xff] (!%p5034_p7)   ;;  %v5966_v11 = vld [vmem:[%s8606_s8 + $0xa8] ss:$16 sps:$4 sm:$0xff] (!%p5034_p7)  }
 0x322   : > { %v1965_v0 = vrot.slane %v1964_v40, 2  ;;  %v1973_v53 = vadd.f32 %v1972_v62, %v1971_v42  ;;  %v5969_v42 = vld [vmem:[%s8606_s8 + $0xcc] ss:$16 sps:$4 sm:$0xff] (!%p5034_p7)   ;;  %v5972_v39 = vld [vmem:[%s8606_s8 + $0xc8] ss:$16 sps:$4 sm:$0xff] (!%p5034_p7)  }
 0x323   : > { %v1948_v29 = vadd.f32 %v1947_v14, %v1946_v48  ;;  %v1956_v50 = vrot.slane %v1955_v26, 2  ;;  %v5971_v48 = vld [vmem:[%s8606_s8 + $0xc0] ss:$16 sps:$4 sm:$0xff] (!%p5034_p7)   ;;  %v5975_v62 = vld [vmem:[%s8606_s8 + $0xec] ss:$16 sps:$4 sm:$0xff] (!%p5034_p7)  }
 0x324   : > { %v1966_v61 = vadd.f32 %v1965_v0, %v1964_v40  ;;  %v1974_v22 = vrot.slane %v1973_v53, 2  ;;  %4286 = vmatpush1.bf16.msra.mxu1 (!%p5034_p7), %v5954_v49  ;;  %v5973_v40 = vld [vmem:[%s8606_s8 + $0xe4] ss:$16 sps:$4 sm:$0xff] (!%p5034_p7)   ;;  %v5977_v14 = vld [vmem:[%s8606_s8 + $0xe0] ss:$16 sps:$4 sm:$0xff] (!%p5034_p7)  }
 0x325   : > { %v1949_v54 = vrot.slane %v1948_v29, 1  ;;  %v1957_v55 = vadd.f32 %v1956_v50, %v1955_v26  ;;  %4287 = vmatprep.subr.bf16.mxu1 (!%p5034_p7), %v5957_v27  ;;  %v5978_v26 = vld [vmem:[%s8606_s8 + $0xe8] ss:$16 sps:$4 sm:$0xff] (!%p5034_p7)   ;;  %v5979_v0 = vld [vmem:[%s8606_s8 + $0x104] ss:$16 sps:$4 sm:$0xff] (!%p5034_p7)  }
 0x326   : > { %v1967_v32 = vrot.slane %v1966_v61, 1  ;;  %v1975_v8 = vadd.f32 %v1974_v22, %v1973_v53  ;;  %v5981_v53 = vld [vmem:[%s8606_s8 + $0x10c] ss:$16 sps:$4 sm:$0xff] (!%p5034_p7)   ;;  %v5984_v50 = vld [vmem:[%s8606_s8 + $0x108] ss:$16 sps:$4 sm:$0xff] (!%p5034_p7)  }
 0x327   : > { %v1950_v23 = vadd.f32 %v1949_v54, %v1948_v29  ;;  %v1958_v56 = vrot.slane %v1957_v55, 1  ;;  %v5983_v29 = vld [vmem:[%s8606_s8 + $0x100] ss:$16 sps:$4 sm:$0xff] (!%p5034_p7)   ;;  %v5987_v22 = vld [vmem:[%s8606_s8 + $0x12c] ss:$16 sps:$4 sm:$0xff] (!%p5034_p7)  }
 0x328   : > { %v1968_v4 = vadd.f32 %v1967_v32, %v1966_v61  ;;  %v1976_v60 = vrot.slane %v1975_v8, 1  ;;  %4288 = vmatpush1.bf16.msra.mxu1 (!%p5034_p7), %v5960_v15  ;;  %v5985_v61 = vld [vmem:[%s8606_s8 + $0x124] ss:$16 sps:$4 sm:$0xff] (!%p5034_p7)   ;;  %v5989_v54 = vld [vmem:[%s8606_s8 + $0x120] ss:$16 sps:$4 sm:$0xff] (!%p5034_p7)  }
 0x329   : > { %v1959_v1 = vadd.f32 %v1958_v56, %v1957_v55  ;;  %4289 = vmatprep.subr.bf16.mxu1 (!%p5034_p7), %v5963_v43  ;;  %v5990_v55 = vld [vmem:[%s8606_s8 + $0x128] ss:$16 sps:$4 sm:$0xff] (!%p5034_p7)   ;;  %v5991_v32 = vld [vmem:[%s8606_s8 + $0x144] ss:$16 sps:$4 sm:$0xff] (!%p5034_p7)   ;;  %v6032_v2 = vld [vmem:[%s8606_s8 + $0x20c] ss:$16 sps:$4 sm:$0xff] (!%p5034_p7)  }
 0x32a   : > { %v1977_v52 = vadd.f32 %v1976_v60, %v1975_v8  ;;  %v5993_v8 = vld [vmem:[%s8606_s8 + $0x14c] ss:$16 sps:$4 sm:$0xff] (!%p5034_p7)   ;;  %v5996_v56 = vld [vmem:[%s8606_s8 + $0x148] ss:$16 sps:$4 sm:$0xff] (!%p5034_p7)   ;;  %v6035_v49 = vld [vmem:[%s8606_s8 + $0x224] ss:$16 sps:$4 sm:$0xff] (!%p5034_p7)  }
 0x32b   : > { %v1991_v6 = vcombine.low %v1950_v23, %v1959_v1  ;;  %v5995_v23 = vld [vmem:[%s8606_s8 + $0x140] ss:$16 sps:$4 sm:$0xff] (!%p5034_p7)   ;;  %v5999_v60 = vld [vmem:[%s8606_s8 + $0x16c] ss:$16 sps:$4 sm:$0xff] (!%p5034_p7)   ;;  %v6026_v31 = vld [vmem:[%s8606_s8 + $0x1e8] ss:$16 sps:$4 sm:$0xff] (!%p5034_p7)  }
 0x32c   : > { %v2037_v28 = vcombine.low %v1968_v4, %v1977_v52  ;;  %4290 = vmatpush1.bf16.msra.mxu1 (!%p5034_p7), %v5966_v11  ;;  %v5997_v4 = vld [vmem:[%s8606_s8 + $0x164] ss:$16 sps:$4 sm:$0xff] (!%p5034_p7)   ;;  %v6001_v52 = vld [vmem:[%s8606_s8 + $0x160] ss:$16 sps:$4 sm:$0xff] (!%p5034_p7)   ;;  %v6036_v15 = vld [vmem:[%s8606_s8 + $0x228] ss:$16 sps:$4 sm:$0xff] (!%p5034_p7)  }
 0x32d   : > { %v2019_v12 = vrot.slane %v1991_v6, %v7381_v5  ;;  %4291 = vmatprep.subr.bf16.mxu1 (!%p5034_p7), %v5969_v42  ;;  %v6044_v43 = vld [vmem:[%s8606_s8 + $0x24c] ss:$16 sps:$4 sm:$0xff] (!%p5034_p7)   ;;  %v6042_v11 = vld [vmem:[%s8606_s8 + $0x248] ss:$16 sps:$4 sm:$0xff] (!%p5034_p7)  }
 0x32e   : > { %v2044_v24 = vrot.slane %v2037_v28, %v7381_v5  ;;  %v6002_v28 = vld [vmem:[%s8606_s8 + $0x168] ss:$16 sps:$4 sm:$0xff] (!%p5034_p7)   ;;  %v6050_v42 = vld [vmem:[%s8606_s8 + $0x26c] ss:$16 sps:$4 sm:$0xff] (!%p5034_p7)  }
 0x32f   : > { %v2021_v35 = vcombine.low %v2012_v21, %v2019_v12  ;;  %v6003_v21 = vld [vmem:[%s8606_s8 + $0x184] ss:$16 sps:$4 sm:$0xff] (!%p5034_p7)   ;;  %v6005_v12 = vld [vmem:[%s8606_s8 + $0x18c] ss:$16 sps:$4 sm:$0xff] (!%p5034_p7)  }
 0x330   : > { %v2051_v19 = vrot.slane %v2044_v24, %v7381_v5  ;;  %4292 = vmatpush1.bf16.msra.mxu1 (!%p5034_p7), %v5972_v39  ;;  %v8642_v24 = vld [vmem:[#allocation9_spill] sm:$0xff] (!%p5034_p7) }
 0x331   : > { %v2035_v45 = vrot.slane %v2021_v35, %v7381_v5  ;;  %2065 = sbr.rel (%p5034_p7) target bundleno = 1579 (0x62b), region = 76  ;;  %v5935_v5 = vld [vmem:[%s8606_s8] ss:$16 sps:$4 sm:$0xff] (!%p5034_p7)   ;;  %4293 = vmatprep.subr.bf16.mxu1 (!%p5034_p7), %v5975_v62  ;;  %v6048_v39 = vld [vmem:[%s8606_s8 + $0x268] ss:$16 sps:$4 sm:$0xff] (!%p5034_p7)  }
 0x332   : > { %v2055_v17 = vadd.f32 %v2051_v19, %v1887_v59  ;;  %4075 = vmatpush1.bf16.msra.mxu0 (!%p5034_p7), %v5935_v5  ;;  %v6007_v59 = vld [vmem:[%s8606_s8 + $0x180] ss:$16 sps:$4 sm:$0xff] (!%p5034_p7)   ;;  %v6021_v5 = vld [vmem:[%s8606_s8 + $0x1e4] ss:$16 sps:$4 sm:$0xff] (!%p5034_p7)   ;;  %v6056_v62 = vld [vmem:[%s8606_s8 + $0x28c] ss:$16 sps:$4 sm:$0xff] (!%p5034_p7)  }
 0x333   : > { %v2036_v38 = vcombine.low %v2028_v7, %v2035_v45  ;;  %4076 = vmatprep.subr.bf16.mxu0 (!%p5034_p7), %v5937_v47  ;;  %v6008_v7 = vld [vmem:[%s8606_s8 + $0x188] ss:$16 sps:$4 sm:$0xff] (!%p5034_p7)   ;;  %v6009_v45 = vld [vmem:[%s8606_s8 + $0x1a4] ss:$16 sps:$4 sm:$0xff] (!%p5034_p7)   ;;  %v6025_v47 = vld [vmem:[%s8606_s8 + $0x1e0] ss:$16 sps:$4 sm:$0xff] (!%p5034_p7)  }
 0x334   : > { %2061 = vst.msk [vmem:[#allocation3 + $0x8] sm:$0x3] %vm2059_vm1, %v2055_v17  ;;  %4294 = vmatpush1.bf16.msra.mxu1 (!%p5034_p7), %v5978_v26  ;;  %v6014_v17 = vld [vmem:[%s8606_s8 + $0x1a8] ss:$16 sps:$4 sm:$0xff] (!%p5034_p7)  }
 0x335   : > { %v2054_v51 = vadd.f32 %v2036_v38, %v1886_v46  ;;  %4295 = vmatprep.subr.bf16.mxu1 (!%p5034_p7), %v5981_v53  ;;  %v6013_v46 = vld [vmem:[%s8606_s8 + $0x1a0] ss:$16 sps:$4 sm:$0xff] (!%p5034_p7)   ;;  %v6015_v38 = vld [vmem:[%s8606_s8 + $0x1c4] ss:$16 sps:$4 sm:$0xff] (!%p5034_p7)   ;;  %v6054_v26 = vld [vmem:[%s8606_s8 + $0x288] ss:$16 sps:$4 sm:$0xff] (!%p5034_p7)  }
 0x336   : > { %4077 = vmatpush1.bf16.msra.mxu0 (!%p5034_p7), %v5941_v16  ;;  %v6062_v53 = vld [vmem:[%s8606_s8 + $0x2ac] ss:$16 sps:$4 sm:$0xff] (!%p5034_p7)  }
 0x337   : > { %2056 = vst [vmem:[#allocation3] sm:$0xff] %v2054_v51  ;;  %4078 = vmatprep.subr.bf16.mxu0 (!%p5034_p7), %v5943_v3  ;;  %v6017_v51 = vld [vmem:[%s8606_s8 + $0x1cc] ss:$16 sps:$4 sm:$0xff] (!%p5034_p7)   ;;  %v6029_v3 = vld [vmem:[%s8606_s8 + $0x204] ss:$16 sps:$4 sm:$0xff] (!%p5034_p7)  }
 0x338   : > { %4296 = vmatpush1.bf16.msra.mxu1 %v5984_v50  ;;  %v6060_v50 = vld [vmem:[%s8606_s8 + $0x2a8] ss:$16 sps:$4 sm:$0xff]  }
 0x339   : > { %4297 = vmatprep.subr.bf16.mxu1 %v5987_v22  ;;  %v6068_v22 = vld [vmem:[%s8606_s8 + $0x2cc] ss:$16 sps:$4 sm:$0xff]  }
 0x33a   : > { %4079 = vmatpush1.bf16.msra.mxu0 %v5947_v30  ;;  %v8644_v30 = vld [vmem:[#allocation11_spill] sm:$0xff] }
 0x33b   : > { %4080 = vmatprep.subr.bf16.mxu0 %v5949_v18  ;;  %v6027_v18 = vld [vmem:[%s8606_s8 + $0x200] ss:$16 sps:$4 sm:$0xff]  }
 0x33c   : > { %4298 = vmatpush1.bf16.msra.mxu1 %v5990_v55  ;;  %v6066_v55 = vld [vmem:[%s8606_s8 + $0x2c8] ss:$16 sps:$4 sm:$0xff]  }
 0x33d   : > { %4299 = vmatprep.subr.bf16.mxu1 %v5993_v8  ;;  %v6074_v8 = vld [vmem:[%s8606_s8 + $0x2ec] ss:$16 sps:$4 sm:$0xff]  }
 0x33e   : > { %4081 = vmatpush1.bf16.msra.mxu0 %v5953_v63  ;;  %v2066_v1 = vld [vmem:[#allocation3] sm:$0xff]  ;;  %v6030_v63 = vld [vmem:[%s8606_s8 + $0x208] ss:$16 sps:$4 sm:$0xff]  }
 0x33f   : > { %4082 = vmatprep.subr.bf16.mxu0 %v5955_v10  ;;  %v7628_v6 = vmul.f32 0.015625, %v2066_v1  ;;  %v6038_v10 = vld [vmem:[%s8606_s8 + $0x22c] ss:$16 sps:$4 sm:$0xff]   ;;  %v6075_v1 = vld [vmem:[%s8606_s8 + $0x300] ss:$16 sps:$4 sm:$0xff]  }
 0x340   : > { %4300 = vmatpush1.bf16.msra.mxu1 %v5996_v56  ;;  %v6072_v56 = vld [vmem:[%s8606_s8 + $0x2e8] ss:$16 sps:$4 sm:$0xff]  }
 0x341   : > { %4301 = vmatprep.subr.bf16.mxu1 %v5999_v60  ;;  %v2079_v35 = vrot.slane %v7628_v6, %v8642_v24  ;;  %v2075_v16 = vrot.slane %v7628_v6, %v8643_v25  ;;  %v2087_v57 = vrot.slane %v7628_v6, %v8644_v30  ;;  %v6080_v60 = vld [vmem:[%s8606_s8 + $0x30c] ss:$16 sps:$4 sm:$0xff]  }
 0x342   : > { %4083 = vmatpush1.bf16.msra.mxu0 %v5959_v58  ;;  %v6033_v58 = vld [vmem:[%s8606_s8 + $0x220] ss:$16 sps:$4 sm:$0xff]  }
 0x343   : > { %4084 = vmatprep.subr.bf16.mxu0 %v5961_v34  ;;  %v2123_v19 = vpack.c.bf16 %v2079_v35, %v2079_v35  ;;  %v2122_v33 = vpack.c.bf16 %v2075_v16, %v2075_v16  ;;  %v2125_v27 = vpack.c.bf16 %v2087_v57, %v2087_v57  ;;  %v6041_v34 = vld [vmem:[%s8606_s8 + $0x244] ss:$16 sps:$4 sm:$0xff]   ;;  %v6084_v35 = vld [vmem:[%s8606_s8 + $0x328] ss:$16 sps:$4 sm:$0xff]   ;;  %v6105_v16 = vld [vmem:[%s8606_s8 + $0x3a0] ss:$16 sps:$4 sm:$0xff]  }
 0x344   : > { %4302 = vmatpush1.bf16.msra.mxu1 %v6002_v28  ;;  %v6083_v28 = vld [vmem:[%s8606_s8 + $0x324] ss:$16 sps:$4 sm:$0xff]   ;;  %v6111_v57 = vld [vmem:[%s8606_s8 + $0x3c0] ss:$16 sps:$4 sm:$0xff]  }
 0x345   : > { %4303 = vmatprep.subr.bf16.mxu1 %v6005_v12  ;;  %4106 = vmatprep.mubr.bf16.mxu0 %v2123_v19  ;;  %v6081_v12 = vld [vmem:[%s8606_s8 + $0x320] ss:$16 sps:$4 sm:$0xff]  }
 0x346   : > { %4085 = vmatpush1.bf16.msra.mxu0 %v5965_v13  ;;  %4311 = vmatprep.mubr.bf16.mxu1 %v2123_v19  ;;  %v6039_v13 = vld [vmem:[%s8606_s8 + $0x240] ss:$16 sps:$4 sm:$0xff]   ;;  %v6092_v19 = vld [vmem:[%s8606_s8 + $0x34c] ss:$16 sps:$4 sm:$0xff]  }
 0x347   : > { %4086 = vmatprep.subr.bf16.mxu0 %v5967_v20  ;;  %v6047_v20 = vld [vmem:[%s8606_s8 + $0x264] ss:$16 sps:$4 sm:$0xff]  }
 0x348   : > { %4304 = vmatpush1.bf16.msra.mxu1 %v6008_v7  ;;  %v6087_v7 = vld [vmem:[%s8606_s8 + $0x340] ss:$16 sps:$4 sm:$0xff]  }
 0x349   : > { %4305 = vmatprep.subr.bf16.mxu1 %v6011_v41  ;;  %v6095_v41 = vld [vmem:[%s8606_s8 + $0x364] ss:$16 sps:$4 sm:$0xff]  }
 0x34a   : > { %4087 = vmatpush1.bf16.msra.mxu0 %v5971_v48  ;;  %v6045_v48 = vld [vmem:[%s8606_s8 + $0x260] ss:$16 sps:$4 sm:$0xff]  }
 0x34b   : > { %4088 = vmatprep.subr.bf16.mxu0 %v5973_v40  ;;  %v6053_v40 = vld [vmem:[%s8606_s8 + $0x284] ss:$16 sps:$4 sm:$0xff]  }
 0x34c   : > { %4306 = vmatpush1.bf16.msra.mxu1 %v6014_v17  ;;  %v6093_v17 = vld [vmem:[%s8606_s8 + $0x360] ss:$16 sps:$4 sm:$0xff]  }
 0x34d   : > { %4307 = vmatprep.subr.bf16.mxu1 %v6017_v51  ;;  %v6101_v51 = vld [vmem:[%s8606_s8 + $0x384] ss:$16 sps:$4 sm:$0xff]  }
 0x34e   : > { %4089 = vmatpush1.bf16.msra.mxu0 %v5977_v14  ;;  %v6051_v14 = vld [vmem:[%s8606_s8 + $0x280] ss:$16 sps:$4 sm:$0xff]  }
 0x34f   : > { %4090 = vmatprep.subr.bf16.mxu0 %v5979_v0  ;;  %v6059_v0 = vld [vmem:[%s8606_s8 + $0x2a4] ss:$16 sps:$4 sm:$0xff]  }
 0x350   : > { %4308 = vmatpush1.bf16.msra.mxu1 %v6020_v37  ;;  %v6099_v37 = vld [vmem:[%s8606_s8 + $0x380] ss:$16 sps:$4 sm:$0xff]  }
 0x351   : > { %4309 = vmatprep.subr.bf16.mxu1 %v6023_v36  ;;  %v6107_v36 = vld [vmem:[%s8606_s8 + $0x3a4] ss:$16 sps:$4 sm:$0xff]  }
 0x352   : > { %4091 = vmatpush1.bf16.msra.mxu0 %v5983_v29  ;;  %v6057_v29 = vld [vmem:[%s8606_s8 + $0x2a0] ss:$16 sps:$4 sm:$0xff]  }
 0x353   : > { %4092 = vmatprep.subr.bf16.mxu0 %v5985_v61  ;;  %v6065_v61 = vld [vmem:[%s8606_s8 + $0x2c4] ss:$16 sps:$4 sm:$0xff]  }
 0x354   : > { %4310 = vmatpush1.bf16.msra.mxu1 %v6026_v31  ;;  %v6108_v31 = vld [vmem:[%s8606_s8 + $0x3a8] ss:$16 sps:$4 sm:$0xff]  }
 0x355   : > { %4320 = vmatprep.subr.bf16.mxu1 %v6032_v2  ;;  %v6116_v2 = vld [vmem:[%s8606_s8 + $0x3cc] ss:$16 sps:$4 sm:$0xff]  }
 0x356   : > { %4093 = vmatpush1.bf16.msra.mxu0 %v5989_v54  ;;  %v6063_v54 = vld [vmem:[%s8606_s8 + $0x2c0] ss:$16 sps:$4 sm:$0xff]  }
 0x357   : > { %4094 = vmatprep.subr.bf16.mxu0 %v5991_v32  ;;  %4312 = vmatmul.mubr.bf16.vlgmr.msra.gmra.mrb[0].mxu1 %v2122_v33  ;;  %v6071_v32 = vld [vmem:[%s8606_s8 + $0x2e4] ss:$16 sps:$4 sm:$0xff]  }
 0x358   : > { %4321 = vmatpush1.bf16.msra.mxu1 %v6030_v63  ;;  %4352 = vmatprep.mubr.bf16.mxu1 %v2125_v27  ;;  %v6122_v63 = vld [vmem:[%s8606_s8 + $0x3ec] ss:$16 sps:$4 sm:$0xff]  }
 0x359   : > { %4322 = vmatprep.subr.bf16.mxu1 %v6038_v10  ;;  %v8645_v10 = vld [vmem:[#allocation10_spill] sm:$0xff] }
 0x35a   : > { %4095 = vmatpush1.bf16.msra.mxu0 %v5995_v23  ;;  %v6069_v23 = vld [vmem:[%s8606_s8 + $0x2e0] ss:$16 sps:$4 sm:$0xff]  }
 0x35b   : > { %4096 = vmatprep.subr.bf16.mxu0 %v5997_v4  ;;  %v6077_v4 = vld [vmem:[%s8606_s8 + $0x304] ss:$16 sps:$4 sm:$0xff]  }
 0x35c   : > { %4323 = vmatpush1.bf16.msra.mxu1 %v6036_v15  ;;  %v6125_v15 = vld [vmem:[%s8606_s8 + $0x404] ss:$16 sps:$4 sm:$0xff]  }
 0x35d   : > { %4324 = vmatprep.subr.bf16.mxu1 %v6044_v43  ;;  %v8646_v43 = vsub.s32 5, %v7013_v44 }
 0x35e   : > { %4097 = vmatpush1.bf16.msra.mxu0 %v6001_v52  ;;  %v6078_v52 = vld [vmem:[%s8606_s8 + $0x308] ss:$16 sps:$4 sm:$0xff]  }
 0x35f   : > { %4098 = vmatprep.subr.bf16.mxu0 %v6003_v21  ;;  %v6086_v21 = vld [vmem:[%s8606_s8 + $0x32c] ss:$16 sps:$4 sm:$0xff]  }
 0x360   : > { %4325 = vmatpush1.bf16.msra.mxu1 %v6042_v11  ;;  %v6123_v11 = vld [vmem:[%s8606_s8 + $0x400] ss:$16 sps:$4 sm:$0xff]  }
 0x361   : > { %4326 = vmatprep.subr.bf16.mxu1 %v6050_v42  ;;  %v6126_v42 = vld [vmem:[%s8606_s8 + $0x408] ss:$16 sps:$4 sm:$0xff]  }
 0x362   : > { %4099 = vmatpush1.bf16.msra.mxu0 %v6007_v59  ;;  %v6089_v59 = vld [vmem:[%s8606_s8 + $0x344] ss:$16 sps:$4 sm:$0xff]  }
 0x363   : > { %4100 = vmatprep.subr.bf16.mxu0 %v6009_v45  ;;  %v6090_v45 = vld [vmem:[%s8606_s8 + $0x348] ss:$16 sps:$4 sm:$0xff]  }
 0x364   : > { %4327 = vmatpush1.bf16.msra.mxu1 %v6048_v39  ;;  %v6134_v39 = vld [vmem:[%s8606_s8 + $0x42c] ss:$16 sps:$4 sm:$0xff]  }
 0x365   : > { %4328 = vmatprep.subr.bf16.mxu1 %v6056_v62  ;;  %v6129_v62 = vld [vmem:[%s8606_s8 + $0x420] ss:$16 sps:$4 sm:$0xff]  }
 0x366   : > { %4101 = vmatpush1.bf16.msra.mxu0 %v6013_v46  ;;  %v6098_v46 = vld [vmem:[%s8606_s8 + $0x36c] ss:$16 sps:$4 sm:$0xff]  }
 0x367   : > { %4102 = vmatprep.subr.bf16.mxu0 %v6015_v38  ;;  %v6096_v38 = vld [vmem:[%s8606_s8 + $0x368] ss:$16 sps:$4 sm:$0xff]  }
 0x368   : > { %4329 = vmatpush1.bf16.msra.mxu1 %v6054_v26  ;;  %v6137_v26 = vld [vmem:[%s8606_s8 + $0x444] ss:$16 sps:$4 sm:$0xff]  }
 0x369   : > { %4330 = vmatprep.subr.bf16.mxu1 %v6062_v53  ;;  %v6135_v53 = vld [vmem:[%s8606_s8 + $0x440] ss:$16 sps:$4 sm:$0xff]  }
 0x36a   : > { %4103 = vmatpush1.bf16.msra.mxu0 %v6019_v9  ;;  %v6104_v9 = vld [vmem:[%s8606_s8 + $0x38c] ss:$16 sps:$4 sm:$0xff]  }
 0x36b   : > { %4104 = vmatprep.subr.bf16.mxu0 %v6021_v5  ;;  %v6102_v5 = vld [vmem:[%s8606_s8 + $0x388] ss:$16 sps:$4 sm:$0xff]  }
 0x36c   : > { %4331 = vmatpush1.bf16.msra.mxu1 %v6060_v50  ;;  %v6143_v50 = vld [vmem:[%s8606_s8 + $0x464] ss:$16 sps:$4 sm:$0xff]  }
 0x36d   : > { %4332 = vmatprep.subr.bf16.mxu1 %v6068_v22  ;;  %v6141_v22 = vld [vmem:[%s8606_s8 + $0x460] ss:$16 sps:$4 sm:$0xff]  }
 0x36e   : > { %4105 = vmatpush1.bf16.msra.mxu0 %v6025_v47  ;;  %v6110_v47 = vld [vmem:[%s8606_s8 + $0x3ac] ss:$16 sps:$4 sm:$0xff]  }
 0x36f   : > { %4115 = vmatprep.subr.bf16.mxu0 %v6029_v3  ;;  %v6113_v3 = vld [vmem:[%s8606_s8 + $0x3c4] ss:$16 sps:$4 sm:$0xff]  }
 0x370   : > { %4333 = vmatpush1.bf16.msra.mxu1 %v6066_v55  ;;  %v6149_v55 = vld [vmem:[%s8606_s8 + $0x484] ss:$16 sps:$4 sm:$0xff]  }
 0x371   : > { %4107 = vmatmul.mubr.bf16.vlgmr.msra.gmra.mrb[0].mxu0 %v2122_v33  ;;  %4334 = vmatprep.subr.bf16.mxu1 %v6074_v8  ;;  %v6119_v33 = vld [vmem:[%s8606_s8 + $0x3e4] ss:$16 sps:$4 sm:$0xff]   ;;  %v6147_v8 = vld [vmem:[%s8606_s8 + $0x480] ss:$16 sps:$4 sm:$0xff]  }
 0x372   : > { %4116 = vmatpush1.bf16.msra.mxu0 %v6027_v18  ;;  %4147 = vmatprep.mubr.bf16.mxu0 %v2125_v27  ;;  %v6114_v18 = vld [vmem:[%s8606_s8 + $0x3c8] ss:$16 sps:$4 sm:$0xff]   ;;  %v2083_v27 = vrot.slane %v7628_v6, %v8645_v10 }
 0x373   : > { %4117 = vmatprep.subr.bf16.mxu0 %v6035_v49  ;;  %v6117_v49 = vld [vmem:[%s8606_s8 + $0x3e0] ss:$16 sps:$4 sm:$0xff]  }
 0x374   : > { %4335 = vmatpush1.bf16.msra.mxu1 %v6072_v56  ;;  %v6155_v56 = vld [vmem:[%s8606_s8 + $0x4a4] ss:$16 sps:$4 sm:$0xff]  }
 0x375   : > { %4336 = vmatprep.subr.bf16.mxu1 %v6080_v60  ;;  %v6153_v60 = vld [vmem:[%s8606_s8 + $0x4a0] ss:$16 sps:$4 sm:$0xff]  }
 0x376   : > { %4118 = vmatpush1.bf16.msra.mxu0 %v6033_v58  ;;  %v6120_v58 = vld [vmem:[%s8606_s8 + $0x3e8] ss:$16 sps:$4 sm:$0xff]  }
 0x377   : > { %4119 = vmatprep.subr.bf16.mxu0 %v6041_v34  ;;  %v6128_v34 = vld [vmem:[%s8606_s8 + $0x40c] ss:$16 sps:$4 sm:$0xff]  }
 0x378   : > { %4337 = vmatpush1.bf16.msra.mxu1 %v6078_v52  ;;  %v6161_v52 = vld [vmem:[%s8606_s8 + $0x4c4] ss:$16 sps:$4 sm:$0xff]  }
 0x379   : > { %4338 = vmatprep.subr.bf16.mxu1 %v6086_v21  ;;  %v6159_v21 = vld [vmem:[%s8606_s8 + $0x4c0] ss:$16 sps:$4 sm:$0xff]  }
 0x37a   : > { %4120 = vmatpush1.bf16.msra.mxu0 %v6039_v13  ;;  %v2095_v13 = vrot.slane %v7628_v6, %v8646_v43  ;;  %v6209_v43 = vld [vmem:[%s8606_s8 + $0x5c4] ss:$16 sps:$4 sm:$0xff]  }
 0x37b   : > { %4121 = vmatprep.subr.bf16.mxu0 %v6047_v20  ;;  %v2124_v20 = vpack.c.bf16 %v2083_v27, %v2083_v27  ;;  %v6203_v27 = vld [vmem:[%s8606_s8 + $0x5a4] ss:$16 sps:$4 sm:$0xff]  }
 0x37c   : > { %4339 = vmatpush1.bf16.msra.mxu1 %v6084_v35  ;;  %v6167_v35 = vld [vmem:[%s8606_s8 + $0x4e4] ss:$16 sps:$4 sm:$0xff]  }
 0x37d   : > { %4340 = vmatprep.subr.bf16.mxu1 %v6092_v19  ;;  %v6165_v19 = vld [vmem:[%s8606_s8 + $0x4e0] ss:$16 sps:$4 sm:$0xff]  }
 0x37e   : > { %4122 = vmatpush1.bf16.msra.mxu0 %v6045_v48  ;;  %v6131_v48 = vld [vmem:[%s8606_s8 + $0x424] ss:$16 sps:$4 sm:$0xff]  }
 0x37f   : > { %4123 = vmatprep.subr.bf16.mxu0 %v6053_v40  ;;  %v2127_v40 = vpack.c.bf16 %v2095_v13, %v2095_v13  ;;  %v6212_v13 = vld [vmem:[%s8606_s8 + $0x5cc] ss:$16 sps:$4 sm:$0xff]  }
 0x380   : > { %4341 = vmatpush1.bf16.msra.mxu1 %v6090_v45  ;;  %v6173_v45 = vld [vmem:[%s8606_s8 + $0x504] ss:$16 sps:$4 sm:$0xff]  }
 0x381   : > { %4342 = vmatprep.subr.bf16.mxu1 %v6098_v46  ;;  %v6171_v46 = vld [vmem:[%s8606_s8 + $0x500] ss:$16 sps:$4 sm:$0xff]  }
 0x382   : > { %4124 = vmatpush1.bf16.msra.mxu0 %v6051_v14  ;;  %v6132_v14 = vld [vmem:[%s8606_s8 + $0x428] ss:$16 sps:$4 sm:$0xff]  }
 0x383   : > { %4125 = vmatprep.subr.bf16.mxu0 %v6059_v0  ;;  %v6140_v0 = vld [vmem:[%s8606_s8 + $0x44c] ss:$16 sps:$4 sm:$0xff]  }
 0x384   : > { %4343 = vmatpush1.bf16.msra.mxu1 %v6096_v38  ;;  %v6179_v38 = vld [vmem:[%s8606_s8 + $0x524] ss:$16 sps:$4 sm:$0xff]  }
 0x385   : > { %4344 = vmatprep.subr.bf16.mxu1 %v6104_v9  ;;  %v6177_v9 = vld [vmem:[%s8606_s8 + $0x520] ss:$16 sps:$4 sm:$0xff]  }
 0x386   : > { %4126 = vmatpush1.bf16.msra.mxu0 %v6057_v29  ;;  %v6138_v29 = vld [vmem:[%s8606_s8 + $0x448] ss:$16 sps:$4 sm:$0xff]  }
 0x387   : > { %4127 = vmatprep.subr.bf16.mxu0 %v6065_v61  ;;  %v6146_v61 = vld [vmem:[%s8606_s8 + $0x46c] ss:$16 sps:$4 sm:$0xff]  }
 0x388   : > { %4345 = vmatpush1.bf16.msra.mxu1 %v6102_v5  ;;  %v6185_v5 = vld [vmem:[%s8606_s8 + $0x544] ss:$16 sps:$4 sm:$0xff]  }
 0x389   : > { %4346 = vmatprep.subr.bf16.mxu1 %v6110_v47  ;;  %v6183_v47 = vld [vmem:[%s8606_s8 + $0x540] ss:$16 sps:$4 sm:$0xff]  }
 0x38a   : > { %4128 = vmatpush1.bf16.msra.mxu0 %v6063_v54  ;;  %v6144_v54 = vld [vmem:[%s8606_s8 + $0x468] ss:$16 sps:$4 sm:$0xff]  }
 0x38b   : > { %4129 = vmatprep.subr.bf16.mxu0 %v6071_v32  ;;  %v6152_v32 = vld [vmem:[%s8606_s8 + $0x48c] ss:$16 sps:$4 sm:$0xff]  }
 0x38c   : > { %4347 = vmatpush1.bf16.msra.mxu1 %v6108_v31  ;;  %v6191_v31 = vld [vmem:[%s8606_s8 + $0x564] ss:$16 sps:$4 sm:$0xff]  }
 0x38d   : > { %4348 = vmatprep.subr.bf16.mxu1 %v6116_v2  ;;  %v6189_v2 = vld [vmem:[%s8606_s8 + $0x560] ss:$16 sps:$4 sm:$0xff]  }
 0x38e   : > { %4130 = vmatpush1.bf16.msra.mxu0 %v6069_v23  ;;  %v6150_v23 = vld [vmem:[%s8606_s8 + $0x488] ss:$16 sps:$4 sm:$0xff]  }
 0x38f   : > { %4131 = vmatprep.subr.bf16.mxu0 %v6077_v4  ;;  %v6158_v4 = vld [vmem:[%s8606_s8 + $0x4ac] ss:$16 sps:$4 sm:$0xff]  }
 0x390   : > { %4349 = vmatpush1.bf16.msra.mxu1 %v6114_v18  ;;  %v6197_v18 = vld [vmem:[%s8606_s8 + $0x584] ss:$16 sps:$4 sm:$0xff]  }
 0x391   : > { %4350 = vmatprep.subr.bf16.mxu1 %v6122_v63  ;;  %v6195_v63 = vld [vmem:[%s8606_s8 + $0x580] ss:$16 sps:$4 sm:$0xff]  }
 0x392   : > { %4132 = vmatpush1.bf16.msra.mxu0 %v6075_v1  ;;  %v6156_v1 = vld [vmem:[%s8606_s8 + $0x4a8] ss:$16 sps:$4 sm:$0xff]  }
 0x393   : > { %4133 = vmatprep.subr.bf16.mxu0 %v6083_v28  ;;  %v6164_v28 = vld [vmem:[%s8606_s8 + $0x4cc] ss:$16 sps:$4 sm:$0xff]  }
 0x394   : > { %4351 = vmatpush1.bf16.msra.mxu1 %v6120_v58  ;;  %v6206_v58 = vld [vmem:[%s8606_s8 + $0x5ac] ss:$16 sps:$4 sm:$0xff]  }
 0x395   : > { %4361 = vmatprep.subr.bf16.mxu1 %v6128_v34  ;;  %v6204_v34 = vld [vmem:[%s8606_s8 + $0x5a8] ss:$16 sps:$4 sm:$0xff]  }
 0x396   : > { %4134 = vmatpush1.bf16.msra.mxu0 %v6081_v12  ;;  %v6162_v12 = vld [vmem:[%s8606_s8 + $0x4c8] ss:$16 sps:$4 sm:$0xff]  }
 0x397   : > { %4135 = vmatprep.subr.bf16.mxu0 %v6089_v59  ;;  %4353 = vmatmul.mubr.bf16.vlgmr.msra.gmra.mrb[0].mxu1 %v2124_v20  ;;  %v6170_v59 = vld [vmem:[%s8606_s8 + $0x4ec] ss:$16 sps:$4 sm:$0xff]  }
 0x398   : > { %4362 = vmatpush1.bf16.msra.mxu1 %v6126_v42  ;;  %4393 = vmatprep.mubr.bf16.mxu1 %v2127_v40  ;;  %v6215_v42 = vld [vmem:[%s8606_s8 + $0x5e4] ss:$16 sps:$4 sm:$0xff]  }
 0x399   : > { %4363 = vmatprep.subr.bf16.mxu1 %v6134_v39  ;;  %v6213_v39 = vld [vmem:[%s8606_s8 + $0x5e0] ss:$16 sps:$4 sm:$0xff]  }
 0x39a   : > { %4136 = vmatpush1.bf16.msra.mxu0 %v6087_v7  ;;  %v6168_v7 = vld [vmem:[%s8606_s8 + $0x4e8] ss:$16 sps:$4 sm:$0xff]  }
 0x39b   : > { %4137 = vmatprep.subr.bf16.mxu0 %v6095_v41  ;;  %v6176_v41 = vld [vmem:[%s8606_s8 + $0x50c] ss:$16 sps:$4 sm:$0xff]  }
 0x39c   : > { %4364 = vmatpush1.bf16.msra.mxu1 %v6132_v14  ;;  %v6216_v14 = vld [vmem:[%s8606_s8 + $0x5e8] ss:$16 sps:$4 sm:$0xff]  }
 0x39d   : > { %4365 = vmatprep.subr.bf16.mxu1 %v6140_v0  ;;  %v6224_v0 = vld [vmem:[%s8606_s8 + $0x60c] ss:$16 sps:$4 sm:$0xff]  }
 0x39e   : > { %4138 = vmatpush1.bf16.msra.mxu0 %v6093_v17  ;;  %v6174_v17 = vld [vmem:[%s8606_s8 + $0x508] ss:$16 sps:$4 sm:$0xff]  }
 0x39f   : > { %4139 = vmatprep.subr.bf16.mxu0 %v6101_v51  ;;  %v6182_v51 = vld [vmem:[%s8606_s8 + $0x52c] ss:$16 sps:$4 sm:$0xff]  }
 0x3a0   : > { %4366 = vmatpush1.bf16.msra.mxu1 %v6138_v29 }
 0x3a1   : > { %4367 = vmatprep.subr.bf16.mxu1 %v6146_v61 }
 0x3a2   : > { %4140 = vmatpush1.bf16.msra.mxu0 %v6099_v37  ;;  %v6180_v37 = vld [vmem:[%s8606_s8 + $0x528] ss:$16 sps:$4 sm:$0xff]  }
 0x3a3   : > { %4141 = vmatprep.subr.bf16.mxu0 %v6107_v36  ;;  %v6188_v36 = vld [vmem:[%s8606_s8 + $0x54c] ss:$16 sps:$4 sm:$0xff]  }
 0x3a4   : > { %4368 = vmatpush1.bf16.msra.mxu1 %v6144_v54  ;;  %v6227_v54 = vld [vmem:[%s8606_s8 + $0x624] ss:$16 sps:$4 sm:$0xff]  }
 0x3a5   : > { %4369 = vmatprep.subr.bf16.mxu1 %v6152_v32 }
 0x3a6   : > { %4142 = vmatpush1.bf16.msra.mxu0 %v6105_v16  ;;  %v6186_v16 = vld [vmem:[%s8606_s8 + $0x548] ss:$16 sps:$4 sm:$0xff]  }
 0x3a7   : > { %4143 = vmatprep.subr.bf16.mxu0 %v6113_v3  ;;  %v6194_v3 = vld [vmem:[%s8606_s8 + $0x56c] ss:$16 sps:$4 sm:$0xff]  }
 0x3a8   : > { %4370 = vmatpush1.bf16.msra.mxu1 %v6150_v23  ;;  %v6228_v23 = vld [vmem:[%s8606_s8 + $0x628] ss:$16 sps:$4 sm:$0xff]  }
 0x3a9   : > { %4371 = vmatprep.subr.bf16.mxu1 %v6158_v4  ;;  %v6236_v4 = vld [vmem:[%s8606_s8 + $0x64c] ss:$16 sps:$4 sm:$0xff]  }
 0x3aa   : > { %4144 = vmatpush1.bf16.msra.mxu0 %v6111_v57  ;;  %v6192_v57 = vld [vmem:[%s8606_s8 + $0x568] ss:$16 sps:$4 sm:$0xff]  }
 0x3ab   : > { %4145 = vmatprep.subr.bf16.mxu0 %v6119_v33  ;;  %v6200_v33 = vld [vmem:[%s8606_s8 + $0x58c] ss:$16 sps:$4 sm:$0xff]  }
 0x3ac   : > { %4372 = vmatpush1.bf16.msra.mxu1 %v6156_v1  ;;  %v6234_v1 = vld [vmem:[%s8606_s8 + $0x648] ss:$16 sps:$4 sm:$0xff]  }
 0x3ad   : > { %4373 = vmatprep.subr.bf16.mxu1 %v6164_v28  ;;  %v6242_v28 = vld [vmem:[%s8606_s8 + $0x66c] ss:$16 sps:$4 sm:$0xff]  }
 0x3ae   : > { %4146 = vmatpush1.bf16.msra.mxu0 %v6117_v49  ;;  %v6198_v49 = vld [vmem:[%s8606_s8 + $0x588] ss:$16 sps:$4 sm:$0xff]  }
 0x3af   : > { %4156 = vmatprep.subr.bf16.mxu0 %v6125_v15  ;;  %v6201_v15 = vld [vmem:[%s8606_s8 + $0x5a0] ss:$16 sps:$4 sm:$0xff]  }
 0x3b0   : > { %4374 = vmatpush1.bf16.msra.mxu1 %v6162_v12  ;;  %v6240_v12 = vld [vmem:[%s8606_s8 + $0x668] ss:$16 sps:$4 sm:$0xff]  }
 0x3b1   : > { %4148 = vmatmul.mubr.bf16.vlgmr.msra.gmra.mrb[0].mxu0 %v2124_v20  ;;  %4375 = vmatprep.subr.bf16.mxu1 %v6170_v59  ;;  %v6210_v20 = vld [vmem:[%s8606_s8 + $0x5c8] ss:$16 sps:$4 sm:$0xff]   ;;  %v6248_v59 = vld [vmem:[%s8606_s8 + $0x68c] ss:$16 sps:$4 sm:$0xff]  }
 0x3b2   : > { %4157 = vmatpush1.bf16.msra.mxu0 %v6123_v11  ;;  %4188 = vmatprep.mubr.bf16.mxu0 %v2127_v40  ;;  %v6207_v11 = vld [vmem:[%s8606_s8 + $0x5c0] ss:$16 sps:$4 sm:$0xff]   ;;  %v8647_v40 = vsub.s32 4, %v7013_v44 }
 0x3b3   : > { %4158 = vmatprep.subr.bf16.mxu0 %v6131_v48  ;;  %v6218_v48 = vld [vmem:[%s8606_s8 + $0x5ec] ss:$16 sps:$4 sm:$0xff]  }
 0x3b4   : > { %4376 = vmatpush1.bf16.msra.mxu1 %v6168_v7  ;;  %v6246_v7 = vld [vmem:[%s8606_s8 + $0x688] ss:$16 sps:$4 sm:$0xff]  }
 0x3b5   : > { %4377 = vmatprep.subr.bf16.mxu1 %v6176_v41  ;;  %v6254_v41 = vld [vmem:[%s8606_s8 + $0x6ac] ss:$16 sps:$4 sm:$0xff]  }
 0x3b6   : > { %4159 = vmatpush1.bf16.msra.mxu0 %v6129_v62  ;;  %v2091_v62 = vrot.slane %v7628_v6, %v8647_v40  ;;  %v6294_v40 = vld [vmem:[%s8606_s8 + $0x788] ss:$16 sps:$4 sm:$0xff]  }
 0x3b7   : > { %4160 = vmatprep.subr.bf16.mxu0 %v6137_v26  ;;  %v6221_v26 = vld [vmem:[%s8606_s8 + $0x604] ss:$16 sps:$4 sm:$0xff]  }
 0x3b8   : > { %4378 = vmatpush1.bf16.msra.mxu1 %v6174_v17  ;;  %v2126_v61 = vpack.c.bf16 %v2091_v62, %v2091_v62  ;;  %v6252_v17 = vld [vmem:[%s8606_s8 + $0x6a8] ss:$16 sps:$4 sm:$0xff]   ;;  %v6299_v62 = vld [vmem:[%s8606_s8 + $0x7a4] ss:$16 sps:$4 sm:$0xff]  }
 0x3b9   : > { %4379 = vmatprep.subr.bf16.mxu1 %v6182_v51  ;;  %v6260_v51 = vld [vmem:[%s8606_s8 + $0x6cc] ss:$16 sps:$4 sm:$0xff]  }
 0x3ba   : > { %4161 = vmatpush1.bf16.msra.mxu0 %v6135_v53  ;;  %v8648_v53 = vsub.s32 7, %v7013_v44 }
 0x3bb   : > { %4162 = vmatprep.subr.bf16.mxu0 %v6143_v50  ;;  %v6219_v50 = vld [vmem:[%s8606_s8 + $0x600] ss:$16 sps:$4 sm:$0xff]  }
 0x3bc   : > { %4380 = vmatpush1.bf16.msra.mxu1 %v6180_v37  ;;  %v2103_v29 = vrot.slane %v7628_v6, %v8648_v53  ;;  %v6258_v37 = vld [vmem:[%s8606_s8 + $0x6c8] ss:$16 sps:$4 sm:$0xff]   ;;  %v6305_v53 = vld [vmem:[%s8606_s8 + $0x7c4] ss:$16 sps:$4 sm:$0xff]  }
 0x3bd   : > { %4381 = vmatprep.subr.bf16.mxu1 %v6188_v36  ;;  %v6266_v36 = vld [vmem:[%s8606_s8 + $0x6ec] ss:$16 sps:$4 sm:$0xff]  }
 0x3be   : > { %4163 = vmatpush1.bf16.msra.mxu0 %v6141_v22  ;;  %v6222_v22 = vld [vmem:[%s8606_s8 + $0x608] ss:$16 sps:$4 sm:$0xff]   ;;  %v2129_v32 = vpack.c.bf16 %v2103_v29, %v2103_v29  ;;  %v6308_v29 = vld [vmem:[%s8606_s8 + $0x7cc] ss:$16 sps:$4 sm:$0xff]  }
 0x3bf   : > { %4164 = vmatprep.subr.bf16.mxu0 %v6149_v55  ;;  %v6230_v55 = vld [vmem:[%s8606_s8 + $0x62c] ss:$16 sps:$4 sm:$0xff]  }
 0x3c0   : > { %4382 = vmatpush1.bf16.msra.mxu1 %v6186_v16  ;;  %v6264_v16 = vld [vmem:[%s8606_s8 + $0x6e8] ss:$16 sps:$4 sm:$0xff]  }
 0x3c1   : > { %4383 = vmatprep.subr.bf16.mxu1 %v6194_v3  ;;  %v6272_v3 = vld [vmem:[%s8606_s8 + $0x70c] ss:$16 sps:$4 sm:$0xff]  }
 0x3c2   : > { %4165 = vmatpush1.bf16.msra.mxu0 %v6147_v8  ;;  %v6225_v8 = vld [vmem:[%s8606_s8 + $0x620] ss:$16 sps:$4 sm:$0xff]  }
 0x3c3   : > { %4166 = vmatprep.subr.bf16.mxu0 %v6155_v56  ;;  %v6233_v56 = vld [vmem:[%s8606_s8 + $0x644] ss:$16 sps:$4 sm:$0xff]  }
 0x3c4   : > { %4384 = vmatpush1.bf16.msra.mxu1 %v6192_v57  ;;  %v6270_v57 = vld [vmem:[%s8606_s8 + $0x708] ss:$16 sps:$4 sm:$0xff]  }
 0x3c5   : > { %4385 = vmatprep.subr.bf16.mxu1 %v6200_v33  ;;  %v6278_v33 = vld [vmem:[%s8606_s8 + $0x72c] ss:$16 sps:$4 sm:$0xff]  }
 0x3c6   : > { %4167 = vmatpush1.bf16.msra.mxu0 %v6153_v60  ;;  %v6231_v60 = vld [vmem:[%s8606_s8 + $0x640] ss:$16 sps:$4 sm:$0xff]  }
 0x3c7   : > { %4168 = vmatprep.subr.bf16.mxu0 %v6161_v52  ;;  %v6239_v52 = vld [vmem:[%s8606_s8 + $0x664] ss:$16 sps:$4 sm:$0xff]  }
 0x3c8   : > { %4386 = vmatpush1.bf16.msra.mxu1 %v6198_v49  ;;  %v6276_v49 = vld [vmem:[%s8606_s8 + $0x728] ss:$16 sps:$4 sm:$0xff]  }
 0x3c9   : > { %4387 = vmatprep.subr.bf16.mxu1 %v6206_v58  ;;  %v6284_v58 = vld [vmem:[%s8606_s8 + $0x74c] ss:$16 sps:$4 sm:$0xff]  }
 0x3ca   : > { %4169 = vmatpush1.bf16.msra.mxu0 %v6159_v21  ;;  %v6237_v21 = vld [vmem:[%s8606_s8 + $0x660] ss:$16 sps:$4 sm:$0xff]  }
 0x3cb   : > { %4170 = vmatprep.subr.bf16.mxu0 %v6167_v35  ;;  %v6245_v35 = vld [vmem:[%s8606_s8 + $0x684] ss:$16 sps:$4 sm:$0xff]  }
 0x3cc   : > { %4388 = vmatpush1.bf16.msra.mxu1 %v6204_v34  ;;  %v6282_v34 = vld [vmem:[%s8606_s8 + $0x748] ss:$16 sps:$4 sm:$0xff]  }
 0x3cd   : > { %4389 = vmatprep.subr.bf16.mxu1 %v6212_v13  ;;  %v6290_v13 = vld [vmem:[%s8606_s8 + $0x76c] ss:$16 sps:$4 sm:$0xff]  }
 0x3ce   : > { %4171 = vmatpush1.bf16.msra.mxu0 %v6165_v19  ;;  %v6243_v19 = vld [vmem:[%s8606_s8 + $0x680] ss:$16 sps:$4 sm:$0xff]  }
 0x3cf   : > { %4172 = vmatprep.subr.bf16.mxu0 %v6173_v45  ;;  %v6251_v45 = vld [vmem:[%s8606_s8 + $0x6a4] ss:$16 sps:$4 sm:$0xff]  }
 0x3d0   : > { %4390 = vmatpush1.bf16.msra.mxu1 %v6210_v20  ;;  %v6288_v20 = vld [vmem:[%s8606_s8 + $0x768] ss:$16 sps:$4 sm:$0xff]  }
 0x3d1   : > { %4391 = vmatprep.subr.bf16.mxu1 %v6218_v48  ;;  %v6296_v48 = vld [vmem:[%s8606_s8 + $0x78c] ss:$16 sps:$4 sm:$0xff]  }
 0x3d2   : > { %4173 = vmatpush1.bf16.msra.mxu0 %v6171_v46  ;;  %v6249_v46 = vld [vmem:[%s8606_s8 + $0x6a0] ss:$16 sps:$4 sm:$0xff]  }
 0x3d3   : > { %4174 = vmatprep.subr.bf16.mxu0 %v6179_v38  ;;  %v6257_v38 = vld [vmem:[%s8606_s8 + $0x6c4] ss:$16 sps:$4 sm:$0xff]  }
 0x3d4   : > { %4392 = vmatpush1.bf16.msra.mxu1 %v6216_v14  ;;  %v6302_v14 = vld [vmem:[%s8606_s8 + $0x7ac] ss:$16 sps:$4 sm:$0xff]  }
 0x3d5   : > { %4402 = vmatprep.subr.bf16.mxu1 %v6224_v0  ;;  %v6300_v0 = vld [vmem:[%s8606_s8 + $0x7a8] ss:$16 sps:$4 sm:$0xff]  }
 0x3d6   : > { %4175 = vmatpush1.bf16.msra.mxu0 %v6177_v9  ;;  %v6255_v9 = vld [vmem:[%s8606_s8 + $0x6c0] ss:$16 sps:$4 sm:$0xff]  }
 0x3d7   : > { %4176 = vmatprep.subr.bf16.mxu0 %v6185_v5  ;;  %4394 = vmatmul.mubr.bf16.vlgmr.msra.gmra.mrb[0].mxu1 %v2126_v61  ;;  %v6263_v5 = vld [vmem:[%s8606_s8 + $0x6e4] ss:$16 sps:$4 sm:$0xff]  }
 0x3d8   : > { %4403 = vmatpush1.bf16.msra.mxu1 %v6222_v22  ;;  %4434 = vmatprep.mubr.bf16.mxu1 %v2129_v32  ;;  %v6306_v22 = vld [vmem:[%s8606_s8 + $0x7c8] ss:$16 sps:$4 sm:$0xff]  }
 0x3d9   : > { %4404 = vmatprep.subr.bf16.mxu1 %v6230_v55  ;;  %v6314_v55 = vld [vmem:[%s8606_s8 + $0x7ec] ss:$16 sps:$4 sm:$0xff]  }
 0x3da   : > { %4177 = vmatpush1.bf16.msra.mxu0 %v6183_v47  ;;  %v6261_v47 = vld [vmem:[%s8606_s8 + $0x6e0] ss:$16 sps:$4 sm:$0xff]  }
 0x3db   : > { %4178 = vmatprep.subr.bf16.mxu0 %v6191_v31  ;;  %v6269_v31 = vld [vmem:[%s8606_s8 + $0x704] ss:$16 sps:$4 sm:$0xff]  }
 0x3dc   : > { %4405 = vmatpush1.bf16.msra.mxu1 %v6228_v23 }
 0x3dd   : > { %4406 = vmatprep.subr.bf16.mxu1 %v6236_v4  ;;  %v6312_v4 = vld [vmem:[%s8606_s8 + $0x7e8] ss:$16 sps:$4 sm:$0xff]  }
 0x3de   : > { %4179 = vmatpush1.bf16.msra.mxu0 %v6189_v2  ;;  %v6267_v2 = vld [vmem:[%s8606_s8 + $0x700] ss:$16 sps:$4 sm:$0xff]  }
 0x3df   : > { %4180 = vmatprep.subr.bf16.mxu0 %v6197_v18  ;;  %v6275_v18 = vld [vmem:[%s8606_s8 + $0x724] ss:$16 sps:$4 sm:$0xff]  }
 0x3e0   : > { %4407 = vmatpush1.bf16.msra.mxu1 %v6234_v1 }
 0x3e1   : > { %4408 = vmatprep.subr.bf16.mxu1 %v6242_v28  ;;  %v6318_v28 = vld [vmem:[%s8606_s8 + $0x808] ss:$16 sps:$4 sm:$0xff]  }
 0x3e2   : > { %4181 = vmatpush1.bf16.msra.mxu0 %v6195_v63  ;;  %v6273_v63 = vld [vmem:[%s8606_s8 + $0x720] ss:$16 sps:$4 sm:$0xff]  }
 0x3e3   : > { %4182 = vmatprep.subr.bf16.mxu0 %v6203_v27  ;;  %v6281_v27 = vld [vmem:[%s8606_s8 + $0x744] ss:$16 sps:$4 sm:$0xff]  }
 0x3e4   : > { %4409 = vmatpush1.bf16.msra.mxu1 %v6240_v12  ;;  %v6326_v12 = vld [vmem:[%s8606_s8 + $0x82c] ss:$16 sps:$4 sm:$0xff]  }
 0x3e5   : > { %4410 = vmatprep.subr.bf16.mxu1 %v6248_v59  ;;  %v6321_v59 = vld [vmem:[%s8606_s8 + $0x820] ss:$16 sps:$4 sm:$0xff]  }
 0x3e6   : > { %4183 = vmatpush1.bf16.msra.mxu0 %v6201_v15  ;;  %v6279_v15 = vld [vmem:[%s8606_s8 + $0x740] ss:$16 sps:$4 sm:$0xff]  }
 0x3e7   : > { %4184 = vmatprep.subr.bf16.mxu0 %v6209_v43  ;;  %v6287_v43 = vld [vmem:[%s8606_s8 + $0x764] ss:$16 sps:$4 sm:$0xff]  }
 0x3e8   : > { %4411 = vmatpush1.bf16.msra.mxu1 %v6246_v7  ;;  %v6329_v7 = vld [vmem:[%s8606_s8 + $0x844] ss:$16 sps:$4 sm:$0xff]  }
 0x3e9   : > { %4412 = vmatprep.subr.bf16.mxu1 %v6254_v41  ;;  %v6327_v41 = vld [vmem:[%s8606_s8 + $0x840] ss:$16 sps:$4 sm:$0xff]  }
 0x3ea   : > { %4185 = vmatpush1.bf16.msra.mxu0 %v6207_v11  ;;  %v6285_v11 = vld [vmem:[%s8606_s8 + $0x760] ss:$16 sps:$4 sm:$0xff]  }
 0x3eb   : > { %4186 = vmatprep.subr.bf16.mxu0 %v6215_v42  ;;  %v6293_v42 = vld [vmem:[%s8606_s8 + $0x784] ss:$16 sps:$4 sm:$0xff]  }
 0x3ec   : > { %4413 = vmatpush1.bf16.msra.mxu1 %v6252_v17  ;;  %v6335_v17 = vld [vmem:[%s8606_s8 + $0x864] ss:$16 sps:$4 sm:$0xff]  }
 0x3ed   : > { %4414 = vmatprep.subr.bf16.mxu1 %v6260_v51  ;;  %v6333_v51 = vld [vmem:[%s8606_s8 + $0x860] ss:$16 sps:$4 sm:$0xff]  }
 0x3ee   : > { %4187 = vmatpush1.bf16.msra.mxu0 %v6213_v39  ;;  %v6291_v39 = vld [vmem:[%s8606_s8 + $0x780] ss:$16 sps:$4 sm:$0xff]  }
 0x3ef   : > { %4197 = vmatprep.subr.bf16.mxu0 %v6221_v26  ;;  %v6297_v26 = vld [vmem:[%s8606_s8 + $0x7a0] ss:$16 sps:$4 sm:$0xff]  }
 0x3f0   : > { %4415 = vmatpush1.bf16.msra.mxu1 %v6258_v37  ;;  %v6341_v37 = vld [vmem:[%s8606_s8 + $0x884] ss:$16 sps:$4 sm:$0xff]  }
 0x3f1   : > { %4189 = vmatmul.mubr.bf16.vlgmr.msra.gmra.mrb[0].mxu0 %v2126_v61  ;;  %4416 = vmatprep.subr.bf16.mxu1 %v6266_v36  ;;  %v6303_v61 = vld [vmem:[%s8606_s8 + $0x7c0] ss:$16 sps:$4 sm:$0xff]  }
 0x3f2   : > { %4198 = vmatpush1.bf16.msra.mxu0 %v6219_v50  ;;  %4229 = vmatprep.mubr.bf16.mxu0 %v2129_v32  ;;  %v2067_v50 = vld [vmem:[#allocation3 + $0x8] sm:$0x3]  ;;  %v6339_v36 = vld [vmem:[%s8606_s8 + $0x880] ss:$16 sps:$4 sm:$0xff]  }
 0x3f3   : > { %4199 = vmatprep.subr.bf16.mxu0 %v6227_v54  ;;  %v6311_v54 = vld [vmem:[%s8606_s8 + $0x7e4] ss:$16 sps:$4 sm:$0xff]   ;;  %v8268_v32 = vmul.f32 0.015625, %v2067_v50  ;;  %v6384_v50 = vld [vmem:[%s8606_s8 + $0x968] ss:$16 sps:$4 sm:$0xff]  }
 0x3f4   : > { %4417 = vmatpush1.bf16.msra.mxu1 %v6264_v16  ;;  %v6347_v16 = vld [vmem:[%s8606_s8 + $0x8a4] ss:$16 sps:$4 sm:$0xff]  }
 0x3f5   : > { %4418 = vmatprep.subr.bf16.mxu1 %v6272_v3  ;;  %v6345_v3 = vld [vmem:[%s8606_s8 + $0x8a0] ss:$16 sps:$4 sm:$0xff]  }
 0x3f6   : > { %4200 = vmatpush1.bf16.msra.mxu0 %v6225_v8  ;;  %v8649_v8 = vsub.s32 6, %v7013_v44  ;;  %v6320_v44 = vld [vmem:[%s8606_s8 + $0x80c] ss:$16 sps:$4 sm:$0xff]  }
 0x3f7   : > { %4201 = vmatprep.subr.bf16.mxu0 %v6233_v56  ;;  %v6309_v56 = vld [vmem:[%s8606_s8 + $0x7e0] ss:$16 sps:$4 sm:$0xff]  }
 0x3f8   : > { %4419 = vmatpush1.bf16.msra.mxu1 %v6270_v57  ;;  %v2099_v23 = vrot.slane %v7628_v6, %v8649_v8  ;;  %v2111_v6 = vrot.slane %v8268_v32, %v8642_v24  ;;  %v6353_v57 = vld [vmem:[%s8606_s8 + $0x8c4] ss:$16 sps:$4 sm:$0xff]  }
 0x3f9   : > { %4420 = vmatprep.subr.bf16.mxu1 %v6278_v33  ;;  %v6351_v33 = vld [vmem:[%s8606_s8 + $0x8c0] ss:$16 sps:$4 sm:$0xff]   ;;  %v6395_v8 = vld [vmem:[%s8606_s8 + $0x9a4] ss:$16 sps:$4 sm:$0xff]  }
 0x3fa   : > { %4202 = vmatpush1.bf16.msra.mxu0 %v6231_v60  ;;  %v6317_v60 = vld [vmem:[%s8606_s8 + $0x804] ss:$16 sps:$4 sm:$0xff]   ;;  %v2128_v1 = vpack.c.bf16 %v2099_v23, %v2099_v23  ;;  %v6398_v23 = vld [vmem:[%s8606_s8 + $0x9ac] ss:$16 sps:$4 sm:$0xff]  }
 0x3fb   : > { %4203 = vmatprep.subr.bf16.mxu0 %v6239_v52  ;;  %v6315_v52 = vld [vmem:[%s8606_s8 + $0x800] ss:$16 sps:$4 sm:$0xff]  }
 0x3fc   : > { %4421 = vmatpush1.bf16.msra.mxu1 %v6276_v49  ;;  %v6359_v49 = vld [vmem:[%s8606_s8 + $0x8e4] ss:$16 sps:$4 sm:$0xff]  }
 0x3fd   : > { %4422 = vmatprep.subr.bf16.mxu1 %v6284_v58  ;;  %v6357_v58 = vld [vmem:[%s8606_s8 + $0x8e0] ss:$16 sps:$4 sm:$0xff]  }
 0x3fe   : > { %4204 = vmatpush1.bf16.msra.mxu0 %v6237_v21  ;;  %v6323_v21 = vld [vmem:[%s8606_s8 + $0x824] ss:$16 sps:$4 sm:$0xff]  }
 0x3ff   : > { %4205 = vmatprep.subr.bf16.mxu0 %v6245_v35  ;;  %v2131_v35 = vpack.c.bf16 %v2111_v6, %v2111_v6  ;;  %v6399_v6 = vld [vmem:[%s8606_s8 + $0x9c0] ss:$16 sps:$4 sm:$0xff]  }
 0x400   : > { %4423 = vmatpush1.bf16.msra.mxu1 %v6282_v34  ;;  %v6365_v34 = vld [vmem:[%s8606_s8 + $0x904] ss:$16 sps:$4 sm:$0xff]  }
 0x401   : > { %4424 = vmatprep.subr.bf16.mxu1 %v6290_v13  ;;  %v6363_v13 = vld [vmem:[%s8606_s8 + $0x900] ss:$16 sps:$4 sm:$0xff]  }
 0x402   : > { %4206 = vmatpush1.bf16.msra.mxu0 %v6243_v19  ;;  %v6324_v19 = vld [vmem:[%s8606_s8 + $0x828] ss:$16 sps:$4 sm:$0xff]  }
 0x403   : > { %4207 = vmatprep.subr.bf16.mxu0 %v6251_v45  ;;  %v6332_v45 = vld [vmem:[%s8606_s8 + $0x84c] ss:$16 sps:$4 sm:$0xff]  }
 0x404   : > { %4425 = vmatpush1.bf16.msra.mxu1 %v6288_v20  ;;  %v6371_v20 = vld [vmem:[%s8606_s8 + $0x924] ss:$16 sps:$4 sm:$0xff]  }
 0x405   : > { %4426 = vmatprep.subr.bf16.mxu1 %v6296_v48  ;;  %v6369_v48 = vld [vmem:[%s8606_s8 + $0x920] ss:$16 sps:$4 sm:$0xff]  }
 0x406   : > { %4208 = vmatpush1.bf16.msra.mxu0 %v6249_v46  ;;  %v6330_v46 = vld [vmem:[%s8606_s8 + $0x848] ss:$16 sps:$4 sm:$0xff]  }
 0x407   : > { %4209 = vmatprep.subr.bf16.mxu0 %v6257_v38  ;;  %v6338_v38 = vld [vmem:[%s8606_s8 + $0x86c] ss:$16 sps:$4 sm:$0xff]  }
 0x408   : > { %4427 = vmatpush1.bf16.msra.mxu1 %v6294_v40  ;;  %v6377_v40 = vld [vmem:[%s8606_s8 + $0x944] ss:$16 sps:$4 sm:$0xff]  }
 0x409   : > { %4428 = vmatprep.subr.bf16.mxu1 %v6302_v14  ;;  %v6375_v14 = vld [vmem:[%s8606_s8 + $0x940] ss:$16 sps:$4 sm:$0xff]  }
 0x40a   : > { %4210 = vmatpush1.bf16.msra.mxu0 %v6255_v9  ;;  %v6336_v9 = vld [vmem:[%s8606_s8 + $0x868] ss:$16 sps:$4 sm:$0xff]  }
 0x40b   : > { %4211 = vmatprep.subr.bf16.mxu0 %v6263_v5  ;;  %v6344_v5 = vld [vmem:[%s8606_s8 + $0x88c] ss:$16 sps:$4 sm:$0xff]  }
 0x40c   : > { %4429 = vmatpush1.bf16.msra.mxu1 %v6300_v0  ;;  %v6383_v0 = vld [vmem:[%s8606_s8 + $0x964] ss:$16 sps:$4 sm:$0xff]  }
 0x40d   : > { %4430 = vmatprep.subr.bf16.mxu1 %v6308_v29  ;;  %v6381_v29 = vld [vmem:[%s8606_s8 + $0x960] ss:$16 sps:$4 sm:$0xff]  }
 0x40e   : > { %4212 = vmatpush1.bf16.msra.mxu0 %v6261_v47  ;;  %v6342_v47 = vld [vmem:[%s8606_s8 + $0x888] ss:$16 sps:$4 sm:$0xff]  }
 0x40f   : > { %4213 = vmatprep.subr.bf16.mxu0 %v6269_v31  ;;  %v6350_v31 = vld [vmem:[%s8606_s8 + $0x8ac] ss:$16 sps:$4 sm:$0xff]  }
 0x410   : > { %4431 = vmatpush1.bf16.msra.mxu1 %v6306_v22  ;;  %v6392_v22 = vld [vmem:[%s8606_s8 + $0x98c] ss:$16 sps:$4 sm:$0xff]  }
 0x411   : > { %4432 = vmatprep.subr.bf16.mxu1 %v6314_v55  ;;  %v6390_v55 = vld [vmem:[%s8606_s8 + $0x988] ss:$16 sps:$4 sm:$0xff]  }
 0x412   : > { %4214 = vmatpush1.bf16.msra.mxu0 %v6267_v2  ;;  %v6348_v2 = vld [vmem:[%s8606_s8 + $0x8a8] ss:$16 sps:$4 sm:$0xff]  }
 0x413   : > { %4215 = vmatprep.subr.bf16.mxu0 %v6275_v18  ;;  %v6356_v18 = vld [vmem:[%s8606_s8 + $0x8cc] ss:$16 sps:$4 sm:$0xff]  }
 0x414   : > { %4433 = vmatpush1.bf16.msra.mxu1 %v6312_v4  ;;  %v6396_v4 = vld [vmem:[%s8606_s8 + $0x9a8] ss:$16 sps:$4 sm:$0xff]  }
 0x415   : > { %4443 = vmatprep.subr.bf16.mxu1 %v6320_v44  ;;  %v6404_v44 = vld [vmem:[%s8606_s8 + $0x9cc] ss:$16 sps:$4 sm:$0xff]  }
 0x416   : > { %4216 = vmatpush1.bf16.msra.mxu0 %v6273_v63  ;;  %v6354_v63 = vld [vmem:[%s8606_s8 + $0x8c8] ss:$16 sps:$4 sm:$0xff]  }
 0x417   : > { %4217 = vmatprep.subr.bf16.mxu0 %v6281_v27  ;;  %4435 = vmatmul.mubr.bf16.vlgmr.msra.gmra.mrb[0].mxu1 %v2128_v1  ;;  %v6362_v27 = vld [vmem:[%s8606_s8 + $0x8ec] ss:$16 sps:$4 sm:$0xff]  }
 0x418   : > { %4444 = vmatpush1.bf16.msra.mxu1 %v6318_v28  ;;  %4475 = vmatprep.mubr.bf16.mxu1 %v2131_v35  ;;  %v6410_v28 = vld [vmem:[%s8606_s8 + $0x9ec] ss:$16 sps:$4 sm:$0xff]  }
 0x419   : > { %4445 = vmatprep.subr.bf16.mxu1 %v6326_v12  ;;  %v6405_v12 = vld [vmem:[%s8606_s8 + $0x9e0] ss:$16 sps:$4 sm:$0xff]  }
 0x41a   : > { %4218 = vmatpush1.bf16.msra.mxu0 %v6279_v15  ;;  %v6360_v15 = vld [vmem:[%s8606_s8 + $0x8e8] ss:$16 sps:$4 sm:$0xff]  }
 0x41b   : > { %4219 = vmatprep.subr.bf16.mxu0 %v6287_v43  ;;  %v6368_v43 = vld [vmem:[%s8606_s8 + $0x90c] ss:$16 sps:$4 sm:$0xff]  }
 0x41c   : > { %4446 = vmatpush1.bf16.msra.mxu1 %v6324_v19 }
 0x41d   : > { %4447 = vmatprep.subr.bf16.mxu1 %v6332_v45  ;;  %v6414_v45 = vld [vmem:[%s8608_s10 + $0x80] sm:$0xff]  }
 0x41e   : > { %4220 = vmatpush1.bf16.msra.mxu0 %v6285_v11  ;;  %v6366_v11 = vld [vmem:[%s8606_s8 + $0x908] ss:$16 sps:$4 sm:$0xff]  }
 0x41f   : > { %4221 = vmatprep.subr.bf16.mxu0 %v6293_v42  ;;  %v6374_v42 = vld [vmem:[%s8606_s8 + $0x92c] ss:$16 sps:$4 sm:$0xff]  }
 0x420   : > { %4448 = vmatpush1.bf16.msra.mxu1 %v6330_v46  ;;  %v6416_v46 = vld [vmem:[%s8608_s10 + $0xc8] sm:$0xff]  }
 0x421   : > { %4449 = vmatprep.subr.bf16.mxu1 %v6338_v38  ;;  %v6418_v38 = vld [vmem:[%s8608_s10 + $0x88] sm:$0xff]  }
 0x422   : > { %4222 = vmatpush1.bf16.msra.mxu0 %v6291_v39  ;;  %v6372_v39 = vld [vmem:[%s8606_s8 + $0x928] ss:$16 sps:$4 sm:$0xff]  }
 0x423   : > { %4223 = vmatprep.subr.bf16.mxu0 %v6299_v62  ;;  %v6380_v62 = vld [vmem:[%s8606_s8 + $0x94c] ss:$16 sps:$4 sm:$0xff]  }
 0x424   : > { %4450 = vmatpush1.bf16.msra.mxu1 %v6336_v9  ;;  %v6420_v9 = vld [vmem:[%s8608_s10 + $0xd0] sm:$0xff]  }
 0x425   : > { %4451 = vmatprep.subr.bf16.mxu1 %v6344_v5  ;;  %v6422_v5 = vld [vmem:[%s8608_s10 + $0x90] sm:$0xff]  }
 0x426   : > { %4224 = vmatpush1.bf16.msra.mxu0 %v6297_v26  ;;  %v6378_v26 = vld [vmem:[%s8606_s8 + $0x948] ss:$16 sps:$4 sm:$0xff]  }
 0x427   : > { %4225 = vmatprep.subr.bf16.mxu0 %v6305_v53  ;;  %v6386_v53 = vld [vmem:[%s8606_s8 + $0x96c] ss:$16 sps:$4 sm:$0xff]  }
 0x428   : > { %4452 = vmatpush1.bf16.msra.mxu1 %v6342_v47  ;;  %v6424_v47 = vld [vmem:[%s8608_s10 + $0xd8] sm:$0xff]  }
 0x429   : > { %4453 = vmatprep.subr.bf16.mxu1 %v6350_v31  ;;  %v6426_v31 = vld [vmem:[%s8608_s10 + $0x98] sm:$0xff]  }
 0x42a   : > { %4226 = vmatpush1.bf16.msra.mxu0 %v6303_v61  ;;  %v6389_v61 = vld [vmem:[%s8606_s8 + $0x984] ss:$16 sps:$4 sm:$0xff]  }
 0x42b   : > { %4227 = vmatprep.subr.bf16.mxu0 %v6311_v54  ;;  %v6387_v54 = vld [vmem:[%s8606_s8 + $0x980] ss:$16 sps:$4 sm:$0xff]  }
 0x42c   : > { %4454 = vmatpush1.bf16.msra.mxu1 %v6348_v2  ;;  %v6428_v2 = vld [vmem:[%s8608_s10 + $0xe0] sm:$0xff]  }
 0x42d   : > { %4455 = vmatprep.subr.bf16.mxu1 %v6356_v18  ;;  %v6430_v18 = vld [vmem:[%s8608_s10 + $0xa0] sm:$0xff]  }
 0x42e   : > { %4228 = vmatpush1.bf16.msra.mxu0 %v6309_v56  ;;  %v6393_v56 = vld [vmem:[%s8606_s8 + $0x9a0] ss:$16 sps:$4 sm:$0xff]  }
 0x42f   : > { %4238 = vmatprep.subr.bf16.mxu0 %v6317_v60  ;;  %v6401_v60 = vld [vmem:[%s8606_s8 + $0x9c4] ss:$16 sps:$4 sm:$0xff]  }
 0x430   : > { %4456 = vmatpush1.bf16.msra.mxu1 %v6354_v63  ;;  %v6432_v63 = vld [vmem:[%s8608_s10 + $0xe8] sm:$0xff]  }
 0x431   : > { %4230 = vmatmul.mubr.bf16.vlgmr.msra.gmra.mrb[0].mxu0 %v2128_v1  ;;  %4457 = vmatprep.subr.bf16.mxu1 %v6362_v27  ;;  %v6402_v1 = vld [vmem:[%s8606_s8 + $0x9c8] ss:$16 sps:$4 sm:$0xff]  }
 0x432   : > { %4239 = vmatpush1.bf16.msra.mxu0 %v6315_v52  ;;  %4270 = vmatprep.mubr.bf16.mxu0 %v2131_v35  ;;  %v6407_v52 = vld [vmem:[%s8606_s8 + $0x9e4] ss:$16 sps:$4 sm:$0xff]   ;;  %v6408_v35 = vld [vmem:[%s8606_s8 + $0x9e8] ss:$16 sps:$4 sm:$0xff]  }
 0x433   : > { %4240 = vmatprep.subr.bf16.mxu0 %v6323_v21  ;;  %v2107_v21 = vrot.slane %v8268_v32, %v8643_v25  ;;  %v6412_v32 = vld [vmem:[%s8608_s10 + $0xc0] sm:$0xff]   ;;  %v6434_v27 = vld [vmem:[%s8608_s10 + $0xa8] sm:$0xff]  }
 0x434   : > { %4458 = vmatpush1.bf16.msra.mxu1 %v6360_v15  ;;  %v6436_v15 = vld [vmem:[%s8608_s10 + $0xf0] sm:$0xff]  }
 0x435   : > { %4459 = vmatprep.subr.bf16.mxu1 %v6368_v43  ;;  %v2130_v19 = vpack.c.bf16 %v2107_v21, %v2107_v21  ;;  %v6438_v43 = vld [vmem:[%s8608_s10 + $0xb0] sm:$0xff]   ;;  %v4556_v21 = vld [vmem:[%s8609_s11] sm:$0x1] }
 0x436   : > { %4241 = vmatpush1.bf16.msra.mxu0 %v6321_v59  ;;  %v6411_v59 = vld [vmem:[%s8608_s10 + $0x40] sm:$0xff]  }
 0x437   : > { %4242 = vmatprep.subr.bf16.mxu0 %v6329_v7  ;;  %v6413_v7 = vld [vmem:[%s8608_s10] sm:$0xff]  }
 0x438   : > { %4460 = vmatpush1.bf16.msra.mxu1 %v6366_v11  ;;  %v6440_v11 = vld [vmem:[%s8608_s10 + $0xf8] sm:$0xff]  }
 0x439   : > { %4461 = vmatprep.subr.bf16.mxu1 %v6374_v42  ;;  %v6442_v42 = vld [vmem:[%s8608_s10 + $0xb8] sm:$0xff]  }
 0x43a   : > { %4243 = vmatpush1.bf16.msra.mxu0 %v6327_v41  ;;  %v6415_v41 = vld [vmem:[%s8608_s10 + $0x48] sm:$0xff]  }
 0x43b   : > { %4244 = vmatprep.subr.bf16.mxu0 %v6335_v17  ;;  %v6417_v17 = vld [vmem:[%s8608_s10 + $0x8] sm:$0xff]  }
 0x43c   : > { %4462 = vmatpush1.bf16.msra.mxu1 %v6372_v39 }
 0x43d   : > { %4463 = vmatprep.subr.bf16.mxu1 %v6380_v62 }
 0x43e   : > { %4245 = vmatpush1.bf16.msra.mxu0 %v6333_v51  ;;  %v6419_v51 = vld [vmem:[%s8608_s10 + $0x50] sm:$0xff]  }
 0x43f   : > { %4246 = vmatprep.subr.bf16.mxu0 %v6341_v37  ;;  %v6421_v37 = vld [vmem:[%s8608_s10 + $0x10] sm:$0xff]  }
 0x440   : > { %4464 = vmatpush1.bf16.msra.mxu1 %v6378_v26 }
 0x441   : > { %4465 = vmatprep.subr.bf16.mxu1 %v6386_v53 }
 0x442   : > { %4247 = vmatpush1.bf16.msra.mxu0 %v6339_v36  ;;  %v6423_v36 = vld [vmem:[%s8608_s10 + $0x58] sm:$0xff]  }
 0x443   : > { %4248 = vmatprep.subr.bf16.mxu0 %v6347_v16  ;;  %v6425_v16 = vld [vmem:[%s8608_s10 + $0x18] sm:$0xff]  }
 0x444   : > { %4466 = vmatpush1.bf16.msra.mxu1 %v6384_v50 }
 0x445   : > { %4467 = vmatprep.subr.bf16.mxu1 %v6392_v22 }
 0x446   : > { %4249 = vmatpush1.bf16.msra.mxu0 %v6345_v3  ;;  %v6427_v3 = vld [vmem:[%s8608_s10 + $0x60] sm:$0xff]  }
 0x447   : > { %4250 = vmatprep.subr.bf16.mxu0 %v6353_v57  ;;  %v6429_v57 = vld [vmem:[%s8608_s10 + $0x20] sm:$0xff]  }
 0x448   : > { %4468 = vmatpush1.bf16.msra.mxu1 %v6390_v55 }
 0x449   : > { %4469 = vmatprep.subr.bf16.mxu1 %v6398_v23 }
 0x44a   : > { %4251 = vmatpush1.bf16.msra.mxu0 %v6351_v33  ;;  %v6431_v33 = vld [vmem:[%s8608_s10 + $0x68] sm:$0xff]  }
 0x44b   : > { %4252 = vmatprep.subr.bf16.mxu0 %v6359_v49  ;;  %v6433_v49 = vld [vmem:[%s8608_s10 + $0x28] sm:$0xff]  }
 0x44c   : > { %4470 = vmatpush1.bf16.msra.mxu1 %v6396_v4 }
 0x44d   : > { %4471 = vmatprep.subr.bf16.mxu1 %v6404_v44 }
 0x44e   : > { %4253 = vmatpush1.bf16.msra.mxu0 %v6357_v58  ;;  %v6435_v58 = vld [vmem:[%s8608_s10 + $0x70] sm:$0xff]  }
 0x44f   : > { %4254 = vmatprep.subr.bf16.mxu0 %v6365_v34  ;;  %v6437_v34 = vld [vmem:[%s8608_s10 + $0x30] sm:$0xff]  }
 0x450   : > { %4472 = vmatpush1.bf16.msra.mxu1 %v6402_v1 }
 0x451   : > { %4473 = vmatprep.subr.bf16.mxu1 %v6410_v28 }
 0x452   : > { %4255 = vmatpush1.bf16.msra.mxu0 %v6363_v13  ;;  %v6439_v13 = vld [vmem:[%s8608_s10 + $0x78] sm:$0xff]  }
 0x453   : > { %4256 = vmatprep.subr.bf16.mxu0 %v6371_v20  ;;  %v6441_v20 = vld [vmem:[%s8608_s10 + $0x38] sm:$0xff]  }
 0x454   : > { %4474 = vmatpush1.bf16.msra.mxu1 %v6408_v35 }
 0x455   : > { %5417 = vmatprep.subr.bf16.mxu1 %v6412_v32 }
 0x456   : > { %4257 = vmatpush1.bf16.msra.mxu0 %v6369_v48  ;;  %v2452_v48 = vld [vmem:[%s8607_s9] sm:$0xf] }
 0x457   : > { %4258 = vmatprep.subr.bf16.mxu0 %v6377_v40  ;;  %4476 = vmatmul.mubr.bf16.vlgmr.msra.gmra.mrb[0].mxu1 %v2130_v19  ;;  %v4057_v39 = vrot.slane %v2452_v48, %v8643_v25  ;;  %v4065_v40 = vrot.slane %v2452_v48, %v8645_v10  ;;  %v4061_v62 = vrot.slane %v2452_v48, %v8642_v24 }
 0x458   : > { %5418 = vmatpush3.bf16.msra.mxu1 %v6414_v45 }
 0x459   : > { %5419 = vmatprep.subr.bf16.mxu1 %v6416_v46 }
 0x45a   : > { %4259 = vmatpush1.bf16.msra.mxu0 %v6375_v14  ;;  %v4069_v14 = vrot.slane %v2452_v48, %v8644_v30 }
 0x45b   : > { %4260 = vmatprep.subr.bf16.mxu0 %v6383_v0 }
 0x45c   : > { %5420 = vmatpush3.bf16.msra.mxu1 %v6418_v38 }
 0x45d   : > { %5421 = vmatprep.subr.bf16.mxu1 %v6420_v9 }
 0x45e   : > { %4261 = vmatpush1.bf16.msra.mxu0 %v6381_v29 }
 0x45f   : > { %4262 = vmatprep.subr.bf16.mxu0 %v6389_v61 }
 0x460   : > { %5422 = vmatpush3.bf16.msra.mxu1 %v6422_v5 }
 0x461   : > { %5423 = vmatprep.subr.bf16.mxu1 %v6424_v47 }
 0x462   : > { %4263 = vmatpush1.bf16.msra.mxu0 %v6387_v54 }
 0x463   : > { %4264 = vmatprep.subr.bf16.mxu0 %v6395_v8 }
 0x464   : > { %5424 = vmatpush3.bf16.msra.mxu1 %v6426_v31 }
 0x465   : > { %5425 = vmatprep.subr.bf16.mxu1 %v6428_v2 }
 0x466   : > { %4265 = vmatpush1.bf16.msra.mxu0 %v6393_v56 }
 0x467   : > { %4266 = vmatprep.subr.bf16.mxu0 %v6401_v60 }
 0x468   : > { %5426 = vmatpush3.bf16.msra.mxu1 %v6430_v18 }
 0x469   : > { %5427 = vmatprep.subr.bf16.mxu1 %v6432_v63 }
 0x46a   : > { %4267 = vmatpush1.bf16.msra.mxu0 %v6399_v6 }
 0x46b   : > { %4268 = vmatprep.subr.bf16.mxu0 %v6407_v52 }
 0x46c   : > { %5428 = vmatpush3.bf16.msra.mxu1 %v6434_v27 }
 0x46d   : > { %5429 = vmatprep.subr.bf16.mxu1 %v6436_v15 }
 0x46e   : > { %4269 = vmatpush1.bf16.msra.mxu0 %v6405_v12 }
 0x46f   : > { %5395 = vmatprep.subr.bf16.mxu0 %v6411_v59 }
 0x470   : > { %5430 = vmatpush3.bf16.msra.mxu1 %v6438_v43 }
 0x471   : > { %4271 = vmatmul.mubr.bf16.vlgmr.msra.gmra.mrb[0].mxu0 %v2130_v19  ;;  %5431 = vmatprep.subr.bf16.mxu1 %v6440_v11 }
 0x472   : > { %5396 = vmatpush3.bf16.msra.mxu0 %v6413_v7 }
 0x473   : > { %5397 = vmatprep.subr.bf16.mxu0 %v6415_v41 }
 0x474   : > { %5432 = vmatpush3.bf16.msra.mxu1 %v6442_v42 }
 0x476   : > { %5398 = vmatpush3.bf16.msra.mxu0 %v6417_v17 }
 0x477   : > { %5399 = vmatprep.subr.bf16.mxu0 %v6419_v51 }
 0x47a   : > { %5400 = vmatpush3.bf16.msra.mxu0 %v6421_v37 }
 0x47b   : > { %5401 = vmatprep.subr.bf16.mxu0 %v6423_v36 }
 0x47e   : > { %5402 = vmatpush3.bf16.msra.mxu0 %v6425_v16 }
 0x47f   : > { %5403 = vmatprep.subr.bf16.mxu0 %v6427_v3 }
 0x482   : > { %5404 = vmatpush3.bf16.msra.mxu0 %v6429_v57 }
 0x483   : > { %5405 = vmatprep.subr.bf16.mxu0 %v6431_v33 }
 0x486   : > { %5406 = vmatpush3.bf16.msra.mxu0 %v6433_v49 }
 0x487   : > { %5407 = vmatprep.subr.bf16.mxu0 %v6435_v58 }
 0x48a   : > { %5408 = vmatpush3.bf16.msra.mxu0 %v6437_v34 }
 0x48b   : > { %5409 = vmatprep.subr.bf16.mxu0 %v6439_v13 }
 0x48e   : > { %5410 = vmatpush3.bf16.msra.mxu0 %v6441_v20 }
 0x52a   : > { %v4477_v0 = vpop.f32.mrb[0].mxu1 }
 0x52b   : > { %v5461_v29 = vadd.f32 %v4477_v0, %v4065_v40  ;;  %v4479_v61 = vpop.f32.mrb[1].mxu1 }
 0x52c   : > { %v5462_v54 = vadd.f32 %v4479_v61, %v4069_v14  ;;  %v4481_v8 = vpop.f32.mrb[2].mxu1 }
 0x52d   : > { %v4486_v56 = vmax.f32 %v5461_v29, 0.0  ;;  %v4482_v60 = vpop.f32.mrb[3].mxu1 }
 0x52e   : > { %v4487_v10 = vmax.f32 %v5462_v54, 0.0 }
 0x52f   : > { %v4490_v30 = vpack.c.bf16 %v4486_v56, %v4486_v56 }
 0x530   : > { %v4491_v24 = vpack.c.bf16 %v4487_v10, %v4487_v10 }
 0x532   : > { %4821 = vmatprep.mubr.bf16.mxu1 %v4491_v24 }
 0x533   : > { %4822 = vmatmul.mubr.bf16.vlgmr.msra.gmra.mrb[4].mxu1 %v4490_v30 }
 0x544   : > { %v4272_v26 = vpop.f32.mrb[0].mxu0 }
 0x545   : > { %v5459_v53 = vadd.f32 %v4272_v26, %v4057_v39  ;;  %v4274_v50 = vpop.f32.mrb[1].mxu0 }
 0x546   : > { %v5460_v22 = vadd.f32 %v4274_v50, %v4061_v62  ;;  %v4276_v55 = vpop.f32.mrb[2].mxu0 }
 0x547   : > { %v4484_v23 = vmax.f32 %v5459_v53, 0.0  ;;  %v4277_v4 = vpop.f32.mrb[3].mxu0 }
 0x548   : > { %v4485_v44 = vmax.f32 %v5460_v22, 0.0 }
 0x549   : > { %v4488_v1 = vpack.c.bf16 %v4484_v23, %v4484_v23 }
 0x54a   : > { %v4489_v6 = vpack.c.bf16 %v4485_v44, %v4485_v44 }
 0x54c   : > { %4781 = vmatprep.mubr.bf16.mxu0 %v4489_v6 }
 0x54d   : > { %4782 = vmatmul.mubr.bf16.vlgmr.msra.gmra.mrb[4].mxu0 %v4488_v1 }
 0x606   : > { %v5433_v28 = vpop.f32.mrb[4].mxu1 }
 0x607   : > { %v5434_v35 = vpop.f32.mrb[5].mxu1 }
 0x608   : > { %v5435_v32 = vadd.f32 %v5434_v35, %v5433_v28  ;;  %v5436_v7 = vpop.f32.mrb[6].mxu1 }
 0x609   : > { %v5437_v41 = vpop.f32.mrb[7].mxu1 }
 0x620   : > { %v5411_v52 = vpop.f32.mrb[4].mxu0 }
 0x621   : > { %v5412_v12 = vpop.f32.mrb[5].mxu0 }
 0x622   : > { %v5413_v59 = vadd.f32 %v5412_v12, %v5411_v52  ;;  %v5414_v19 = vpop.f32.mrb[6].mxu0 }
 0x623   : > { %v5415_v45 = vpop.f32.mrb[7].mxu0 }
 0x624   : > { %v4784_v46 = vadd.f32 %v5413_v59, %v4556_v21 }
 0x626   : > { %v4824_v17 = vadd.f32 %v5435_v32, %v4784_v46 }
 0x628   : > { %v4832_v38 = vrot.slane %v4824_v17, %v8643_v25 }
 0x62a   : > { %4833 = vst [vmem:[%s6594_s14] sm:$0xff] %v4832_v38 }
 0x62b PF: > { %s22_s25 = sadd.s32 1, %s6481_s25   ;;  %s8650_s21 = sld [smem:[#allocation4_spill]] }
 0x62c   : > { %p19_p8 = scmp.ge.s32.totalorder %s22_s25, 6   ;;  %s8651_s22 = sld [smem:[#allocation5_spill]] }
 0x62d   : > { %s8652_s23 = sld [smem:[#allocation6_spill]]  ;;  %s8653_s24 = sld [smem:[#allocation7_spill]] }
 0x62e   :  { %21 = sbr.rel (!%p19_p8) target bundleno = 3 (0x3), region = 116 }

</bundles_post_ra>
